<compile_context>
chip_gen: v6e
topology: v6e:2x2x1
jax: 0.10.0
libtpu: 0.0.40
codegen_flags: <defaults>
</compile_context>

<pallas_src>
import jax
import jax.numpy as jnp
from jax import lax
from jax.experimental import pallas as pl
from jax.experimental.pallas import tpu as pltpu
import numpy as np


def _band_rows(h, w, max_flat_rows):
    """Largest divisor of `h` such that one band (divisor * w flattened rows) stays
    small enough to keep matmul operands out of spill territory."""
    best = 1
    for d in range(1, h + 1):
        if h % d == 0 and d * w <= max_flat_rows:
            best = d
    return best


# --------------------------------------------------------------------------- #
# Pallas kernel: one grid step == one batch sample.  BN1, conv1 3x3, PReLU,
# conv2 3x3/stride, BN2, SE, shortcut and the residual add are fused in-kernel.
# --------------------------------------------------------------------------- #
def _make_kernel(stride, identity):
    s = stride

    def kernel(*refs):
        if identity:
            (x_ref, w1p_ref, alpha_ref, w2p_ref,
             scale1_ref, bias1_ref, bias2_ref,
             se_w1_ref, se_w2_ref,
             out_ref, col1_ref, y_ref, col2_ref, y2_ref) = refs
            wsc_ref = bias_sc_ref = None
        else:
            (x_ref, w1p_ref, alpha_ref, w2p_ref,
             scale1_ref, bias1_ref, bias2_ref,
             se_w1_ref, se_w2_ref, wsc_ref, bias_sc_ref,
             out_ref, col1_ref, y_ref, col2_ref, y2_ref) = refs

        H, W, Cin = x_ref.shape
        Ho, Wo, D = out_ref.shape
        K1 = 9 * Cin
        K2 = 9 * D

        # ---------------- res branch ----------------
        # BN1 (inference affine), f32.
        xb = (x_ref[...] * scale1_ref[...].reshape(1, 1, Cin)
              + bias1_ref[...].reshape(1, 1, Cin))                       # (H, W, Cin)

        # conv1 im2col: col1[h, w, t*Cin:(t+1)*Cin] = xb[h+dy-1, w+dx-1, :] (0 outside).
        for dy in range(3):
            r0 = 1 if dy == 0 else 0
            r1 = H - 1 if dy == 2 else H
            for dx in range(3):
                c0 = 1 if dx == 0 else 0
                c1 = W - 1 if dx == 2 else W
                lo = (dy * 3 + dx) * Cin
                if r0 > 0:
                    col1_ref[0:r0, :, lo:lo + Cin] = jnp.zeros((r0, W, Cin), jnp.float32)
                if r1 < H:
                    col1_ref[r1:H, :, lo:lo + Cin] = jnp.zeros((H - r1, W, Cin), jnp.float32)
                if c0 > 0:
                    col1_ref[r0:r1, 0:c0, lo:lo + Cin] = jnp.zeros((r1 - r0, c0, Cin), jnp.float32)
                if c1 < W:
                    col1_ref[r0:r1, c1:W, lo:lo + Cin] = jnp.zeros((r1 - r0, W - c1, Cin), jnp.float32)
                col1_ref[r0:r1, c0:c1, lo:lo + Cin] = \
                    xb[r0 + dy - 1:r1 + dy - 1, c0 + dx - 1:c1 + dx - 1, :]

        # conv1: row-banded (bh1*W, 9*Cin) x (9*Cin, D) bf16 MXU matmuls, f32 acc,
        # fused per-channel PReLU, written straight to the activation scratch.
        bh1 = _band_rows(H, W, 64)
        alpha = alpha_ref[...]                                           # (1, D)
        for h0 in range(0, H, bh1):
            a = col1_ref[h0:h0 + bh1, :, :].reshape(bh1 * W, K1).astype(jnp.bfloat16)
            yb = jnp.dot(a, w1p_ref[...], preferred_element_type=jnp.float32)
            yb = jnp.where(yb > 0, yb, alpha * yb)                       # PReLU
            y_ref[h0:h0 + bh1, :, :] = yb.reshape(bh1, W, D)

        # conv2 im2col (stride s): col2[ho, wo, t*D:(t+1)*D] = y[ho*s+dy-1, wo*s+dx-1, :].
        for dy in range(3):
            r0 = 1 if dy == 0 else 0
            r1 = min(Ho, (H - dy) // s + 1)
            for dx in range(3):
                c0 = 1 if dx == 0 else 0
                c1 = min(Wo, (W - dx) // s + 1)
                lo = (dy * 3 + dx) * D
                if r0 > 0:
                    col2_ref[0:r0, :, lo:lo + D] = jnp.zeros((r0, Wo, D), jnp.float32)
                if r1 < Ho:
                    col2_ref[r1:Ho, :, lo:lo + D] = jnp.zeros((Ho - r1, Wo, D), jnp.float32)
                if c0 > 0:
                    col2_ref[r0:r1, 0:c0, lo:lo + D] = jnp.zeros((r1 - r0, c0, D), jnp.float32)
                if c1 < Wo:
                    col2_ref[r0:r1, c1:Wo, lo:lo + D] = jnp.zeros((r1 - r0, Wo - c1, D), jnp.float32)
                nh, nw = r1 - r0, c1 - c0
                sr = r0 * s + dy - 1
                sc0 = c0 * s + dx - 1
                if s == 1:
                    patch = y_ref[sr:sr + nh, sc0:sc0 + nw, :]
                else:
                    patch = y_ref[pl.ds(sr, nh, s), pl.ds(sc0, nw, s), :]
                col2_ref[r0:r1, c0:c1, lo:lo + D] = patch

        # conv2: row-banded bf16 matmuls; BN2 scale is already folded into w2p,
        # so the epilogue is just the bias add.
        bh2 = _band_rows(Ho, Wo, 32)
        bias2 = bias2_ref[...]                                           # (1, D)
        for h0 in range(0, Ho, bh2):
            a = col2_ref[h0:h0 + bh2, :, :].reshape(bh2 * Wo, K2).astype(jnp.bfloat16)
            y2b = jnp.dot(a, w2p_ref[...], preferred_element_type=jnp.float32) + bias2
            y2_ref[h0:h0 + bh2, :, :] = y2b.reshape(bh2, Wo, D)

        # SE: global avg pool -> fc1 -> ReLU -> fc2 -> sigmoid -> channel gate (f32).
        y2 = y2_ref[...].reshape(Ho * Wo, D)
        pooled = jnp.mean(y2, axis=0, keepdims=True)                     # (1, D)
        h1 = jnp.maximum(jnp.dot(pooled, se_w1_ref[...],
                                 preferred_element_type=jnp.float32), 0.0)
        gate = jax.nn.sigmoid(jnp.dot(h1, se_w2_ref[...],
                                      preferred_element_type=jnp.float32))
        res = y2 * gate

        # ---------------- shortcut branch ----------------
        if s == 1:
            xs = x_ref[...]
        else:
            xs = x_ref[pl.ds(0, Ho, s), pl.ds(0, Wo, s), :]              # MaxPool2d(1, s)
        if identity:
            sc = xs.reshape(Ho * Wo, D)                                  # exact f32 copy
        else:
            sc = jnp.dot(xs.reshape(Ho * Wo, Cin).astype(jnp.bfloat16), wsc_ref[...],
                         preferred_element_type=jnp.float32) + bias_sc_ref[...]

        out_ref[...] = (res + sc).reshape(Ho, Wo, D).astype(out_ref.dtype)

    return kernel


def _fold_bn(gamma, beta, mean, var, eps=1e-5):
    scale = gamma / jnp.sqrt(var + eps)
    return scale, beta - mean * scale


# --------------------------------------------------------------------------- #
# Wrapper (glue): layout conversion, BN folding, weight packing, pallas_call.
# --------------------------------------------------------------------------- #
def bottleneck_ir_se(x_nchw, params, *, in_channel, depth, stride):
    x = jnp.transpose(x_nchw, (0, 2, 3, 1)).astype(jnp.float32)          # NCHW -> NHWC
    B, H, W, Cin = x.shape
    assert Cin == in_channel
    D, s = depth, stride
    Ho = (H - 1) // s + 1
    Wo = (W - 1) // s + 1
    identity = (in_channel == depth)

    scale1, bias1 = _fold_bn(*params["bn1"])
    scale2, bias2 = _fold_bn(*params["bn2"])

    # Conv weights packed for the im2col matmuls (K ordered [dy, dx, cin]), bf16.
    # BN2's per-output-channel scale is folded into conv2's weight columns.
    w1p = params["w1"].reshape(9 * Cin, D).astype(jnp.bfloat16)
    w2p = (params["w2"].reshape(9 * D, D) * scale2[None, :]).astype(jnp.bfloat16)

    # SE hidden dim padded to a multiple of 8 (zero cols/rows are a mathematical no-op).
    hid = params["se_w1"].shape[1]
    hid_p = max(8, ((hid + 7) // 8) * 8)
    se_w1 = jnp.zeros((D, hid_p), jnp.float32).at[:, :hid].set(params["se_w1"])
    se_w2 = jnp.zeros((hid_p, D), jnp.float32).at[:hid, :].set(params["se_w2"])

    def row(v):
        return v.reshape(1, -1).astype(jnp.float32)

    def full(shp):
        return pl.BlockSpec(shp, lambda b, _n=len(shp): (0,) * _n)

    inputs = [x, w1p, row(params["alpha"]), w2p,
              row(scale1), row(bias1), row(bias2), se_w1, se_w2]
    in_specs = [
        pl.BlockSpec((None, H, W, Cin), lambda b: (b, 0, 0, 0)),
        full((9 * Cin, D)), full((1, D)), full((9 * D, D)),
        full((1, Cin)), full((1, Cin)), full((1, D)),
        full((D, hid_p)), full((hid_p, D)),
    ]
    if not identity:
        scale_sc, bias_sc = _fold_bn(*params["bn_sc"])
        wsc = (params["wsc"] * scale_sc[None, :]).astype(jnp.bfloat16)   # fold BN scale
        inputs += [wsc, row(bias_sc)]
        in_specs += [full((Cin, D)), full((1, D))]

    out = pl.pallas_call(
        _make_kernel(s, identity),
        out_shape=jax.ShapeDtypeStruct((B, Ho, Wo, D), jnp.float32),
        grid=(B,),
        in_specs=in_specs,
        out_specs=pl.BlockSpec((None, Ho, Wo, D), lambda b: (b, 0, 0, 0)),
        scratch_shapes=[
            pltpu.VMEM((H, W, 9 * Cin), jnp.float32),    # conv1 im2col
            pltpu.VMEM((H, W, D), jnp.float32),          # PReLU activation
            pltpu.VMEM((Ho, Wo, 9 * D), jnp.float32),    # conv2 im2col
            pltpu.VMEM((Ho, Wo, D), jnp.float32),        # conv2+BN2 output (for SE)
        ],
        compiler_params=pltpu.CompilerParams(
            dimension_semantics=("parallel",),
            vmem_limit_bytes=48 * 1024 * 1024),
    )(*inputs)

    return jnp.transpose(out, (0, 3, 1, 2))              # NHWC -> NCHW


# --------------------------------------------------------------------------- #
# Pure-JAX reference (same semantics as the PyTorch module, eval-mode BN).
# --------------------------------------------------------------------------- #
def reference(x_nchw, params, *, in_channel, depth, stride):
    x = jnp.transpose(x_nchw, (0, 2, 3, 1)).astype(jnp.float32)

    def bn(t, p, eps=1e-5):
        g, b, m, v = p
        return (t - m) * (g / jnp.sqrt(v + eps)) + b

    dn = ("NHWC", "HWIO", "NHWC")
    r = bn(x, params["bn1"])
    r = lax.conv_general_dilated(r, params["w1"], (1, 1), ((1, 1), (1, 1)),
                                 dimension_numbers=dn)
    r = jnp.where(r > 0, r, params["alpha"] * r)
    r = lax.conv_general_dilated(r, params["w2"], (stride, stride), ((1, 1), (1, 1)),
                                 dimension_numbers=dn)
    r = bn(r, params["bn2"])
    pooled = jnp.mean(r, axis=(1, 2), keepdims=True)
    h = jnp.maximum(jnp.einsum("bijc,cd->bijd", pooled, params["se_w1"]), 0.0)
    g = jax.nn.sigmoid(jnp.einsum("bijd,dc->bijc", h, params["se_w2"]))
    r = r * g

    xs = x[:, ::stride, ::stride, :]
    if in_channel == depth:
        sc = xs
    else:
        sc = jnp.einsum("bijc,cd->bijd", xs, params["wsc"])
        sc = bn(sc, params["bn_sc"])
    return jnp.transpose(r + sc, (0, 3, 1, 2))


# --------------------------------------------------------------------------- #
# Deterministic synthetic parameter init (shapes from the module's __init__).
# --------------------------------------------------------------------------- #
def init_params(key, in_channel, depth):
    ks = jax.random.split(key, 8)
    hid = depth // 16

    def bn_p(k, c):
        k1, k2, k3, k4 = jax.random.split(k, 4)
        return (1.0 + 0.1 * jax.random.normal(k1, (c,), jnp.float32),
                0.1 * jax.random.normal(k2, (c,), jnp.float32),
                0.1 * jax.random.normal(k3, (c,), jnp.float32),
                jax.random.uniform(k4, (c,), jnp.float32, 0.5, 1.5))

    lim = (6.0 / (depth + hid)) ** 0.5           # xavier_uniform for SE.fc1
    p = {
        "w1": jax.random.normal(ks[0], (3, 3, in_channel, depth), jnp.float32)
              * (2.0 / (9 * in_channel)) ** 0.5,
        "w2": jax.random.normal(ks[1], (3, 3, depth, depth), jnp.float32)
              * (2.0 / (9 * depth)) ** 0.5,
        "alpha": jnp.full((depth,), 0.25, jnp.float32),   # PReLU default init
        "bn1": bn_p(ks[2], in_channel),
        "bn2": bn_p(ks[3], depth),
        "se_w1": jax.random.uniform(ks[4], (depth, hid), jnp.float32, -lim, lim),
        "se_w2": jax.random.normal(ks[5], (hid, depth), jnp.float32)
                 * (1.0 / hid) ** 0.5,
    }
    if in_channel != depth:
        p["wsc"] = (jax.random.normal(ks[6], (in_channel, depth), jnp.float32)
                    * (1.0 / in_channel) ** 0.5)
        p["bn_sc"] = bn_p(ks[7], depth)
    return p


if __name__ == "__main__":
    configs = [
        dict(B=2, in_channel=32, depth=64, H=16, W=16, stride=2),   # projection shortcut
        dict(B=2, in_channel=64, depth=64, H=16, W=16, stride=1),   # identity shortcut
    ]
    root = jax.random.PRNGKey(0)
    for i, cfg in enumerate(configs):
        k_params, k_x = jax.random.split(jax.random.fold_in(root, i))
        params = init_params(k_params, cfg["in_channel"], cfg["depth"])
        x = jax.random.normal(
            k_x, (cfg["B"], cfg["in_channel"], cfg["H"], cfg["W"]), jnp.float32)

        out = jax.block_until_ready(
            bottleneck_ir_se(x, params, in_channel=cfg["in_channel"],
                             depth=cfg["depth"], stride=cfg["stride"]))
        ref = jax.block_until_ready(
            reference(x, params, in_channel=cfg["in_channel"],
                      depth=cfg["depth"], stride=cfg["stride"]))

        assert out.shape == ref.shape
        o, r = np.asarray(out), np.asarray(ref)
        # bf16 matmul operands -> loose elementwise bound + tight relative-L2 bound.
        np.testing.assert_allclose(o, r, rtol=1e-1, atol=1e-1)
        rel = np.linalg.norm(o - r) / np.linalg.norm(r)
        assert rel < 3e-2, f"relative L2 error too large: {rel}"
    print("KERNEL_OK")
</pallas_src>

<mosaic_0001>
module attributes {stable_mosaic.version = 11 : i64} {
  func.func @kernel(%arg0: i32, %arg1: memref<1x16x16x32xf32, #tpu.memory_space<vmem>>, %arg2: memref<288x64xbf16, #tpu.memory_space<vmem>>, %arg3: memref<1x64xf32, #tpu.memory_space<vmem>>, %arg4: memref<576x64xbf16, #tpu.memory_space<vmem>>, %arg5: memref<1x32xf32, #tpu.memory_space<vmem>>, %arg6: memref<1x32xf32, #tpu.memory_space<vmem>>, %arg7: memref<1x64xf32, #tpu.memory_space<vmem>>, %arg8: memref<64x8xf32, #tpu.memory_space<vmem>>, %arg9: memref<8x64xf32, #tpu.memory_space<vmem>>, %arg10: memref<32x64xbf16, #tpu.memory_space<vmem>>, %arg11: memref<1x64xf32, #tpu.memory_space<vmem>>, %arg12: memref<1x8x8x64xf32, #tpu.memory_space<vmem>>, %arg13: memref<16x16x288xf32, #tpu.memory_space<vmem>>, %arg14: memref<16x16x64xf32, #tpu.memory_space<vmem>>, %arg15: memref<8x8x576xf32, #tpu.memory_space<vmem>>, %arg16: memref<8x8x64xf32, #tpu.memory_space<vmem>>) attributes {dimension_semantics = [#tpu.dimension_semantics<parallel>], iteration_bounds = array<i64: 2>, scalar_prefetch = 0 : i64, scratch_operands = 4 : i64, tpu.core_type = #tpu.core_type<tc>, window_params = [{transform_indices = @transform_0, window_bounds = array<i64: 1, 16, 16, 32>}, {pipeline_mode = #tpu.pipeline_mode<synchronous>, transform_indices = @transform_1, window_bounds = array<i64: 288, 64>}, {pipeline_mode = #tpu.pipeline_mode<synchronous>, transform_indices = @transform_2, window_bounds = array<i64: 1, 64>}, {pipeline_mode = #tpu.pipeline_mode<synchronous>, transform_indices = @transform_3, window_bounds = array<i64: 576, 64>}, {pipeline_mode = #tpu.pipeline_mode<synchronous>, transform_indices = @transform_4, window_bounds = array<i64: 1, 32>}, {pipeline_mode = #tpu.pipeline_mode<synchronous>, transform_indices = @transform_5, window_bounds = array<i64: 1, 32>}, {pipeline_mode = #tpu.pipeline_mode<synchronous>, transform_indices = @transform_6, window_bounds = array<i64: 1, 64>}, {pipeline_mode = #tpu.pipeline_mode<synchronous>, transform_indices = @transform_7, window_bounds = array<i64: 64, 8>}, {pipeline_mode = #tpu.pipeline_mode<synchronous>, transform_indices = @transform_8, window_bounds = array<i64: 8, 64>}, {pipeline_mode = #tpu.pipeline_mode<synchronous>, transform_indices = @transform_9, window_bounds = array<i64: 32, 64>}, {pipeline_mode = #tpu.pipeline_mode<synchronous>, transform_indices = @transform_10, window_bounds = array<i64: 1, 64>}, {transform_indices = @transform_11, window_bounds = array<i64: 1, 8, 8, 64>}]} {
    %c0 = arith.constant 0 : index
    %c0_0 = arith.constant 0 : index
    %c0_1 = arith.constant 0 : index
    %c0_2 = arith.constant 0 : index
    %0 = vector.load %arg1[%c0, %c0_0, %c0_1, %c0_2] : memref<1x16x16x32xf32, #tpu.memory_space<vmem>>, vector<1x16x16x32xf32>
    %1 = vector.shape_cast %0 : vector<1x16x16x32xf32> to vector<16x16x32xf32>
    %c0_3 = arith.constant 0 : index
    %c0_4 = arith.constant 0 : index
    %2 = vector.load %arg5[%c0_3, %c0_4] : memref<1x32xf32, #tpu.memory_space<vmem>>, vector<1x32xf32>
    %3 = vector.shape_cast %2 : vector<1x32xf32> to vector<1x1x32xf32>
    %4 = vector.broadcast %3 : vector<1x1x32xf32> to vector<16x16x32xf32>
    %5 = arith.mulf %1, %4 : vector<16x16x32xf32>
    %c0_5 = arith.constant 0 : index
    %c0_6 = arith.constant 0 : index
    %6 = vector.load %arg6[%c0_5, %c0_6] : memref<1x32xf32, #tpu.memory_space<vmem>>, vector<1x32xf32>
    %7 = vector.shape_cast %6 : vector<1x32xf32> to vector<1x1x32xf32>
    %8 = vector.broadcast %7 : vector<1x1x32xf32> to vector<16x16x32xf32>
    %9 = arith.addf %5, %8 : vector<16x16x32xf32>
    %cst = arith.constant 0.000000e+00 : f32
    %10 = vector.broadcast %cst : f32 to vector<1x16x32xf32>
    %c0_7 = arith.constant 0 : index
    %c0_8 = arith.constant 0 : index
    %c0_9 = arith.constant 0 : index
    %11 = vector.load %arg13[%c0_7, %c0_8, %c0_9] : memref<16x16x288xf32, #tpu.memory_space<vmem>>, vector<1x16x32xf32>
    tpu.vector_store %arg13[%c0_7, %c0_8, %c0_9], %10 {strides = array<i32>} : memref<16x16x288xf32, #tpu.memory_space<vmem>>, vector<1x16x32xf32>,
    %cst_10 = arith.constant 0.000000e+00 : f32
    %12 = vector.broadcast %cst_10 : f32 to vector<15x1x32xf32>
    %c1 = arith.constant 1 : index
    %c0_11 = arith.constant 0 : index
    %c0_12 = arith.constant 0 : index
    %13 = vector.load %arg13[%c1, %c0_11, %c0_12] : memref<16x16x288xf32, #tpu.memory_space<vmem>>, vector<15x1x32xf32>
    tpu.vector_store %arg13[%c1, %c0_11, %c0_12], %12 {strides = array<i32>} : memref<16x16x288xf32, #tpu.memory_space<vmem>>, vector<15x1x32xf32>,
    %14 = vector.extract_strided_slice %9 {offsets = [0, 0, 0], sizes = [15, 15, 32], strides = [1, 1, 1]} : vector<16x16x32xf32> to vector<15x15x32xf32>
    %c1_13 = arith.constant 1 : index
    %c1_14 = arith.constant 1 : index
    %c0_15 = arith.constant 0 : index
    %15 = vector.load %arg13[%c1_13, %c1_14, %c0_15] : memref<16x16x288xf32, #tpu.memory_space<vmem>>, vector<15x15x32xf32>
    tpu.vector_store %arg13[%c1_13, %c1_14, %c0_15], %14 {strides = array<i32>} : memref<16x16x288xf32, #tpu.memory_space<vmem>>, vector<15x15x32xf32>,
    %cst_16 = arith.constant 0.000000e+00 : f32
    %16 = vector.broadcast %cst_16 : f32 to vector<1x16x32xf32>
    %c0_17 = arith.constant 0 : index
    %c0_18 = arith.constant 0 : index
    %c32 = arith.constant 32 : index
    %17 = vector.load %arg13[%c0_17, %c0_18, %c32] : memref<16x16x288xf32, #tpu.memory_space<vmem>>, vector<1x16x32xf32>
    tpu.vector_store %arg13[%c0_17, %c0_18, %c32], %16 {strides = array<i32>} : memref<16x16x288xf32, #tpu.memory_space<vmem>>, vector<1x16x32xf32>,
    %18 = vector.extract_strided_slice %9 {offsets = [0, 0, 0], sizes = [15, 16, 32], strides = [1, 1, 1]} : vector<16x16x32xf32> to vector<15x16x32xf32>
    %c1_19 = arith.constant 1 : index
    %c0_20 = arith.constant 0 : index
    %c32_21 = arith.constant 32 : index
    %19 = vector.load %arg13[%c1_19, %c0_20, %c32_21] : memref<16x16x288xf32, #tpu.memory_space<vmem>>, vector<15x16x32xf32>
    tpu.vector_store %arg13[%c1_19, %c0_20, %c32_21], %18 {strides = array<i32>} : memref<16x16x288xf32, #tpu.memory_space<vmem>>, vector<15x16x32xf32>,
    %cst_22 = arith.constant 0.000000e+00 : f32
    %20 = vector.broadcast %cst_22 : f32 to vector<1x16x32xf32>
    %c0_23 = arith.constant 0 : index
    %c0_24 = arith.constant 0 : index
    %c64 = arith.constant 64 : index
    %21 = vector.load %arg13[%c0_23, %c0_24, %c64] : memref<16x16x288xf32, #tpu.memory_space<vmem>>, vector<1x16x32xf32>
    tpu.vector_store %arg13[%c0_23, %c0_24, %c64], %20 {strides = array<i32>} : memref<16x16x288xf32, #tpu.memory_space<vmem>>, vector<1x16x32xf32>,
    %cst_25 = arith.constant 0.000000e+00 : f32
    %22 = vector.broadcast %cst_25 : f32 to vector<15x1x32xf32>
    %c1_26 = arith.constant 1 : index
    %c15 = arith.constant 15 : index
    %c64_27 = arith.constant 64 : index
    %23 = vector.load %arg13[%c1_26, %c15, %c64_27] : memref<16x16x288xf32, #tpu.memory_space<vmem>>, vector<15x1x32xf32>
    tpu.vector_store %arg13[%c1_26, %c15, %c64_27], %22 {strides = array<i32>} : memref<16x16x288xf32, #tpu.memory_space<vmem>>, vector<15x1x32xf32>,
    %24 = vector.extract_strided_slice %9 {offsets = [0, 1, 0], sizes = [15, 15, 32], strides = [1, 1, 1]} : vector<16x16x32xf32> to vector<15x15x32xf32>
    %c1_28 = arith.constant 1 : index
    %c0_29 = arith.constant 0 : index
    %c64_30 = arith.constant 64 : index
    %25 = vector.load %arg13[%c1_28, %c0_29, %c64_30] : memref<16x16x288xf32, #tpu.memory_space<vmem>>, vector<15x15x32xf32>
    tpu.vector_store %arg13[%c1_28, %c0_29, %c64_30], %24 {strides = array<i32>} : memref<16x16x288xf32, #tpu.memory_space<vmem>>, vector<15x15x32xf32>,
    %cst_31 = arith.constant 0.000000e+00 : f32
    %26 = vector.broadcast %cst_31 : f32 to vector<16x1x32xf32>
    %c0_32 = arith.constant 0 : index
    %c0_33 = arith.constant 0 : index
    %c96 = arith.constant 96 : index
    %27 = vector.load %arg13[%c0_32, %c0_33, %c96] : memref<16x16x288xf32, #tpu.memory_space<vmem>>, vector<16x1x32xf32>
    tpu.vector_store %arg13[%c0_32, %c0_33, %c96], %26 {strides = array<i32>} : memref<16x16x288xf32, #tpu.memory_space<vmem>>, vector<16x1x32xf32>,
    %28 = vector.extract_strided_slice %9 {offsets = [0, 0, 0], sizes = [16, 15, 32], strides = [1, 1, 1]} : vector<16x16x32xf32> to vector<16x15x32xf32>
    %c0_34 = arith.constant 0 : index
    %c1_35 = arith.constant 1 : index
    %c96_36 = arith.constant 96 : index
    %29 = vector.load %arg13[%c0_34, %c1_35, %c96_36] : memref<16x16x288xf32, #tpu.memory_space<vmem>>, vector<16x15x32xf32>
    tpu.vector_store %arg13[%c0_34, %c1_35, %c96_36], %28 {strides = array<i32>} : memref<16x16x288xf32, #tpu.memory_space<vmem>>, vector<16x15x32xf32>,
    %c0_37 = arith.constant 0 : index
    %c0_38 = arith.constant 0 : index
    %c128 = arith.constant 128 : index
    %30 = vector.load %arg13[%c0_37, %c0_38, %c128] : memref<16x16x288xf32, #tpu.memory_space<vmem>>, vector<16x16x32xf32>
    tpu.vector_store %arg13[%c0_37, %c0_38, %c128], %9 {strides = array<i32>} : memref<16x16x288xf32, #tpu.memory_space<vmem>>, vector<16x16x32xf32>,
    %cst_39 = arith.constant 0.000000e+00 : f32
    %31 = vector.broadcast %cst_39 : f32 to vector<16x1x32xf32>
    %c0_40 = arith.constant 0 : index
    %c15_41 = arith.constant 15 : index
    %c160 = arith.constant 160 : index
    %32 = vector.load %arg13[%c0_40, %c15_41, %c160] : memref<16x16x288xf32, #tpu.memory_space<vmem>>, vector<16x1x32xf32>
    tpu.vector_store %arg13[%c0_40, %c15_41, %c160], %31 {strides = array<i32>} : memref<16x16x288xf32, #tpu.memory_space<vmem>>, vector<16x1x32xf32>,
    %33 = vector.extract_strided_slice %9 {offsets = [0, 1, 0], sizes = [16, 15, 32], strides = [1, 1, 1]} : vector<16x16x32xf32> to vector<16x15x32xf32>
    %c0_42 = arith.constant 0 : index
    %c0_43 = arith.constant 0 : index
    %c160_44 = arith.constant 160 : index
    %34 = vector.load %arg13[%c0_42, %c0_43, %c160_44] : memref<16x16x288xf32, #tpu.memory_space<vmem>>, vector<16x15x32xf32>
    tpu.vector_store %arg13[%c0_42, %c0_43, %c160_44], %33 {strides = array<i32>} : memref<16x16x288xf32, #tpu.memory_space<vmem>>, vector<16x15x32xf32>,
    %cst_45 = arith.constant 0.000000e+00 : f32
    %35 = vector.broadcast %cst_45 : f32 to vector<1x16x32xf32>
    %c15_46 = arith.constant 15 : index
    %c0_47 = arith.constant 0 : index
    %c192 = arith.constant 192 : index
    %36 = vector.load %arg13[%c15_46, %c0_47, %c192] : memref<16x16x288xf32, #tpu.memory_space<vmem>>, vector<1x16x32xf32>
    tpu.vector_store %arg13[%c15_46, %c0_47, %c192], %35 {strides = array<i32>} : memref<16x16x288xf32, #tpu.memory_space<vmem>>, vector<1x16x32xf32>,
    %cst_48 = arith.constant 0.000000e+00 : f32
    %37 = vector.broadcast %cst_48 : f32 to vector<15x1x32xf32>
    %c0_49 = arith.constant 0 : index
    %c0_50 = arith.constant 0 : index
    %c192_51 = arith.constant 192 : index
    %38 = vector.load %arg13[%c0_49, %c0_50, %c192_51] : memref<16x16x288xf32, #tpu.memory_space<vmem>>, vector<15x1x32xf32>
    tpu.vector_store %arg13[%c0_49, %c0_50, %c192_51], %37 {strides = array<i32>} : memref<16x16x288xf32, #tpu.memory_space<vmem>>, vector<15x1x32xf32>,
    %39 = vector.extract_strided_slice %9 {offsets = [1, 0, 0], sizes = [15, 15, 32], strides = [1, 1, 1]} : vector<16x16x32xf32> to vector<15x15x32xf32>
    %c0_52 = arith.constant 0 : index
    %c1_53 = arith.constant 1 : index
    %c192_54 = arith.constant 192 : index
    %40 = vector.load %arg13[%c0_52, %c1_53, %c192_54] : memref<16x16x288xf32, #tpu.memory_space<vmem>>, vector<15x15x32xf32>
    tpu.vector_store %arg13[%c0_52, %c1_53, %c192_54], %39 {strides = array<i32>} : memref<16x16x288xf32, #tpu.memory_space<vmem>>, vector<15x15x32xf32>,
    %cst_55 = arith.constant 0.000000e+00 : f32
    %41 = vector.broadcast %cst_55 : f32 to vector<1x16x32xf32>
    %c15_56 = arith.constant 15 : index
    %c0_57 = arith.constant 0 : index
    %c224 = arith.constant 224 : index
    %42 = vector.load %arg13[%c15_56, %c0_57, %c224] : memref<16x16x288xf32, #tpu.memory_space<vmem>>, vector<1x16x32xf32>
    tpu.vector_store %arg13[%c15_56, %c0_57, %c224], %41 {strides = array<i32>} : memref<16x16x288xf32, #tpu.memory_space<vmem>>, vector<1x16x32xf32>,
    %43 = vector.extract_strided_slice %9 {offsets = [1, 0, 0], sizes = [15, 16, 32], strides = [1, 1, 1]} : vector<16x16x32xf32> to vector<15x16x32xf32>
    %c0_58 = arith.constant 0 : index
    %c0_59 = arith.constant 0 : index
    %c224_60 = arith.constant 224 : index
    %44 = vector.load %arg13[%c0_58, %c0_59, %c224_60] : memref<16x16x288xf32, #tpu.memory_space<vmem>>, vector<15x16x32xf32>
    tpu.vector_store %arg13[%c0_58, %c0_59, %c224_60], %43 {strides = array<i32>} : memref<16x16x288xf32, #tpu.memory_space<vmem>>, vector<15x16x32xf32>,
    %cst_61 = arith.constant 0.000000e+00 : f32
    %45 = vector.broadcast %cst_61 : f32 to vector<1x16x32xf32>
    %c15_62 = arith.constant 15 : index
    %c0_63 = arith.constant 0 : index
    %c256 = arith.constant 256 : index
    %46 = vector.load %arg13[%c15_62, %c0_63, %c256] : memref<16x16x288xf32, #tpu.memory_space<vmem>>, vector<1x16x32xf32>
    tpu.vector_store %arg13[%c15_62, %c0_63, %c256], %45 {strides = array<i32>} : memref<16x16x288xf32, #tpu.memory_space<vmem>>, vector<1x16x32xf32>,
    %cst_64 = arith.constant 0.000000e+00 : f32
    %47 = vector.broadcast %cst_64 : f32 to vector<15x1x32xf32>
    %c0_65 = arith.constant 0 : index
    %c15_66 = arith.constant 15 : index
    %c256_67 = arith.constant 256 : index
    %48 = vector.load %arg13[%c0_65, %c15_66, %c256_67] : memref<16x16x288xf32, #tpu.memory_space<vmem>>, vector<15x1x32xf32>
    tpu.vector_store %arg13[%c0_65, %c15_66, %c256_67], %47 {strides = array<i32>} : memref<16x16x288xf32, #tpu.memory_space<vmem>>, vector<15x1x32xf32>,
    %49 = vector.extract_strided_slice %9 {offsets = [1, 1, 0], sizes = [15, 15, 32], strides = [1, 1, 1]} : vector<16x16x32xf32> to vector<15x15x32xf32>
    %c0_68 = arith.constant 0 : index
    %c0_69 = arith.constant 0 : index
    %c256_70 = arith.constant 256 : index
    %50 = vector.load %arg13[%c0_68, %c0_69, %c256_70] : memref<16x16x288xf32, #tpu.memory_space<vmem>>, vector<15x15x32xf32>
    tpu.vector_store %arg13[%c0_68, %c0_69, %c256_70], %49 {strides = array<i32>} : memref<16x16x288xf32, #tpu.memory_space<vmem>>, vector<15x15x32xf32>,
    %c0_71 = arith.constant 0 : index
    %c0_72 = arith.constant 0 : index
    %51 = vector.load %arg3[%c0_71, %c0_72] : memref<1x64xf32, #tpu.memory_space<vmem>>, vector<1x64xf32>
    %c0_73 = arith.constant 0 : index
    %c0_74 = arith.constant 0 : index
    %c0_75 = arith.constant 0 : index
    %52 = vector.load %arg13[%c0_73, %c0_74, %c0_75] : memref<16x16x288xf32, #tpu.memory_space<vmem>>, vector<4x16x288xf32>
    %53 = vector.shape_cast %52 : vector<4x16x288xf32> to vector<64x288xf32>
    %54 = arith.truncf %53 : vector<64x288xf32> to vector<64x288xbf16>
    %c0_76 = arith.constant 0 : index
    %c0_77 = arith.constant 0 : index
    %55 = vector.load %arg2[%c0_76, %c0_77] : memref<288x64xbf16, #tpu.memory_space<vmem>>, vector<288x64xbf16>
    %cst_78 = arith.constant dense<0.000000e+00> : vector<64x64xf32>
    %56 = tpu.matmul %54, %55, %cst_78 {dimension_numbers = #tpu.dot_dimension_numbers<[1], [0], [0], [1], [0, 0, 1, 1], [], []>} : vector<64x288xbf16>, vector<288x64xbf16>, vector<64x64xf32> -> vector<64x64xf32>
    %cst_79 = arith.constant 0.000000e+00 : f32
    %57 = vector.broadcast %cst_79 : f32 to vector<64x64xf32>
    %58 = arith.cmpf ogt, %56, %57 : vector<64x64xf32>
    %59 = vector.broadcast %51 : vector<1x64xf32> to vector<64x64xf32>
    %60 = arith.mulf %59, %56 : vector<64x64xf32>
    %61 = arith.select %58, %56, %60 : vector<64x64xi1>, vector<64x64xf32>
    %62 = vector.shape_cast %61 : vector<64x64xf32> to vector<4x16x64xf32>
    %c0_80 = arith.constant 0 : index
    %c0_81 = arith.constant 0 : index
    %c0_82 = arith.constant 0 : index
    %63 = vector.load %arg14[%c0_80, %c0_81, %c0_82] : memref<16x16x64xf32, #tpu.memory_space<vmem>>, vector<4x16x64xf32>
    tpu.vector_store %arg14[%c0_80, %c0_81, %c0_82], %62 {strides = array<i32>} : memref<16x16x64xf32, #tpu.memory_space<vmem>>, vector<4x16x64xf32>,
    %c4 = arith.constant 4 : index
    %c0_83 = arith.constant 0 : index
    %c0_84 = arith.constant 0 : index
    %64 = vector.load %arg13[%c4, %c0_83, %c0_84] : memref<16x16x288xf32, #tpu.memory_space<vmem>>, vector<4x16x288xf32>
    %65 = vector.shape_cast %64 : vector<4x16x288xf32> to vector<64x288xf32>
    %66 = arith.truncf %65 : vector<64x288xf32> to vector<64x288xbf16>
    %c0_85 = arith.constant 0 : index
    %c0_86 = arith.constant 0 : index
    %67 = vector.load %arg2[%c0_85, %c0_86] : memref<288x64xbf16, #tpu.memory_space<vmem>>, vector<288x64xbf16>
    %cst_87 = arith.constant dense<0.000000e+00> : vector<64x64xf32>
    %68 = tpu.matmul %66, %67, %cst_87 {dimension_numbers = #tpu.dot_dimension_numbers<[1], [0], [0], [1], [0, 0, 1, 1], [], []>} : vector<64x288xbf16>, vector<288x64xbf16>, vector<64x64xf32> -> vector<64x64xf32>
    %cst_88 = arith.constant 0.000000e+00 : f32
    %69 = vector.broadcast %cst_88 : f32 to vector<64x64xf32>
    %70 = arith.cmpf ogt, %68, %69 : vector<64x64xf32>
    %71 = vector.broadcast %51 : vector<1x64xf32> to vector<64x64xf32>
    %72 = arith.mulf %71, %68 : vector<64x64xf32>
    %73 = arith.select %70, %68, %72 : vector<64x64xi1>, vector<64x64xf32>
    %74 = vector.shape_cast %73 : vector<64x64xf32> to vector<4x16x64xf32>
    %c4_89 = arith.constant 4 : index
    %c0_90 = arith.constant 0 : index
    %c0_91 = arith.constant 0 : index
    %75 = vector.load %arg14[%c4_89, %c0_90, %c0_91] : memref<16x16x64xf32, #tpu.memory_space<vmem>>, vector<4x16x64xf32>
    tpu.vector_store %arg14[%c4_89, %c0_90, %c0_91], %74 {strides = array<i32>} : memref<16x16x64xf32, #tpu.memory_space<vmem>>, vector<4x16x64xf32>,
    %c8 = arith.constant 8 : index
    %c0_92 = arith.constant 0 : index
    %c0_93 = arith.constant 0 : index
    %76 = vector.load %arg13[%c8, %c0_92, %c0_93] : memref<16x16x288xf32, #tpu.memory_space<vmem>>, vector<4x16x288xf32>
    %77 = vector.shape_cast %76 : vector<4x16x288xf32> to vector<64x288xf32>
    %78 = arith.truncf %77 : vector<64x288xf32> to vector<64x288xbf16>
    %c0_94 = arith.constant 0 : index
    %c0_95 = arith.constant 0 : index
    %79 = vector.load %arg2[%c0_94, %c0_95] : memref<288x64xbf16, #tpu.memory_space<vmem>>, vector<288x64xbf16>
    %cst_96 = arith.constant dense<0.000000e+00> : vector<64x64xf32>
    %80 = tpu.matmul %78, %79, %cst_96 {dimension_numbers = #tpu.dot_dimension_numbers<[1], [0], [0], [1], [0, 0, 1, 1], [], []>} : vector<64x288xbf16>, vector<288x64xbf16>, vector<64x64xf32> -> vector<64x64xf32>
    %cst_97 = arith.constant 0.000000e+00 : f32
    %81 = vector.broadcast %cst_97 : f32 to vector<64x64xf32>
    %82 = arith.cmpf ogt, %80, %81 : vector<64x64xf32>
    %83 = vector.broadcast %51 : vector<1x64xf32> to vector<64x64xf32>
    %84 = arith.mulf %83, %80 : vector<64x64xf32>
    %85 = arith.select %82, %80, %84 : vector<64x64xi1>, vector<64x64xf32>
    %86 = vector.shape_cast %85 : vector<64x64xf32> to vector<4x16x64xf32>
    %c8_98 = arith.constant 8 : index
    %c0_99 = arith.constant 0 : index
    %c0_100 = arith.constant 0 : index
    %87 = vector.load %arg14[%c8_98, %c0_99, %c0_100] : memref<16x16x64xf32, #tpu.memory_space<vmem>>, vector<4x16x64xf32>
    tpu.vector_store %arg14[%c8_98, %c0_99, %c0_100], %86 {strides = array<i32>} : memref<16x16x64xf32, #tpu.memory_space<vmem>>, vector<4x16x64xf32>,
    %c12 = arith.constant 12 : index
    %c0_101 = arith.constant 0 : index
    %c0_102 = arith.constant 0 : index
    %88 = vector.load %arg13[%c12, %c0_101, %c0_102] : memref<16x16x288xf32, #tpu.memory_space<vmem>>, vector<4x16x288xf32>
    %89 = vector.shape_cast %88 : vector<4x16x288xf32> to vector<64x288xf32>
    %90 = arith.truncf %89 : vector<64x288xf32> to vector<64x288xbf16>
    %c0_103 = arith.constant 0 : index
    %c0_104 = arith.constant 0 : index
    %91 = vector.load %arg2[%c0_103, %c0_104] : memref<288x64xbf16, #tpu.memory_space<vmem>>, vector<288x64xbf16>
    %cst_105 = arith.constant dense<0.000000e+00> : vector<64x64xf32>
    %92 = tpu.matmul %90, %91, %cst_105 {dimension_numbers = #tpu.dot_dimension_numbers<[1], [0], [0], [1], [0, 0, 1, 1], [], []>} : vector<64x288xbf16>, vector<288x64xbf16>, vector<64x64xf32> -> vector<64x64xf32>
    %cst_106 = arith.constant 0.000000e+00 : f32
    %93 = vector.broadcast %cst_106 : f32 to vector<64x64xf32>
    %94 = arith.cmpf ogt, %92, %93 : vector<64x64xf32>
    %95 = vector.broadcast %51 : vector<1x64xf32> to vector<64x64xf32>
    %96 = arith.mulf %95, %92 : vector<64x64xf32>
    %97 = arith.select %94, %92, %96 : vector<64x64xi1>, vector<64x64xf32>
    %98 = vector.shape_cast %97 : vector<64x64xf32> to vector<4x16x64xf32>
    %c12_107 = arith.constant 12 : index
    %c0_108 = arith.constant 0 : index
    %c0_109 = arith.constant 0 : index
    %99 = vector.load %arg14[%c12_107, %c0_108, %c0_109] : memref<16x16x64xf32, #tpu.memory_space<vmem>>, vector<4x16x64xf32>
    tpu.vector_store %arg14[%c12_107, %c0_108, %c0_109], %98 {strides = array<i32>} : memref<16x16x64xf32, #tpu.memory_space<vmem>>, vector<4x16x64xf32>,
    %cst_110 = arith.constant 0.000000e+00 : f32
    %100 = vector.broadcast %cst_110 : f32 to vector<1x8x64xf32>
    %c0_111 = arith.constant 0 : index
    %c0_112 = arith.constant 0 : index
    %c0_113 = arith.constant 0 : index
    %101 = vector.load %arg15[%c0_111, %c0_112, %c0_113] : memref<8x8x576xf32, #tpu.memory_space<vmem>>, vector<1x8x64xf32>
    tpu.vector_store %arg15[%c0_111, %c0_112, %c0_113], %100 {strides = array<i32>} : memref<8x8x576xf32, #tpu.memory_space<vmem>>, vector<1x8x64xf32>,
    %cst_114 = arith.constant 0.000000e+00 : f32
    %102 = vector.broadcast %cst_114 : f32 to vector<7x1x64xf32>
    %c1_115 = arith.constant 1 : index
    %c0_116 = arith.constant 0 : index
    %c0_117 = arith.constant 0 : index
    %103 = vector.load %arg15[%c1_115, %c0_116, %c0_117] : memref<8x8x576xf32, #tpu.memory_space<vmem>>, vector<7x1x64xf32>
    tpu.vector_store %arg15[%c1_115, %c0_116, %c0_117], %102 {strides = array<i32>} : memref<8x8x576xf32, #tpu.memory_space<vmem>>, vector<7x1x64xf32>,
    %c1_118 = arith.constant 1 : index
    %c1_119 = arith.constant 1 : index
    %c0_120 = arith.constant 0 : index
    %104 = tpu.strided_load %arg14[%c1_118, %c1_119, %c0_120] {strides = array<i32: 2, 2, 1>} : memref<16x16x64xf32, #tpu.memory_space<vmem>>, vector<7x7x64xf32>
    %c1_121 = arith.constant 1 : index
    %c1_122 = arith.constant 1 : index
    %c0_123 = arith.constant 0 : index
    %105 = vector.load %arg15[%c1_121, %c1_122, %c0_123] : memref<8x8x576xf32, #tpu.memory_space<vmem>>, vector<7x7x64xf32>
    tpu.vector_store %arg15[%c1_121, %c1_122, %c0_123], %104 {strides = array<i32>} : memref<8x8x576xf32, #tpu.memory_space<vmem>>, vector<7x7x64xf32>,
    %cst_124 = arith.constant 0.000000e+00 : f32
    %106 = vector.broadcast %cst_124 : f32 to vector<1x8x64xf32>
    %c0_125 = arith.constant 0 : index
    %c0_126 = arith.constant 0 : index
    %c64_127 = arith.constant 64 : index
    %107 = vector.load %arg15[%c0_125, %c0_126, %c64_127] : memref<8x8x576xf32, #tpu.memory_space<vmem>>, vector<1x8x64xf32>
    tpu.vector_store %arg15[%c0_125, %c0_126, %c64_127], %106 {strides = array<i32>} : memref<8x8x576xf32, #tpu.memory_space<vmem>>, vector<1x8x64xf32>,
    %c1_128 = arith.constant 1 : index
    %c0_129 = arith.constant 0 : index
    %c0_130 = arith.constant 0 : index
    %108 = tpu.strided_load %arg14[%c1_128, %c0_129, %c0_130] {strides = array<i32: 2, 2, 1>} : memref<16x16x64xf32, #tpu.memory_space<vmem>>, vector<7x8x64xf32>
    %c1_131 = arith.constant 1 : index
    %c0_132 = arith.constant 0 : index
    %c64_133 = arith.constant 64 : index
    %109 = vector.load %arg15[%c1_131, %c0_132, %c64_133] : memref<8x8x576xf32, #tpu.memory_space<vmem>>, vector<7x8x64xf32>
    tpu.vector_store %arg15[%c1_131, %c0_132, %c64_133], %108 {strides = array<i32>} : memref<8x8x576xf32, #tpu.memory_space<vmem>>, vector<7x8x64xf32>,
    %cst_134 = arith.constant 0.000000e+00 : f32
    %110 = vector.broadcast %cst_134 : f32 to vector<1x8x64xf32>
    %c0_135 = arith.constant 0 : index
    %c0_136 = arith.constant 0 : index
    %c128_137 = arith.constant 128 : index
    %111 = vector.load %arg15[%c0_135, %c0_136, %c128_137] : memref<8x8x576xf32, #tpu.memory_space<vmem>>, vector<1x8x64xf32>
    tpu.vector_store %arg15[%c0_135, %c0_136, %c128_137], %110 {strides = array<i32>} : memref<8x8x576xf32, #tpu.memory_space<vmem>>, vector<1x8x64xf32>,
    %c1_138 = arith.constant 1 : index
    %c1_139 = arith.constant 1 : index
    %c0_140 = arith.constant 0 : index
    %112 = tpu.strided_load %arg14[%c1_138, %c1_139, %c0_140] {strides = array<i32: 2, 2, 1>} : memref<16x16x64xf32, #tpu.memory_space<vmem>>, vector<7x8x64xf32>
    %c1_141 = arith.constant 1 : index
    %c0_142 = arith.constant 0 : index
    %c128_143 = arith.constant 128 : index
    %113 = vector.load %arg15[%c1_141, %c0_142, %c128_143] : memref<8x8x576xf32, #tpu.memory_space<vmem>>, vector<7x8x64xf32>
    tpu.vector_store %arg15[%c1_141, %c0_142, %c128_143], %112 {strides = array<i32>} : memref<8x8x576xf32, #tpu.memory_space<vmem>>, vector<7x8x64xf32>,
    %cst_144 = arith.constant 0.000000e+00 : f32
    %114 = vector.broadcast %cst_144 : f32 to vector<8x1x64xf32>
    %c0_145 = arith.constant 0 : index
    %c0_146 = arith.constant 0 : index
    %c192_147 = arith.constant 192 : index
    %115 = vector.load %arg15[%c0_145, %c0_146, %c192_147] : memref<8x8x576xf32, #tpu.memory_space<vmem>>, vector<8x1x64xf32>
    tpu.vector_store %arg15[%c0_145, %c0_146, %c192_147], %114 {strides = array<i32>} : memref<8x8x576xf32, #tpu.memory_space<vmem>>, vector<8x1x64xf32>,
    %c0_148 = arith.constant 0 : index
    %c1_149 = arith.constant 1 : index
    %c0_150 = arith.constant 0 : index
    %116 = tpu.strided_load %arg14[%c0_148, %c1_149, %c0_150] {strides = array<i32: 2, 2, 1>} : memref<16x16x64xf32, #tpu.memory_space<vmem>>, vector<8x7x64xf32>
    %c0_151 = arith.constant 0 : index
    %c1_152 = arith.constant 1 : index
    %c192_153 = arith.constant 192 : index
    %117 = vector.load %arg15[%c0_151, %c1_152, %c192_153] : memref<8x8x576xf32, #tpu.memory_space<vmem>>, vector<8x7x64xf32>
    tpu.vector_store %arg15[%c0_151, %c1_152, %c192_153], %116 {strides = array<i32>} : memref<8x8x576xf32, #tpu.memory_space<vmem>>, vector<8x7x64xf32>,
    %c0_154 = arith.constant 0 : index
    %c0_155 = arith.constant 0 : index
    %c0_156 = arith.constant 0 : index
    %118 = tpu.strided_load %arg14[%c0_154, %c0_155, %c0_156] {strides = array<i32: 2, 2, 1>} : memref<16x16x64xf32, #tpu.memory_space<vmem>>, vector<8x8x64xf32>
    %c0_157 = arith.constant 0 : index
    %c0_158 = arith.constant 0 : index
    %c256_159 = arith.constant 256 : index
    %119 = vector.load %arg15[%c0_157, %c0_158, %c256_159] : memref<8x8x576xf32, #tpu.memory_space<vmem>>, vector<8x8x64xf32>
    tpu.vector_store %arg15[%c0_157, %c0_158, %c256_159], %118 {strides = array<i32>} : memref<8x8x576xf32, #tpu.memory_space<vmem>>, vector<8x8x64xf32>,
    %c0_160 = arith.constant 0 : index
    %c1_161 = arith.constant 1 : index
    %c0_162 = arith.constant 0 : index
    %120 = tpu.strided_load %arg14[%c0_160, %c1_161, %c0_162] {strides = array<i32: 2, 2, 1>} : memref<16x16x64xf32, #tpu.memory_space<vmem>>, vector<8x8x64xf32>
    %c0_163 = arith.constant 0 : index
    %c0_164 = arith.constant 0 : index
    %c320 = arith.constant 320 : index
    %121 = vector.load %arg15[%c0_163, %c0_164, %c320] : memref<8x8x576xf32, #tpu.memory_space<vmem>>, vector<8x8x64xf32>
    tpu.vector_store %arg15[%c0_163, %c0_164, %c320], %120 {strides = array<i32>} : memref<8x8x576xf32, #tpu.memory_space<vmem>>, vector<8x8x64xf32>,
    %cst_165 = arith.constant 0.000000e+00 : f32
    %122 = vector.broadcast %cst_165 : f32 to vector<8x1x64xf32>
    %c0_166 = arith.constant 0 : index
    %c0_167 = arith.constant 0 : index
    %c384 = arith.constant 384 : index
    %123 = vector.load %arg15[%c0_166, %c0_167, %c384] : memref<8x8x576xf32, #tpu.memory_space<vmem>>, vector<8x1x64xf32>
    tpu.vector_store %arg15[%c0_166, %c0_167, %c384], %122 {strides = array<i32>} : memref<8x8x576xf32, #tpu.memory_space<vmem>>, vector<8x1x64xf32>,
    %c1_168 = arith.constant 1 : index
    %c1_169 = arith.constant 1 : index
    %c0_170 = arith.constant 0 : index
    %124 = tpu.strided_load %arg14[%c1_168, %c1_169, %c0_170] {strides = array<i32: 2, 2, 1>} : memref<16x16x64xf32, #tpu.memory_space<vmem>>, vector<8x7x64xf32>
    %c0_171 = arith.constant 0 : index
    %c1_172 = arith.constant 1 : index
    %c384_173 = arith.constant 384 : index
    %125 = vector.load %arg15[%c0_171, %c1_172, %c384_173] : memref<8x8x576xf32, #tpu.memory_space<vmem>>, vector<8x7x64xf32>
    tpu.vector_store %arg15[%c0_171, %c1_172, %c384_173], %124 {strides = array<i32>} : memref<8x8x576xf32, #tpu.memory_space<vmem>>, vector<8x7x64xf32>,
    %c1_174 = arith.constant 1 : index
    %c0_175 = arith.constant 0 : index
    %c0_176 = arith.constant 0 : index
    %126 = tpu.strided_load %arg14[%c1_174, %c0_175, %c0_176] {strides = array<i32: 2, 2, 1>} : memref<16x16x64xf32, #tpu.memory_space<vmem>>, vector<8x8x64xf32>
    %c0_177 = arith.constant 0 : index
    %c0_178 = arith.constant 0 : index
    %c448 = arith.constant 448 : index
    %127 = vector.load %arg15[%c0_177, %c0_178, %c448] : memref<8x8x576xf32, #tpu.memory_space<vmem>>, vector<8x8x64xf32>
    tpu.vector_store %arg15[%c0_177, %c0_178, %c448], %126 {strides = array<i32>} : memref<8x8x576xf32, #tpu.memory_space<vmem>>, vector<8x8x64xf32>,
    %c1_179 = arith.constant 1 : index
    %c1_180 = arith.constant 1 : index
    %c0_181 = arith.constant 0 : index
    %128 = tpu.strided_load %arg14[%c1_179, %c1_180, %c0_181] {strides = array<i32: 2, 2, 1>} : memref<16x16x64xf32, #tpu.memory_space<vmem>>, vector<8x8x64xf32>
    %c0_182 = arith.constant 0 : index
    %c0_183 = arith.constant 0 : index
    %c512 = arith.constant 512 : index
    %129 = vector.load %arg15[%c0_182, %c0_183, %c512] : memref<8x8x576xf32, #tpu.memory_space<vmem>>, vector<8x8x64xf32>
    tpu.vector_store %arg15[%c0_182, %c0_183, %c512], %128 {strides = array<i32>} : memref<8x8x576xf32, #tpu.memory_space<vmem>>, vector<8x8x64xf32>,
    %c0_184 = arith.constant 0 : index
    %c0_185 = arith.constant 0 : index
    %130 = vector.load %arg7[%c0_184, %c0_185] : memref<1x64xf32, #tpu.memory_space<vmem>>, vector<1x64xf32>
    %c0_186 = arith.constant 0 : index
    %c0_187 = arith.constant 0 : index
    %c0_188 = arith.constant 0 : index
    %131 = vector.load %arg15[%c0_186, %c0_187, %c0_188] : memref<8x8x576xf32, #tpu.memory_space<vmem>>, vector<4x8x576xf32>
    %132 = vector.shape_cast %131 : vector<4x8x576xf32> to vector<32x576xf32>
    %133 = arith.truncf %132 : vector<32x576xf32> to vector<32x576xbf16>
    %c0_189 = arith.constant 0 : index
    %c0_190 = arith.constant 0 : index
    %134 = vector.load %arg4[%c0_189, %c0_190] : memref<576x64xbf16, #tpu.memory_space<vmem>>, vector<576x64xbf16>
    %cst_191 = arith.constant dense<0.000000e+00> : vector<32x64xf32>
    %135 = tpu.matmul %133, %134, %cst_191 {dimension_numbers = #tpu.dot_dimension_numbers<[1], [0], [0], [1], [0, 0, 1, 1], [], []>} : vector<32x576xbf16>, vector<576x64xbf16>, vector<32x64xf32> -> vector<32x64xf32>
    %136 = vector.broadcast %130 : vector<1x64xf32> to vector<32x64xf32>
    %137 = arith.addf %135, %136 : vector<32x64xf32>
    %138 = vector.shape_cast %137 : vector<32x64xf32> to vector<4x8x64xf32>
    %c0_192 = arith.constant 0 : index
    %c0_193 = arith.constant 0 : index
    %c0_194 = arith.constant 0 : index
    %139 = vector.load %arg16[%c0_192, %c0_193, %c0_194] : memref<8x8x64xf32, #tpu.memory_space<vmem>>, vector<4x8x64xf32>
    tpu.vector_store %arg16[%c0_192, %c0_193, %c0_194], %138 {strides = array<i32>} : memref<8x8x64xf32, #tpu.memory_space<vmem>>, vector<4x8x64xf32>,
    %c4_195 = arith.constant 4 : index
    %c0_196 = arith.constant 0 : index
    %c0_197 = arith.constant 0 : index
    %140 = vector.load %arg15[%c4_195, %c0_196, %c0_197] : memref<8x8x576xf32, #tpu.memory_space<vmem>>, vector<4x8x576xf32>
    %141 = vector.shape_cast %140 : vector<4x8x576xf32> to vector<32x576xf32>
    %142 = arith.truncf %141 : vector<32x576xf32> to vector<32x576xbf16>
    %c0_198 = arith.constant 0 : index
    %c0_199 = arith.constant 0 : index
    %143 = vector.load %arg4[%c0_198, %c0_199] : memref<576x64xbf16, #tpu.memory_space<vmem>>, vector<576x64xbf16>
    %cst_200 = arith.constant dense<0.000000e+00> : vector<32x64xf32>
    %144 = tpu.matmul %142, %143, %cst_200 {dimension_numbers = #tpu.dot_dimension_numbers<[1], [0], [0], [1], [0, 0, 1, 1], [], []>} : vector<32x576xbf16>, vector<576x64xbf16>, vector<32x64xf32> -> vector<32x64xf32>
    %145 = vector.broadcast %130 : vector<1x64xf32> to vector<32x64xf32>
    %146 = arith.addf %144, %145 : vector<32x64xf32>
    %147 = vector.shape_cast %146 : vector<32x64xf32> to vector<4x8x64xf32>
    %c4_201 = arith.constant 4 : index
    %c0_202 = arith.constant 0 : index
    %c0_203 = arith.constant 0 : index
    %148 = vector.load %arg16[%c4_201, %c0_202, %c0_203] : memref<8x8x64xf32, #tpu.memory_space<vmem>>, vector<4x8x64xf32>
    tpu.vector_store %arg16[%c4_201, %c0_202, %c0_203], %147 {strides = array<i32>} : memref<8x8x64xf32, #tpu.memory_space<vmem>>, vector<4x8x64xf32>,
    %c0_204 = arith.constant 0 : index
    %c0_205 = arith.constant 0 : index
    %c0_206 = arith.constant 0 : index
    %149 = vector.load %arg16[%c0_204, %c0_205, %c0_206] : memref<8x8x64xf32, #tpu.memory_space<vmem>>, vector<8x8x64xf32>
    %150 = vector.shape_cast %149 : vector<8x8x64xf32> to vector<64x64xf32>
    %cst_207 = arith.constant dense<0.000000e+00> : vector<64xf32>
    %151 = vector.multi_reduction <add>, %150, %cst_207 [0] : vector<64x64xf32> to vector<64xf32>
    %152 = vector.shape_cast %151 : vector<64xf32> to vector<1x64xf32>
    %cst_208 = arith.constant 6.400000e+01 : f32
    %153 = vector.broadcast %cst_208 : f32 to vector<1x64xf32>
    %154 = arith.divf %152, %153 : vector<1x64xf32>
    %c0_209 = arith.constant 0 : index
    %c0_210 = arith.constant 0 : index
    %155 = vector.load %arg8[%c0_209, %c0_210] : memref<64x8xf32, #tpu.memory_space<vmem>>, vector<64x8xf32>
    %cst_211 = arith.constant dense<0.000000e+00> : vector<1x8xf32>
    %156 = tpu.matmul %154, %155, %cst_211 {dimension_numbers = #tpu.dot_dimension_numbers<[1], [0], [0], [1], [0, 0, 1, 1], [], []>} : vector<1x64xf32>, vector<64x8xf32>, vector<1x8xf32> -> vector<1x8xf32>
    %cst_212 = arith.constant 0.000000e+00 : f32
    %157 = vector.broadcast %cst_212 : f32 to vector<1x8xf32>
    %158 = arith.maximumf %156, %157 : vector<1x8xf32>
    %c0_213 = arith.constant 0 : index
    %c0_214 = arith.constant 0 : index
    %159 = vector.load %arg9[%c0_213, %c0_214] : memref<8x64xf32, #tpu.memory_space<vmem>>, vector<8x64xf32>
    %cst_215 = arith.constant dense<0.000000e+00> : vector<1x64xf32>
    %160 = tpu.matmul %158, %159, %cst_215 {dimension_numbers = #tpu.dot_dimension_numbers<[1], [0], [0], [1], [0, 0, 1, 1], [], []>} : vector<1x8xf32>, vector<8x64xf32>, vector<1x64xf32> -> vector<1x64xf32>
    %161 = arith.negf %160 : vector<1x64xf32>
    %162 = math.exp %161 : vector<1x64xf32>
    %cst_216 = arith.constant 1.000000e+00 : f32
    %163 = vector.broadcast %cst_216 : f32 to vector<1x64xf32>
    %164 = arith.addf %163, %162 : vector<1x64xf32>
    %165 = arith.divf %163, %164 : vector<1x64xf32>
    %166 = vector.broadcast %165 : vector<1x64xf32> to vector<64x64xf32>
    %167 = arith.mulf %150, %166 : vector<64x64xf32>
    %c0_217 = arith.constant 0 : index
    %c0_218 = arith.constant 0 : index
    %c0_219 = arith.constant 0 : index
    %c0_220 = arith.constant 0 : index
    %168 = tpu.strided_load %arg1[%c0_217, %c0_218, %c0_219, %c0_220] {strides = array<i32: 1, 2, 2, 1>} : memref<1x16x16x32xf32, #tpu.memory_space<vmem>>, vector<1x8x8x32xf32>
    %169 = vector.shape_cast %168 : vector<1x8x8x32xf32> to vector<8x8x32xf32>
    %170 = vector.shape_cast %169 : vector<8x8x32xf32> to vector<64x32xf32>
    %171 = arith.truncf %170 : vector<64x32xf32> to vector<64x32xbf16>
    %c0_221 = arith.constant 0 : index
    %c0_222 = arith.constant 0 : index
    %172 = vector.load %arg10[%c0_221, %c0_222] : memref<32x64xbf16, #tpu.memory_space<vmem>>, vector<32x64xbf16>
    %cst_223 = arith.constant dense<0.000000e+00> : vector<64x64xf32>
    %173 = tpu.matmul %171, %172, %cst_223 {dimension_numbers = #tpu.dot_dimension_numbers<[1], [0], [0], [1], [0, 0, 1, 1], [], []>} : vector<64x32xbf16>, vector<32x64xbf16>, vector<64x64xf32> -> vector<64x64xf32>
    %c0_224 = arith.constant 0 : index
    %c0_225 = arith.constant 0 : index
    %174 = vector.load %arg11[%c0_224, %c0_225] : memref<1x64xf32, #tpu.memory_space<vmem>>, vector<1x64xf32>
    %175 = vector.broadcast %174 : vector<1x64xf32> to vector<64x64xf32>
    %176 = arith.addf %173, %175 : vector<64x64xf32>
    %177 = arith.addf %167, %176 : vector<64x64xf32>
    %178 = vector.shape_cast %177 : vector<64x64xf32> to vector<8x8x64xf32>
    %c0_226 = arith.constant 0 : index
    %c0_227 = arith.constant 0 : index
    %c0_228 = arith.constant 0 : index
    %c0_229 = arith.constant 0 : index
    %179 = vector.load %arg12[%c0_226, %c0_227, %c0_228, %c0_229] : memref<1x8x8x64xf32, #tpu.memory_space<vmem>>, vector<1x8x8x64xf32>
    %180 = vector.shape_cast %179 : vector<1x8x8x64xf32> to vector<8x8x64xf32>
    %181 = vector.shape_cast %178 : vector<8x8x64xf32> to vector<1x8x8x64xf32>
    tpu.vector_store %arg12[%c0_226, %c0_227, %c0_228, %c0_229], %181 {strides = array<i32>} : memref<1x8x8x64xf32, #tpu.memory_space<vmem>>, vector<1x8x8x64xf32>,
    return
  }
  func.func @transform_0(%arg0: i32) -> (i32, i32, i32, i32) {
    %c0_i32 = arith.constant 0 : i32
    %c0_i32_0 = arith.constant 0 : i32
    %c0_i32_1 = arith.constant 0 : i32
    %c0_i32_2 = arith.constant 0 : i32
    return %arg0, %c0_i32, %c0_i32_0, %c0_i32_1 : i32, i32, i32, i32
  }
  func.func @transform_1(%arg0: i32) -> (i32, i32) {
    %c0_i32 = arith.constant 0 : i32
    %c0_i32_0 = arith.constant 0 : i32
    %c0_i32_1 = arith.constant 0 : i32
    return %c0_i32, %c0_i32_0 : i32, i32
  }
  func.func @transform_2(%arg0: i32) -> (i32, i32) {
    %c0_i32 = arith.constant 0 : i32
    %c0_i32_0 = arith.constant 0 : i32
    %c0_i32_1 = arith.constant 0 : i32
    return %c0_i32, %c0_i32_0 : i32, i32
  }
  func.func @transform_3(%arg0: i32) -> (i32, i32) {
    %c0_i32 = arith.constant 0 : i32
    %c0_i32_0 = arith.constant 0 : i32
    %c0_i32_1 = arith.constant 0 : i32
    return %c0_i32, %c0_i32_0 : i32, i32
  }
  func.func @transform_4(%arg0: i32) -> (i32, i32) {
    %c0_i32 = arith.constant 0 : i32
    %c0_i32_0 = arith.constant 0 : i32
    %c0_i32_1 = arith.constant 0 : i32
    return %c0_i32, %c0_i32_0 : i32, i32
  }
  func.func @transform_5(%arg0: i32) -> (i32, i32) {
    %c0_i32 = arith.constant 0 : i32
    %c0_i32_0 = arith.constant 0 : i32
    %c0_i32_1 = arith.constant 0 : i32
    return %c0_i32, %c0_i32_0 : i32, i32
  }
  func.func @transform_6(%arg0: i32) -> (i32, i32) {
    %c0_i32 = arith.constant 0 : i32
    %c0_i32_0 = arith.constant 0 : i32
    %c0_i32_1 = arith.constant 0 : i32
    return %c0_i32, %c0_i32_0 : i32, i32
  }
  func.func @transform_7(%arg0: i32) -> (i32, i32) {
    %c0_i32 = arith.constant 0 : i32
    %c0_i32_0 = arith.constant 0 : i32
    %c0_i32_1 = arith.constant 0 : i32
    return %c0_i32, %c0_i32_0 : i32, i32
  }
  func.func @transform_8(%arg0: i32) -> (i32, i32) {
    %c0_i32 = arith.constant 0 : i32
    %c0_i32_0 = arith.constant 0 : i32
    %c0_i32_1 = arith.constant 0 : i32
    return %c0_i32, %c0_i32_0 : i32, i32
  }
  func.func @transform_9(%arg0: i32) -> (i32, i32) {
    %c0_i32 = arith.constant 0 : i32
    %c0_i32_0 = arith.constant 0 : i32
    %c0_i32_1 = arith.constant 0 : i32
    return %c0_i32, %c0_i32_0 : i32, i32
  }
  func.func @transform_10(%arg0: i32) -> (i32, i32) {
    %c0_i32 = arith.constant 0 : i32
    %c0_i32_0 = arith.constant 0 : i32
    %c0_i32_1 = arith.constant 0 : i32
    return %c0_i32, %c0_i32_0 : i32, i32
  }
  func.func @transform_11(%arg0: i32) -> (i32, i32, i32, i32) {
    %c0_i32 = arith.constant 0 : i32
    %c0_i32_0 = arith.constant 0 : i32
    %c0_i32_1 = arith.constant 0 : i32
    %c0_i32_2 = arith.constant 0 : i32
    return %arg0, %c0_i32, %c0_i32_0, %c0_i32_1 : i32, i32, i32, i32
  }
}

</mosaic_0001>

<bundles_post_ra>
// kernel: tpu_custom_call.1
= control target key start
LH: loop header
LB: loop body
LE: loop exit
PB: predicated region body
PF: predicated region fallthrough
CT: control target
= control target key end

     0   :  { %s8146_s0 = inlined_call_operand.vmem [shape: f32[2,16,16,32], index: 0, kind: input, shape index: {}]   ;;  %s8147_s1 = inlined_call_operand.vmem [shape: bf16[288,64], index: 1, kind: input, shape index: {}]   ;;  %s8148_s2 = inlined_call_operand.vmem [shape: f32[1,64], index: 2, kind: input, shape index: {}]   ;;  %s8149_s3 = inlined_call_operand.vmem [shape: bf16[576,64], index: 3, kind: input, shape index: {}]   ;;  %s8150_s4 = inlined_call_operand.vmem [shape: f32[1,32], index: 4, kind: input, shape index: {}]   ;;  %s8151_s5 = inlined_call_operand.vmem [shape: f32[1,32], index: 5, kind: input, shape index: {}]   ;;  %s8152_s6 = inlined_call_operand.vmem [shape: f32[1,64], index: 6, kind: input, shape index: {}]   ;;  %s8153_s7 = inlined_call_operand.vmem [shape: f32[64,8], index: 7, kind: input, shape index: {}]   ;;  %s8154_s8 = inlined_call_operand.vmem [shape: f32[8,64], index: 8, kind: input, shape index: {}]   ;;  %s8155_s9 = inlined_call_operand.vmem [shape: bf16[32,64], index: 9, kind: input, shape index: {}]   ;;  %s8156_s10 = inlined_call_operand.vmem [shape: f32[1,64], index: 10, kind: input, shape index: {}]   ;;  %s8157_s11 = inlined_call_operand.hbm [shape: f32[2,8,8,64], index: 11, kind: output, shape index: {}]  }
   0x1   :  { %8164 = sst [smem:[#allocation10_spill]] %s8146_s0 }
   0x2   :  { %16 = vsyncpa [#allocation7], 0 }
   0x3   :  { %18 = vsyncpa [#allocation7 + $0x1], 0  ;;  %s5794_s17 = smov 0   ;;  %s5796_s18 = smov 0  }
   0x4   :  { %s5798_s19 = smov 0   ;;  %s5800_s20 = smov 0  }
   0x5 LB: > { %s5815_s21 = sadd.s32 4294967295, %s5724_s20   ;;  %s4833_s22 = sadd.s32 4294967294, %s5724_s20   ;;  %s5724_s20 = sphi %s5800_s20, %s8176_s20   ;;  %s5720_s19 = sphi %s5798_s19, %s8175_s19   ;;  %s5716_s18 = sphi %s5796_s18, %s8174_s18   ;;  %s5712_s17 = sphi %s5794_s17, %s8173_s17  }
   0x6   : > { %s5819_s23 = sadd.s32 1, %s5724_s20   ;;  %s267_s24 = sadd.s32 1, %s5720_s19 }
   0x7   : > { %s264_s25 = ssub.s32 %s5724_s20, %s5819_s23  ;;  %p277_p0 = scmp.ne.s32.totalorder %s5720_s19, %s5716_s18 }
   0x8   : > { %p265_p1 = scmp.eq.s32.totalorder %s264_s25, 0  ;;  %p278_p2 = scmp.eq.s32.totalorder %s5815_s21, 1 }
   0x9   : > { %p283_p3 = scmp.ne.s32.totalorder %s5716_s18, %s5712_s17  ;;  %p284_p4 = scmp.eq.s32.totalorder %s4833_s22, 1 }
   0xa   : > { %s5830_s26 = scalar_select %p265_p1, %s5720_s19, %s267_s24  }
   0xb   : > { %p5832_p5 = por %p278_p2, %p277_p0  ;;  %p5836_p6 = por %p284_p4, %p283_p3 }
   0xc   : > { %8165 = sst [smem:[#allocation9_spill]] %s5830_s26  ;;  %p4836_p7 = scmp.ge.s32.totalorder %s5724_s20, 1 }
   0xd   : > { %p340_p8 = scmp.lt.s32.totalorder %s5724_s20, 3 }
   0xf   : > { %p341_p9 = pnand %p4836_p7, %p340_p8 }
  0x10   : > { %p380_p10 = scmp.lt.s32.totalorder (!%p341_p9), %s5815_s21, 1  ;;  %s8168_s0 = sld [smem:[#allocation10_spill]] (!%p341_p9) }
  0x11   : > { %344 = sbr.rel (%p341_p9) target bundleno = 1540 (0x604), region = 64  ;;  %s8158_s15 = smov (!%p341_p9), 32  }
  0x12   : > { %s8162_s16 = smov (!%p341_p9), 64   ;;  %s5729_s14 = smov (!%p341_p9), 96  }
  0x13   : > { %s8170_s24 = smov (!%p341_p9), 32  }
  0x16   : > { %vm496_vm0 = vcmask 261120   ;;  %s381_s29 = scalar_select %p380_p10, %s5815_s21, 1  ;;  %v5847_v0 = vld [vmem:[%s8150_s4] ss:$0 sm:$0xff]  ;;  %v5511_v1 = vld [vmem:[%s8147_s1 + $0x88] sm:$0xff]   ;;  %vm500_vm1 = vcmask 253952  }
  0x17   : > { %v5855_v2 = vld [vmem:[%s8147_s1 + $0x80] sm:$0xff]   ;;  %5357 = vmatprep.subr.bf16.mxu1 %v5511_v1  ;;  %v8160_v3 = vmov 0.0   ;;  %v5513_v5 = vld [vmem:[%s8147_s1 + $0x78] sm:$0xff]   ;;  %vm653_vm2 = vcmask 523520   ;;  %vm1604_vm3 = vcmask 260096   ;;  %vm795_vm4 = vcmask 1046528  }
  0x18   : > { %s5030_s22 = sshll.u32 %s381_s29, 8  ;;  %497 = vst.msk [vmem:[#allocation2] sm:$0xff] %vm496_vm0, %v8160_v3  ;;  %498 = vst.msk [vmem:[#allocation2 + $0x18] sm:$0xff] %vm496_vm0, %v8160_v3  ;;  %v5873_v4 = vld [vmem:[%s8151_s5] ss:$0 sm:$0xff]  ;;  %5358 = vmatpush3.bf16.msra.mxu1 %v5511_v1  ;;  %vm546_vm5 = vcmask 1040384  }
  0x19   : > { %1556 = vst.msk [vmem:[#allocation2 + $0x2e0] sm:$0xff] %vm496_vm0, %v8160_v3  ;;  %1557 = vst.msk [vmem:[#allocation2 + $0x2f8] sm:$0xff] %vm496_vm0, %v8160_v3  ;;  %s5868_s30 = scalar_lea.vmem %s8168_s0, %s5030_s22  ;;  %5359 = vmatprep.subr.bf16.mxu1 %v5855_v2  ;;  %vm1146_vm6 = vcmask 516352   ;;  %vm622_vm7 = vcmask 261121   ;;  %vm776_vm8 = vcmask 785920   ;;  %vm962_vm9 = vcmask 1041152  }
  0x1a   : > { %1558 = vst.msk [vmem:[#allocation2 + $0x2f] sm:$0x1] %vm500_vm1, %v8160_v3  ;;  %501 = vst.msk [vmem:[#allocation2 + $0x30] sm:$0x1] %vm500_vm1, %v8160_v3  ;;  %v395_v6 = vld [vmem:[%s5868_s30 + $0x48] sm:$0xff]  ;;  %v392_v7 = vld [vmem:[%s5868_s30 + $0x30] sm:$0xff] }
  0x1b   : > { %502 = vst.msk [vmem:[#allocation2 + $0x60] sm:$0x1] %vm500_vm1, %v8160_v3  ;;  %503 = vst.msk [vmem:[#allocation2 + $0x90] sm:$0x1] %vm500_vm1, %v8160_v3  ;;  %v396_v8 = vld [vmem:[%s5868_s30 + $0x50] sm:$0xff]  ;;  %v434_v9 = vmul.f32 %v5847_v0, %v395_v6  ;;  %v431_v10 = vmul.f32 %v5847_v0, %v392_v7  ;;  %v393_v12 = vld [vmem:[%s5868_s30 + $0x38] sm:$0xff] }
  0x1c   : > { %504 = vst.msk [vmem:[#allocation2 + $0xc0] sm:$0x1] %vm500_vm1, %v8160_v3  ;;  %505 = vst.msk [vmem:[#allocation2 + $0xf0] sm:$0x1] %vm500_vm1, %v8160_v3  ;;  %v435_v11 = vmul.f32 %v5847_v0, %v396_v8  ;;  %v394_v13 = vld [vmem:[%s5868_s30 + $0x40] sm:$0xff]  ;;  %v397_v14 = vld [vmem:[%s5868_s30 + $0x58] sm:$0xff]  ;;  %v432_v15 = vmul.f32 %v5847_v0, %v393_v12  ;;  %5360 = vmatpush3.bf16.msra.mxu1 %v5855_v2 }
  0x1d   : > { %506 = vst.msk [vmem:[#allocation2 + $0x120] sm:$0x1] %vm500_vm1, %v8160_v3  ;;  %507 = vst.msk [vmem:[#allocation2 + $0x150] sm:$0x1] %vm500_vm1, %v8160_v3  ;;  %v433_v16 = vmul.f32 %v5847_v0, %v394_v13  ;;  %v436_v17 = vmul.f32 %v5847_v0, %v397_v14  ;;  %v387_v18 = vld [vmem:[%s5868_s30 + $0x8] sm:$0xff]  ;;  %v386_v19 = vld [vmem:[%s5868_s30] sm:$0xff]  ;;  %v5958_v20 = vadd.f32 %v5873_v4, %v434_v9  ;;  %5078 = vmatprep.subr.bf16.mxu1 %v5513_v5 }
  0x1e   : > { %508 = vst.msk [vmem:[#allocation2 + $0x180] sm:$0x1] %vm500_vm1, %v8160_v3  ;;  %509 = vst.msk [vmem:[#allocation2 + $0x1b0] sm:$0x1] %vm500_vm1, %v8160_v3  ;;  %v5961_v21 = vadd.f32 %v5873_v4, %v431_v10  ;;  %v5964_v22 = vadd.f32 %v5873_v4, %v435_v11  ;;  %v426_v23 = vmul.f32 %v5847_v0, %v387_v18  ;;  %v388_v28 = vld [vmem:[%s5868_s30 + $0x10] sm:$0xff]  ;;  %v389_v29 = vld [vmem:[%s5868_s30 + $0x18] sm:$0xff] }
  0x1f   : > { %510 = vst.msk [vmem:[#allocation2 + $0x1e0] sm:$0x1] %vm500_vm1, %v8160_v3  ;;  %511 = vst.msk [vmem:[#allocation2 + $0x210] sm:$0x1] %vm500_vm1, %v8160_v3  ;;  %v5969_v24 = vadd.f32 %v5873_v4, %v432_v15  ;;  %v5972_v25 = vadd.f32 %v5873_v4, %v433_v16  ;;  %v5975_v26 = vadd.f32 %v5873_v4, %v436_v17  ;;  %v5981_v30 = vrot.slane %v5958_v20, 1  ;;  %v398_v38 = vld [vmem:[%s5868_s30 + $0x60] sm:$0xff] }
  0x20   : > { %512 = vst.msk [vmem:[#allocation2 + $0x240] sm:$0x1] %vm500_vm1, %v8160_v3  ;;  %513 = vst.msk [vmem:[#allocation2 + $0x270] sm:$0x1] %vm500_vm1, %v8160_v3  ;;  %v425_v27 = vmul.f32 %v5847_v0, %v386_v19  ;;  %668 = vrot.lane.b32.xlu1 %v5961_v21, %s8158_s15  ;;  %v5986_v31 = vrot.slane %v5964_v22, 7  ;;  %v805_v32 = vrot.slane %v5961_v21, 1  ;;  %v6018_v39 = vadd.f32 %v5873_v4, %v426_v23 }
  0x21   : > { %514 = vst.msk [vmem:[#allocation2 + $0x2a0] sm:$0x1] %vm500_vm1, %v8160_v3  ;;  %515 = vst.msk [vmem:[#allocation2 + $0x2d0] sm:$0x1] %vm500_vm1, %v8160_v3  ;;  %v560_v33 = vrot.slane %v5958_v20, 7  ;;  %v808_v34 = vrot.slane %v5972_v25, 1  ;;  %1184 = vrot.lane.b32.xlu0 %v5981_v30, %s8158_s15  ;;  %v427_v41 = vmul.f32 %v5847_v0, %v388_v28  ;;  %v428_v42 = vmul.f32 %v5847_v0, %v389_v29 }
  0x22   : > { %1559 = vst.msk [vmem:[#allocation2 + $0x5f] sm:$0x1] %vm500_vm1, %v8160_v3  ;;  %1560 = vst.msk [vmem:[#allocation2 + $0x8f] sm:$0x1] %vm500_vm1, %v8160_v3  ;;  %v6002_v35 = vrot.slane %v5969_v24, 1  ;;  %v563_v36 = vrot.slane %v5975_v26, 7  ;;  %v6021_v40 = vadd.f32 %v5873_v4, %v425_v27  ;;  %v437_v60 = vmul.f32 %v5847_v0, %v398_v38 }
  0x23   : > { %1561 = vst.msk [vmem:[#allocation2 + $0xbf] sm:$0x1] %vm500_vm1, %v8160_v3  ;;  %1562 = vst.msk [vmem:[#allocation2 + $0xef] sm:$0x1] %vm500_vm1, %v8160_v3  ;;  %v6008_v37 = vrot.slane %v5972_v25, 7  ;;  %v399_v43 = vld [vmem:[%s5868_s30 + $0x68] sm:$0xff]  ;;  %v6034_v44 = vsel %vm795_vm4, %v808_v34, %v5981_v30  ;;  %v6068_v49 = vadd.f32 %v5873_v4, %v427_v41  ;;  %v6071_v50 = vadd.f32 %v5873_v4, %v428_v42 }
  0x24   : > { %1563 = vst.msk [vmem:[#allocation2 + $0x11f] sm:$0x1] %vm500_vm1, %v8160_v3  ;;  %1564 = vst.msk [vmem:[#allocation2 + $0x14f] sm:$0x1] %vm500_vm1, %v8160_v3  ;;  %v6040_v45 = vsel %vm546_vm5, %v5986_v31, %v563_v36  ;;  %v6044_v46 = vsel %vm795_vm4, %v805_v32, %v6002_v35  ;;  %v390_v48 = vld [vmem:[%s5868_s30 + $0x20] sm:$0xff]  ;;  %670 = vrot.lane.b32.xlu1 %v5969_v24, %s8158_s15  ;;  %v391_v51 = vld [vmem:[%s5868_s30 + $0x28] sm:$0xff]  ;;  %v438_v63 = vmul.f32 %v5847_v0, %v399_v43 }
  0x25   : > { %1565 = vst.msk [vmem:[#allocation2 + $0x17f] sm:$0x1] %vm500_vm1, %v8160_v3  ;;  %1566 = vst.msk [vmem:[#allocation2 + $0x1af] sm:$0x1] %vm500_vm1, %v8160_v3  ;;  %v6048_v47 = vsel %vm546_vm5, %v6008_v37, %v560_v33  ;;  %v6075_v52 = vrot.slane %v6021_v40, 7  ;;  %v548_v53 = vrot.slane %v6018_v39, 7  ;;  %1329 = vrot.lane.b32.xlu0 %v5986_v31, %s8162_s16  ;;  %v6124_v5 = vadd.f32 %v5873_v4, %v437_v60 }
  0x26   : > { %1567 = vst.msk [vmem:[#allocation2 + $0x1df] sm:$0x1] %vm500_vm1, %v8160_v3  ;;  %1568 = vst.msk [vmem:[#allocation2 + $0x20f] sm:$0x1] %vm500_vm1, %v8160_v3  ;;  %v811_v54 = vrot.slane %v5964_v22, 1  ;;  %v6080_v55 = vrot.slane %v5975_v26, 1  ;;  %v429_v7 = vmul.f32 %v5847_v0, %v390_v48  ;;  %v6135_v8 = vadd.f32 %v5873_v4, %v438_v63 }
  0x27   : > { %1569 = vst.msk [vmem:[#allocation2 + $0x23f] sm:$0x1] %vm500_vm1, %v8160_v3  ;;  %1570 = vst.msk [vmem:[#allocation2 + $0x26f] sm:$0x1] %vm500_vm1, %v8160_v3  ;;  %v400_v56 = vld [vmem:[%s5868_s30 + $0x70] sm:$0xff]  ;;  %v401_v57 = vld [vmem:[%s5868_s30 + $0x78] sm:$0xff]  ;;  %v6099_v61 = vsel %vm546_vm5, %v6075_v52, %v548_v53  ;;  %v430_v9 = vmul.f32 %v5847_v0, %v391_v51 }
  0x28   : > { %1571 = vst.msk [vmem:[#allocation2 + $0x29f] sm:$0x1] %vm500_vm1, %v8160_v3  ;;  %1572 = vst.msk [vmem:[#allocation2 + $0x2cf] sm:$0x1] %vm500_vm1, %v8160_v3  ;;  %v6089_v58 = vrot.slane %v6068_v49, 7  ;;  %v551_v59 = vrot.slane %v6071_v50, 7  ;;  %v6103_v62 = vsel %vm795_vm4, %v811_v54, %v6080_v55  ;;  %855 = vrot.lane.b32.xlu1 %v6002_v35, %s8162_s16  ;;  %v439_v10 = vmul.f32 %v5847_v0, %v400_v56 }
  0x29   : > { %654 = vst.msk [vmem:[#allocation2] sm:$0xff] %vm653_vm2, %v8160_v3  ;;  %655 = vst.msk [vmem:[#allocation2 + $0x18] sm:$0xff] %vm653_vm2, %v8160_v3  ;;  %v799_v1 = vrot.slane %v6068_v49, 1  ;;  %v6127_v6 = vrot.slane %v6071_v50, 1  ;;  %v440_v11 = vmul.f32 %v5847_v0, %v401_v57  ;;  %v5521_v12 = vld [vmem:[%s8147_s1 + $0x78] sm:$0xff]   ;;  %1182 = vrot.lane.b32.xlu0 %v6034_v44, %s8158_s15  ;;  %v6146_v13 = vrot.slane %v6124_v5, 7 }
  0x2a   : > { %1120 = vst.msk [vmem:[#allocation2 + $0x98] sm:$0xff] %vm496_vm0, %v5961_v21  ;;  %1123 = vst.msk [vmem:[#allocation2 + $0xe0] sm:$0xff] %vm496_vm0, %v5958_v20  ;;  %v6117_v2 = vsel %vm546_vm5, %v6089_v58, %v551_v59  ;;  %v6157_v15 = vadd.f32 %v5873_v4, %v429_v7  ;;  %v814_v16 = vrot.slane %v6124_v5, 1  ;;  %v566_v17 = vrot.slane %v6135_v8, 7  ;;  %5032 = vmatprep.subr.bf16.mxu0 %v5521_v12  ;;  %v5523_v27 = vld [vmem:[%s8147_s1 + $0x38] sm:$0xff]   ;;  %v5525_v53 = vld [vmem:[%s8147_s1 + $0x70] sm:$0xff]  }
  0x2b   : > { %1124 = vst.msk [vmem:[#allocation2 + $0xf8] sm:$0xff] %vm496_vm0, %v5964_v22  ;;  %1121 = vst.msk [vmem:[#allocation2 + $0xb0] sm:$0xff] %vm496_vm0, %v5969_v24  ;;  %v6152_v14 = vsel %vm795_vm4, %v799_v1, %v6127_v6  ;;  %v6166_v18 = vadd.f32 %v5873_v4, %v430_v9  ;;  %v6169_v19 = vrot.slane %v6135_v8, 1  ;;  %v6172_v23 = vadd.f32 %v5873_v4, %v439_v10  ;;  %v5527_v60 = vld [vmem:[%s8147_s1 + $0x30] sm:$0xff]  }
  0x2c   : > { %1122 = vst.msk [vmem:[#allocation2 + $0xc8] sm:$0xff] %vm496_vm0, %v5972_v25  ;;  %1125 = vst.msk [vmem:[#allocation2 + $0x110] sm:$0xff] %vm496_vm0, %v5975_v26  ;;  %1331 = vrot.lane.b32.xlu1 %v6040_v45, %s8162_s16  ;;  %v6180_v28 = vrot.slane %v6157_v15, 7  ;;  %v6185_v29 = vadd.f32 %v5873_v4, %v440_v11  ;;  %v802_v32 = vrot.slane %v6157_v15, 1  ;;  %v6191_v33 = vrot.slane %v5961_v21, 7  ;;  %5033 = vmatpush3.bf16.msra.mxu0 %v5523_v27  ;;  %v5514_v27 = vld [vmem:[%s8147_s1 + $0x38] sm:$0xff]  }
  0x2d   : > { %1151 = vst.msk [vmem:[#allocation2 + $0xe7] sm:$0x1] %vm1146_vm6, %v8160_v3  ;;  %1150 = vst.msk [vmem:[#allocation2 + $0xb7] sm:$0x1] %vm1146_vm6, %v8160_v3  ;;  %v6197_v34 = vsel %vm546_vm5, %v6146_v13, %v566_v17  ;;  %v554_v36 = vrot.slane %v6166_v18, 7  ;;  %v6204_v38 = vsel %vm795_vm4, %v814_v16, %v6169_v19  ;;  %v6209_v41 = vrot.slane %v6172_v23, 7  ;;  %853 = vrot.lane.b32.xlu0 %v6044_v46, %s8162_s16 }
  0x2e   : > { %1611 = vst.msk [vmem:[#allocation2 + $0xb8] sm:$0x7f] %vm1604_vm3, %v5981_v30  ;;  %1609 = vst.msk [vmem:[#allocation2 + $0x88] sm:$0x7f] %vm1604_vm3, %v6002_v35  ;;  %v569_v42 = vrot.slane %v6185_v29, 7  ;;  %v6223_v43 = vrot.slane %v6166_v18, 1  ;;  %5034 = vmatprep.subr.bf16.mxu0 %v5525_v53 }
  0x2f   : > { %1152 = vst.msk [vmem:[#allocation2 + $0x117] sm:$0x1] %vm1146_vm6, %v8160_v3  ;;  %v557_v48 = vrot.slane %v5969_v24, 7  ;;  %v6234_v51 = vsel %vm546_vm5, %v6180_v28, %v554_v36  ;;  %v817_v63 = vrot.slane %v6172_v23, 1  ;;  %v6280_v7 = vrot.slane %v6185_v29, 1  ;;  %v5529_v16 = vld [vmem:[%s8147_s1 + $0x68] sm:$0xff]  }
  0x30   : > { %633 = vst.msk [vmem:[#allocation2 + $0x120] sm:$0xfe] %vm622_vm7, %v5986_v31  ;;  %631 = vst.msk [vmem:[#allocation2 + $0xf0] sm:$0xfe] %vm622_vm7, %v6008_v37  ;;  %1454 = vrot.lane.b32.xlu1 %v5975_v26, %s5729_s14  ;;  %v6253_v54 = vsel %vm546_vm5, %v6209_v41, %v569_v42  ;;  %v6257_v56 = vsel %vm795_vm4, %v802_v32, %v6223_v43  ;;  %v6283_v9 = vrot.slane %v6018_v39, 1  ;;  %v796_v10 = vrot.slane %v6021_v40, 1 }
  0x31   : > { %1610 = vst.msk [vmem:[#allocation2 + $0xa0] sm:$0xff] %vm496_vm0, %v6034_v44  ;;  %634 = vst.msk [vmem:[#allocation2 + $0x138] sm:$0xff] %vm496_vm0, %v6040_v45  ;;  %v6263_v57 = vsel %vm546_vm5, %v6191_v33, %v557_v48  ;;  %1452 = vrot.lane.b32.xlu0 %v5964_v22, %s5729_s14  ;;  %5035 = vmatpush3.bf16.msra.mxu0 %v5527_v60  ;;  %v6290_v12 = vsel %vm795_vm4, %v817_v63, %v6280_v7  ;;  %v5531_v48 = vld [vmem:[%s8147_s1 + $0x28] sm:$0xff]   ;;  %v5515_v60 = vld [vmem:[%s8147_s1 + $0x70] sm:$0xff]   ;;  %vm1263_vm10 = vcmask 522496   ;;  %vm779_vm11 = vcmask 778752  }
  0x32   : > { %1608 = vst.msk [vmem:[#allocation2 + $0x70] sm:$0xff] %vm496_vm0, %v6044_v46  ;;  %632 = vst.msk [vmem:[#allocation2 + $0x108] sm:$0xff] %vm496_vm0, %v6048_v47  ;;  %5036 = vmatprep.subr.bf16.mxu0 %v5529_v16  ;;  %v6307_v36 = vsel %vm795_vm4, %v796_v10, %v6283_v9  ;;  %vm932_vm12 = vcmask 784896   ;;  %vm1403_vm13 = vcmask 785921   ;;  %vm1082_vm14 = vcmask 1048320  }
  0x33   : > { %1115 = vst.msk [vmem:[#allocation2 + $0x20] sm:$0xff] %vm496_vm0, %v6018_v39  ;;  %1114 = vst.msk [vmem:[#allocation2 + $0x8] sm:$0xff] %vm496_vm0, %v6021_v40  ;;  %vm1080_vm15 = vcmask 1048321   ;;  %vm1987_vm1 = vcmask 523264  }
  0x34   : > { %1147 = vst.msk [vmem:[#allocation2 + $0x27] sm:$0x1] %vm1146_vm6, %v8160_v3  ;;  %1002 = vrot.lane.b32.xlu1 %v6048_v47, %s5729_s14 }
  0x35   : > { %1116 = vst.msk [vmem:[#allocation2 + $0x38] sm:$0xff] %vm496_vm0, %v6068_v49  ;;  %1117 = vst.msk [vmem:[#allocation2 + $0x50] sm:$0xff] %vm496_vm0, %v6071_v50  ;;  %1000 = vrot.lane.b32.xlu0 %v6008_v37, %s5729_s14  ;;  %v1652_v32 = vld [vmem:[#allocation2 + $0x88] sm:$0xff]  ;;  %5037 = vmatpush3.bf16.msra.mxu0 %v5531_v48  ;;  %v1658_v16 = vld [vmem:[#allocation2 + $0xb8] sm:$0xff] }
  0x36   : > { %1613 = vst.msk [vmem:[#allocation2 + $0xe8] sm:$0x7f] %vm1604_vm3, %v6080_v55  ;;  %1605 = vst.msk [vmem:[#allocation2 + $0x28] sm:$0x7f] %vm1604_vm3, %v6127_v6  ;;  %v403_v48 = vld [vmem:[%s5868_s30 + $0x88] sm:$0xff] }
  0x37   : > { %1148 = vst.msk [vmem:[#allocation2 + $0x57] sm:$0x1] %vm1146_vm6, %v8160_v3 }
  0x38   : > { %623 = vst.msk [vmem:[#allocation2 + $0x30] sm:$0xfe] %vm622_vm7, %v6075_v52  ;;  %625 = vst.msk [vmem:[#allocation2 + $0x60] sm:$0xfe] %vm622_vm7, %v6089_v58  ;;  %1168 = vrot.lane.b32.xlu1 %v6283_v9, %s8158_s15  ;;  %v1655_v10 = vld [vmem:[#allocation2 + $0xa0] sm:$0xff] }
  0x39   : > { %624 = vst.msk [vmem:[#allocation2 + $0x48] sm:$0xff] %vm496_vm0, %v6099_v61  ;;  %1612 = vst.msk [vmem:[#allocation2 + $0xd0] sm:$0xff] %vm496_vm0, %v6103_v62  ;;  %v1649_v17 = vld [vmem:[#allocation2 + $0x70] sm:$0xff]  ;;  %1166 = vrot.lane.b32.xlu0 %v6307_v36, %s8158_s15  ;;  %s8171_s15 = smov 64  }
  0x3a   : > { %626 = vst.msk [vmem:[#allocation2 + $0x78] sm:$0xff] %vm496_vm0, %v6117_v2  ;;  %1126 = vst.msk [vmem:[#allocation2 + $0x128] sm:$0xff] %vm496_vm0, %v6124_v5  ;;  %v1667_v63 = vpack.c.bf16 %v1652_v32, %v1649_v17  ;;  %v5535_v17 = vld [vmem:[%s8147_s1 + $0x20] sm:$0xff]   ;;  %v5517_v32 = vld [vmem:[%s8147_s1 + $0x68] sm:$0xff]  }
  0x3b   : > { %1127 = vst.msk [vmem:[#allocation2 + $0x140] sm:$0xff] %vm496_vm0, %v6135_v8  ;;  %1603 = vst.msk [vmem:[#allocation2 + $0x10] sm:$0xff] %vm496_vm0, %v6152_v14 }
  0x3c   : > { %1118 = vst.msk [vmem:[#allocation2 + $0x68] sm:$0xff] %vm496_vm0, %v6157_v15  ;;  %1119 = vst.msk [vmem:[#allocation2 + $0x80] sm:$0xff] %vm496_vm0, %v6166_v18  ;;  %1315 = vrot.lane.b32.xlu1 %v6117_v2, %s8162_s16 }
  0x3d   : > { %1153 = vst.msk [vmem:[#allocation2 + $0x147] sm:$0x1] %vm1146_vm6, %v8160_v3  ;;  %1149 = vst.msk [vmem:[#allocation2 + $0x87] sm:$0x1] %vm1146_vm6, %v8160_v3  ;;  %v1640_v59 = vld [vmem:[#allocation2 + $0x28] sm:$0xff]  ;;  %1313 = vrot.lane.b32.xlu0 %v6089_v58, %s8162_s16  ;;  %s5731_s16 = smov [#allocation6]  }
  0x3e   : > { %635 = vst.msk [vmem:[#allocation2 + $0x150] sm:$0xfe] %vm622_vm7, %v6146_v13  ;;  %629 = vst.msk [vmem:[#allocation2 + $0xc0] sm:$0xfe] %vm622_vm7, %v6191_v33 }
  0x3f   : > { %1615 = vst.msk [vmem:[#allocation2 + $0x118] sm:$0x7f] %vm1604_vm3, %v6169_v19  ;;  %1607 = vst.msk [vmem:[#allocation2 + $0x58] sm:$0x7f] %vm1604_vm3, %v6223_v43 }
  0x40   : > { %1128 = vst.msk [vmem:[#allocation2 + $0x158] sm:$0xff] %vm496_vm0, %v6172_v23  ;;  %636 = vst.msk [vmem:[#allocation2 + $0x168] sm:$0xff] %vm496_vm0, %v6197_v34  ;;  %1438 = vrot.lane.b32.xlu1 %v6071_v50, %s5729_s14 }
  0x41   : > { %1614 = vst.msk [vmem:[#allocation2 + $0x100] sm:$0xff] %vm496_vm0, %v6204_v38  ;;  %1129 = vst.msk [vmem:[#allocation2 + $0x170] sm:$0xff] %vm496_vm0, %v6185_v29  ;;  %1436 = vrot.lane.b32.xlu0 %v6068_v49, %s5729_s14 }
  0x42   : > { %627 = vst.msk [vmem:[#allocation2 + $0x90] sm:$0xfe] %vm622_vm7, %v6180_v28  ;;  %637 = vst.msk [vmem:[#allocation2 + $0x180] sm:$0xfe] %vm622_vm7, %v6209_v41  ;;  %v1637_v1 = vld [vmem:[#allocation2 + $0x10] sm:$0xff] }
  0x43   : > { %1154 = vst.msk [vmem:[#allocation2 + $0x177] sm:$0x1] %vm1146_vm6, %v8160_v3  ;;  %v1661_v11 = vpack.c.bf16 %v1640_v59, %v1637_v1  ;;  %v5516_v1 = vld [vmem:[%s8147_s1 + $0x30] sm:$0xff]  }
  0x44   : > { %777 = vst.msk [vmem:[#allocation2] sm:$0xff] %vm776_vm8, %v8160_v3  ;;  %778 = vst.msk [vmem:[#allocation2 + $0x18] sm:$0xff] %vm776_vm8, %v8160_v3  ;;  %986 = vrot.lane.b32.xlu1 %v6099_v61, %s5729_s14  ;;  %v5541_v61 = vld [vmem:[%s8147_s1 + $0x48] sm:$0xff]  }
  0x45   : > { %628 = vst.msk [vmem:[#allocation2 + $0xa8] sm:$0xff] %vm496_vm0, %v6234_v51  ;;  %638 = vst.msk [vmem:[#allocation2 + $0x198] sm:$0xff] %vm496_vm0, %v6253_v54  ;;  %5361 = vmatprep.mubr.msk.bf16.mxu1 %vm496_vm0, %v1661_v11  ;;  %v5533_v11 = vld [vmem:[%s8147_s1 + $0x60] sm:$0xff]   ;;  %984 = vrot.lane.b32.xlu0 %v6075_v52, %s5729_s14 }
  0x46   : > { %963 = vst.msk [vmem:[#allocation2] sm:$0x1] %vm962_vm9, %v8160_v3  ;;  %v1646_v42 = vld [vmem:[#allocation2 + $0x58] sm:$0xff]  ;;  %5038 = vmatprep.subr.bf16.mxu0 %v5533_v11  ;;  %v1670_v3 = vpack.c.bf16 %v1658_v16, %v1655_v10  ;;  %v5519_v11 = vld [vmem:[%s8147_s1 + $0x60] sm:$0xff]   ;;  %v5539_v10 = vld [vmem:[%s8147_s1 + $0x50] sm:$0xff]  }
  0x47   : > { %1606 = vst.msk [vmem:[#allocation2 + $0x40] sm:$0xff] %vm496_vm0, %v6257_v56  ;;  %630 = vst.msk [vmem:[#allocation2 + $0xd8] sm:$0xff] %vm496_vm0, %v6263_v57  ;;  %5039 = vmatpush3.bf16.msra.mxu0 %v5535_v17  ;;  %v5544_v52 = vld [vmem:[%s8147_s1] sm:$0xff]  }
  0x48   : > { %1617 = vst.msk [vmem:[#allocation2 + $0x148] sm:$0x7f] %vm1604_vm3, %v6280_v7  ;;  %1188 = vrot.lane.b32.xlu1 %v6080_v55, %s8170_s24 }
  0x49   : > { %1616 = vst.msk [vmem:[#allocation2 + $0x130] sm:$0xff] %vm496_vm0, %v6290_v12  ;;  %1186 = vrot.lane.b32.xlu0 %v6103_v62, %s8170_s24 }
  0x4c   : > { %674 = vrot.lane.b32.xlu1 %v5958_v20, %s8170_s24 }
  0x4d   : > { %672 = vrot.lane.b32.xlu0 %v5972_v25, %s8170_s24 }
  0x4e   : > { %v1643_v53 = vld [vmem:[#allocation2 + $0x40] sm:$0xff] }
  0x4f   : > { %v1664_v59 = vpack.c.bf16 %v1646_v42, %v1643_v53  ;;  %v402_v42 = vld [vmem:[%s5868_s30 + $0x80] sm:$0xff] }
  0x50   : > { %v441_v53 = vmul.f32 %v5847_v0, %v402_v42  ;;  %1335 = vrot.lane.b32.xlu1 %v6197_v34, %s8171_s15 }
  0x51   : > { %5362 = vmatmul.mubr.msk.bf16.vlgmr.msra.gmra.mxu1 %vm496_vm0, %v1664_v59  ;;  %v442_v59 = vmul.f32 %v5847_v0, %v403_v48  ;;  %1333 = vrot.lane.b32.xlu0 %v6146_v13, %s8171_s15 }
  0x52   : > { %5079 = vmatpush3.bf16.msra.mxu1 %v5514_v27  ;;  %5365 = vmatprep.mubr.msk.bf16.mxu1 %vm496_vm0, %v1667_v63  ;;  %v5518_v27 = vld [vmem:[%s8147_s1 + $0x28] sm:$0xff]   ;;  %v5538_v63 = vld [vmem:[%s8147_s1 + $0x18] sm:$0xff]   ;;  %v6356_v42 = vadd.f32 %v5873_v4, %v441_v53  ;;  %v5540_v53 = vld [vmem:[%s8147_s1 + $0x10] sm:$0xff]  }
  0x53   : > { %5080 = vmatprep.subr.bf16.mxu1 %v5515_v60  ;;  %v5537_v60 = vld [vmem:[%s8147_s1 + $0x58] sm:$0xff]   ;;  %v6359_v48 = vadd.f32 %v5873_v4, %v442_v59 }
  0x54   : > { %5040 = vmatprep.subr.bf16.mxu0 %v5537_v60  ;;  %v6370_v16 = vrot.slane %v6356_v42, 7  ;;  %1130 = vst.msk [vmem:[#allocation2 + $0x188] sm:$0xff] %vm496_vm0, %v6356_v42  ;;  %v5522_v59 = vld [vmem:[%s8147_s1 + $0x58] sm:$0xff]   ;;  %v5542_v60 = vld [vmem:[%s8147_s1 + $0x8] sm:$0xff]   ;;  %859 = vrot.lane.b32.xlu1 %v5981_v30, %s8171_s15  ;;  %v404_v30 = vld [vmem:[%s5868_s30 + $0x90] sm:$0xff] }
  0x55   : > { %v572_v17 = vrot.slane %v6359_v48, 7  ;;  %1131 = vst.msk [vmem:[#allocation2 + $0x1a0] sm:$0xff] %vm496_vm0, %v6359_v48  ;;  %5041 = vmatpush3.bf16.msra.mxu0 %v5538_v63  ;;  %v5526_v63 = vld [vmem:[%s8147_s1 + $0x50] sm:$0xff]   ;;  %857 = vrot.lane.b32.xlu0 %v6034_v44, %s8171_s15  ;;  %v405_v44 = vld [vmem:[%s5868_s30 + $0x98] sm:$0xff] }
  0x56   : > { %5081 = vmatpush3.bf16.msra.mxu1 %v5516_v1  ;;  %v5520_v1 = vld [vmem:[%s8147_s1 + $0x20] sm:$0xff]   ;;  %639 = vst.msk [vmem:[#allocation2 + $0x1b0] sm:$0xfe] %vm622_vm7, %v6370_v16  ;;  %5042 = vmatprep.subr.bf16.mxu0 %v5539_v10  ;;  %v5528_v10 = vld [vmem:[%s8147_s1 + $0x10] sm:$0xff]  }
  0x57   : > { %5082 = vmatprep.subr.bf16.mxu1 %v5517_v32  ;;  %v8169_v32 = vmov 0.0  }
  0x58   : > { %1155 = vst.msk [vmem:[#allocation2 + $0x1a7] sm:$0x1] %vm1146_vm6, %v8169_v32  ;;  %1458 = vrot.lane.b32.xlu1 %v6135_v8, %s5729_s14 }
  0x59   : > { %5366 = vmatmul.mubr.msk.bf16.gmra.mxu1 %vm496_vm0, %v1670_v3  ;;  %v6392_v3 = vsel %vm546_vm5, %v6370_v16, %v572_v17  ;;  %5043 = vmatpush3.bf16.msra.mxu0 %v5540_v53  ;;  %v5530_v17 = vld [vmem:[%s8147_s1 + $0x48] sm:$0xff]   ;;  %v5534_v53 = vld [vmem:[%s8147_s1 + $0x40] sm:$0xff]   ;;  %3064 = vst.msk [vmem:[#allocation4] sm:$0xff] %vm1987_vm1, %v8169_v32  ;;  %3168 = vst.msk [vmem:[#allocation4 + $0x8] sm:$0xff] %vm1987_vm1, %v8169_v32 }
  0x5a   : > { %5083 = vmatpush3.bf16.msra.mxu1 %v5518_v27  ;;  %640 = vst.msk [vmem:[#allocation2 + $0x1c8] sm:$0xff] %vm496_vm0, %v6392_v3  ;;  %v5524_v27 = vld [vmem:[%s8147_s1 + $0x18] sm:$0xff]   ;;  %5044 = vmatprep.subr.bf16.mxu0 %v5541_v61  ;;  %v820_v61 = vrot.slane %v6356_v42, 1 }
  0x5b   : > { %5084 = vmatprep.subr.bf16.mxu1 %v5519_v11  ;;  %v5543_v11 = vld [vmem:[%s8147_s1 + $0x40] sm:$0xff]   ;;  %1456 = vrot.lane.b32.xlu0 %v6124_v5, %s5729_s14 }
  0x5c   : > { %1006 = vrot.lane.b32.xlu1 %v6040_v45, %s5729_s14 }
  0x5d   : > { %5045 = vmatpush3.bf16.msra.mxu0 %v5542_v60 }
  0x5e   : > { %5085 = vmatpush3.bf16.msra.mxu1 %v5520_v1  ;;  %5046 = vmatprep.subr.bf16.mxu0 %v5543_v11  ;;  %v5532_v1 = vld [vmem:[%s8147_s1 + $0x8] sm:$0xff]   ;;  %v444_v11 = vmul.f32 %v5847_v0, %v405_v44 }
  0x5f   : > { %5086 = vmatprep.subr.bf16.mxu1 %v5522_v59  ;;  %v5536_v59 = vld [vmem:[%s8147_s1] sm:$0xff]   ;;  %1004 = vrot.lane.b32.xlu0 %v5986_v31, %s5729_s14 }
  0x60   : > { %1172 = vrot.lane.b32.xlu1 %v6127_v6, %s8170_s24 }
  0x61   : > { %5047 = vmatpush3.bf16.msra.mxu0 %v5544_v52 }
  0x62   : > { %5087 = vmatpush3.bf16.msra.mxu1 %v5524_v27  ;;  %v6449_v27 = vrot.slane %v6359_v48, 1 }
  0x63   : > { %5088 = vmatprep.subr.bf16.mxu1 %v5526_v63  ;;  %v443_v63 = vmul.f32 %v5847_v0, %v404_v30  ;;  %1170 = vrot.lane.b32.xlu0 %v6152_v14, %s8170_s24 }
  0x64   : > { %v6455_v60 = vsel %vm795_vm4, %v820_v61, %v6449_v27  ;;  %1619 = vst.msk [vmem:[#allocation2 + $0x178] sm:$0x7f] %vm1604_vm3, %v6449_v27  ;;  %658 = vrot.lane.b32.xlu1 %v6018_v39, %s8170_s24 }
  0x65   : > { %1618 = vst.msk [vmem:[#allocation2 + $0x160] sm:$0xff] %vm496_vm0, %v6455_v60  ;;  %v6470_v52 = vadd.f32 %v5873_v4, %v443_v63 }
  0x66   : > { %5089 = vmatpush3.bf16.msra.mxu1 %v5528_v10  ;;  %v6473_v10 = vadd.f32 %v5873_v4, %v444_v11 }
  0x67   : > { %5090 = vmatprep.subr.bf16.mxu1 %v5530_v17  ;;  %v6478_v17 = vrot.slane %v6470_v52, 7  ;;  %1132 = vst.msk [vmem:[#allocation2 + $0x1b8] sm:$0xff] %vm496_vm0, %v6470_v52  ;;  %656 = vrot.lane.b32.xlu0 %v6021_v40, %s8170_s24  ;;  %v823_v31 = vrot.slane %v6470_v52, 1  ;;  %v406_v40 = vld [vmem:[%s5868_s30 + $0xa0] sm:$0xff] }
  0x68   : > { %v575_v0 = vrot.slane %v6473_v10, 7  ;;  %1133 = vst.msk [vmem:[#allocation2 + $0x1d0] sm:$0xff] %vm496_vm0, %v6473_v10  ;;  %1319 = vrot.lane.b32.xlu1 %v6234_v51, %s8171_s15  ;;  %v6513_v45 = vrot.slane %v6473_v10, 1 }
  0x69   : > { %1156 = vst.msk [vmem:[#allocation2 + $0x1d7] sm:$0x1] %vm1146_vm6, %v8169_v32 }
  0x6a   : > { %5091 = vmatpush3.bf16.msra.mxu1 %v5532_v1  ;;  %641 = vst.msk [vmem:[#allocation2 + $0x1e0] sm:$0xfe] %vm622_vm7, %v6478_v17  ;;  %v6493_v4 = vsel %vm546_vm5, %v6478_v17, %v575_v0  ;;  %v6519_v39 = vsel %vm795_vm4, %v823_v31, %v6513_v45 }
  0x6b   : > { %5092 = vmatprep.subr.bf16.mxu1 %v5534_v53  ;;  %642 = vst.msk [vmem:[#allocation2 + $0x1f8] sm:$0xff] %vm496_vm0, %v6493_v4  ;;  %1317 = vrot.lane.b32.xlu0 %v6180_v28, %s8171_s15  ;;  %1620 = vst.msk [vmem:[#allocation2 + $0x190] sm:$0xff] %vm496_vm0, %v6519_v39 }
  0x6c   : > { %843 = vrot.lane.b32.xlu1 %v6283_v9, %s8171_s15  ;;  %1621 = vst.msk [vmem:[#allocation2 + $0x1a8] sm:$0x7f] %vm1604_vm3, %v6513_v45  ;;  %v407_v9 = vld [vmem:[%s5868_s30 + $0xa8] sm:$0xff] }
  0x6e   : > { %5093 = vmatpush3.bf16.msra.mxu1 %v5536_v59  ;;  %v6541_v59 = vld [vmem:[%s8151_s5] ss:$0 sm:$0xff] }
  0x6f   : > { %841 = vrot.lane.b32.xlu0 %v6307_v36, %s8171_s15  ;;  %v6532_v36 = vld [vmem:[%s8150_s4] ss:$0 sm:$0xff] }
  0x70   : > { %1442 = vrot.lane.b32.xlu1 %v6166_v18, %s5729_s14  ;;  %v445_v1 = vmul.f32 %v6532_v36, %v406_v40  ;;  %v446_v53 = vmul.f32 %v6532_v36, %v407_v9 }
  0x72   : > { %v6544_v61 = vadd.f32 %v6541_v59, %v445_v1  ;;  %v6547_v30 = vadd.f32 %v6541_v59, %v446_v53 }
  0x73   : > { %1440 = vrot.lane.b32.xlu0 %v6157_v15, %s5729_s14 }
  0x74   : > { %990 = vrot.lane.b32.xlu1 %v6117_v2, %s5729_s14  ;;  %v6552_v44 = vrot.slane %v6544_v61, 7  ;;  %1134 = vst.msk [vmem:[#allocation2 + $0x1e8] sm:$0xff] %vm496_vm0, %v6544_v61  ;;  %v578_v2 = vrot.slane %v6547_v30, 7  ;;  %1135 = vst.msk [vmem:[#allocation2 + $0x200] sm:$0xff] %vm496_vm0, %v6547_v30  ;;  %v826_v63 = vrot.slane %v6544_v61, 1  ;;  %v6587_v11 = vrot.slane %v6547_v30, 1 }
  0x75   : > { %1157 = vst.msk [vmem:[#allocation2 + $0x207] sm:$0x1] %vm1146_vm6, %v8169_v32 }
  0x76   : > { %643 = vst.msk [vmem:[#allocation2 + $0x210] sm:$0xfe] %vm622_vm7, %v6552_v44 }
  0x77   : > { %988 = vrot.lane.b32.xlu0 %v6089_v58, %s5729_s14  ;;  %v6567_v58 = vsel %vm546_vm5, %v6552_v44, %v578_v2  ;;  %1623 = vst.msk [vmem:[#allocation2 + $0x1d8] sm:$0x7f] %vm1604_vm3, %v6587_v11 }
  0x78   : > { %1192 = vrot.lane.b32.xlu1 %v6169_v19, %s8170_s24  ;;  %644 = vst.msk [vmem:[#allocation2 + $0x228] sm:$0xff] %vm496_vm0, %v6567_v58 }
  0x7b   : > { %1190 = vrot.lane.b32.xlu0 %v6204_v38, %s8170_s24 }
  0x7c   : > { %678 = vrot.lane.b32.xlu1 %v5975_v26, %s8170_s24  ;;  %v408_v26 = vld [vmem:[%s5868_s30 + $0xb0] sm:$0xff] }
  0x7f   : > { %676 = vrot.lane.b32.xlu0 %v5964_v22, %s8170_s24  ;;  %v6593_v22 = vsel %vm795_vm4, %v826_v63, %v6587_v11 }
  0x80   : > { %1339 = vrot.lane.b32.xlu1 %v6253_v54, %s8171_s15  ;;  %1622 = vst.msk [vmem:[#allocation2 + $0x1c0] sm:$0xff] %vm496_vm0, %v6593_v22 }
  0x83   : > { %1337 = vrot.lane.b32.xlu0 %v6209_v41, %s8171_s15 }
  0x84   : > { %863 = vrot.lane.b32.xlu1 %v6080_v55, %s8171_s15  ;;  %v409_v55 = vld [vmem:[%s5868_s30 + $0xb8] sm:$0xff] }
  0x85   : > { %v448_v0 = vmul.f32 %v6532_v36, %v409_v55 }
  0x87   : > { %861 = vrot.lane.b32.xlu0 %v6103_v62, %s8171_s15  ;;  %v447_v62 = vmul.f32 %v6532_v36, %v408_v26  ;;  %v6611_v40 = vadd.f32 %v6541_v59, %v448_v0 }
  0x88   : > { %1462 = vrot.lane.b32.xlu1 %v6185_v29, %s5729_s14 }
  0x89   : > { %v6608_v31 = vadd.f32 %v6541_v59, %v447_v62  ;;  %v581_v1 = vrot.slane %v6611_v40, 7  ;;  %1137 = vst.msk [vmem:[#allocation2 + $0x230] sm:$0xff] %vm496_vm0, %v6611_v40  ;;  %v6662_v62 = vrot.slane %v6611_v40, 1 }
  0x8a   : > { %1158 = vst.msk [vmem:[#allocation2 + $0x237] sm:$0x1] %vm1146_vm6, %v8169_v32 }
  0x8b   : > { %1460 = vrot.lane.b32.xlu0 %v6172_v23, %s5729_s14  ;;  %v6616_v9 = vrot.slane %v6608_v31, 7  ;;  %1136 = vst.msk [vmem:[#allocation2 + $0x218] sm:$0xff] %vm496_vm0, %v6608_v31  ;;  %v829_v55 = vrot.slane %v6608_v31, 1 }
  0x8c   : > { %1010 = vrot.lane.b32.xlu1 %v6197_v34, %s5729_s14  ;;  %1625 = vst.msk [vmem:[#allocation2 + $0x208] sm:$0x7f] %vm1604_vm3, %v6662_v62 }
  0x8d   : > { %645 = vst.msk [vmem:[#allocation2 + $0x240] sm:$0xfe] %vm622_vm7, %v6616_v9  ;;  %v6669_v0 = vsel %vm795_vm4, %v829_v55, %v6662_v62 }
  0x8e   : > { %1624 = vst.msk [vmem:[#allocation2 + $0x1f0] sm:$0xff] %vm496_vm0, %v6669_v0 }
  0x8f   : > { %1008 = vrot.lane.b32.xlu0 %v6146_v13, %s5729_s14  ;;  %v6631_v13 = vsel %vm546_vm5, %v6616_v9, %v581_v1  ;;  %v411_v1 = vld [vmem:[%s5868_s30 + $0xc8] sm:$0xff] }
  0x90   : > { %1176 = vrot.lane.b32.xlu1 %v6223_v43, %s8170_s24  ;;  %646 = vst.msk [vmem:[#allocation2 + $0x258] sm:$0xff] %vm496_vm0, %v6631_v13 }
  0x92   : > { %v669_v34 = vpop.permute.xlu1 %668 }
  0x93   : > { %1174 = vrot.lane.b32.xlu0 %v6257_v56, %s8170_s24  ;;  %752 = vst.msk [vmem:[#allocation2 + $0xc0] sm:$0xff] %vm653_vm2, %v669_v34  ;;  %v1185_v53 = vpop.permute.xlu0 %1184 }
  0x94   : > { %662 = vrot.lane.b32.xlu1 %v6071_v50, %s8170_s24  ;;  %1272 = vst.msk [vmem:[#allocation2 + $0xe0] sm:$0x7f] %vm1263_vm10, %v1185_v53  ;;  %v450_v53 = vmul.f32 %v6532_v36, %v411_v1 }
  0x96   : > { %v671_v2 = vpop.permute.xlu1 %670 }
  0x97   : > { %660 = vrot.lane.b32.xlu0 %v6068_v49, %s8170_s24  ;;  %753 = vst.msk [vmem:[#allocation2 + $0xd8] sm:$0xff] %vm653_vm2, %v671_v2  ;;  %v1330_v63 = vpop.permute.xlu0 %1329 }
  0x98   : > { %783 = vst.msk [vmem:[#allocation2 + $0xdf] sm:$0x1] %vm779_vm11, %v8169_v32  ;;  %1323 = vrot.lane.b32.xlu1 %v6263_v57, %s8171_s15 }
  0x9a   : > { %v856_v50 = vpop.permute.xlu1 %855 }
  0x9b   : > { %1321 = vrot.lane.b32.xlu0 %v6191_v33, %s8171_s15  ;;  %939 = vst.msk [vmem:[#allocation2 + $0xd8] sm:$0x7f] %vm932_vm12, %v856_v50  ;;  %v1183_v49 = vpop.permute.xlu0 %1182 }
  0x9c   : > { %847 = vrot.lane.b32.xlu1 %v6127_v6, %s8171_s15  ;;  %1271 = vst.msk [vmem:[#allocation2 + $0xc8] sm:$0xff] %vm653_vm2, %v1183_v49 }
  0x9d   : > { %1302 = vst.msk [vmem:[#allocation2 + $0xc8] sm:$0x1] %vm779_vm11, %v8169_v32 }
  0x9e   : > { %1412 = vst.msk [vmem:[#allocation2 + $0xc8] sm:$0xfe] %vm1403_vm13, %v1330_v63  ;;  %v1332_v26 = vpop.permute.xlu1 %1331  ;;  %v6691_v63 = vadd.f32 %v6541_v59, %v450_v53 }
  0x9f   : > { %845 = vrot.lane.b32.xlu0 %v6152_v14, %s8171_s15  ;;  %1413 = vst.msk [vmem:[#allocation2 + $0xe0] sm:$0xff] %vm776_vm8, %v1332_v26  ;;  %v854_v6 = vpop.permute.xlu0 %853 }
  0xa0   : > { %1446 = vrot.lane.b32.xlu1 %v5969_v24, %s5729_s14  ;;  %938 = vst.msk [vmem:[#allocation2 + $0xc0] sm:$0xff] %vm776_vm8, %v854_v6  ;;  %v410_v24 = vld [vmem:[%s5868_s30 + $0xc0] sm:$0xff] }
  0xa1   : > { %967 = vst.msk [vmem:[#allocation2 + $0xc0] sm:$0x1] %vm962_vm9, %v8169_v32  ;;  %v449_v34 = vmul.f32 %v6532_v36, %v410_v24 }
  0xa2   : > { %v1455_v14 = vpop.permute.xlu1 %1454  ;;  %1139 = vst.msk [vmem:[#allocation2 + $0x260] sm:$0xff] %vm496_vm0, %v6691_v63 }
  0xa3   : > { %1444 = vrot.lane.b32.xlu0 %v5961_v21, %s5729_s14  ;;  %1535 = vst.msk [vmem:[#allocation2 + $0xe0] sm:$0xff] %vm1082_vm14, %v1455_v14  ;;  %v1453_v2 = vpop.permute.xlu0 %1452  ;;  %v6688_v21 = vadd.f32 %v6541_v59, %v449_v34 }
  0xa4   : > { %994 = vrot.lane.b32.xlu1 %v6234_v51, %s5729_s14  ;;  %1534 = vst.msk [vmem:[#allocation2 + $0xc8] sm:$0xff] %vm1082_vm14, %v1453_v2  ;;  %v584_v51 = vrot.slane %v6691_v63, 7 }
  0xa5   : > { %v6697_v49 = vrot.slane %v6688_v21, 7  ;;  %1138 = vst.msk [vmem:[#allocation2 + $0x248] sm:$0xff] %vm496_vm0, %v6688_v21 }
  0xa6   : > { %v1003_v50 = vpop.permute.xlu1 %1002  ;;  %1159 = vst.msk [vmem:[#allocation2 + $0x267] sm:$0x1] %vm1146_vm6, %v8169_v32 }
  0xa7   : > { %992 = vrot.lane.b32.xlu0 %v6180_v28, %s5729_s14  ;;  %1091 = vst.msk [vmem:[#allocation2 + $0xd8] sm:$0xff] %vm1082_vm14, %v1003_v50  ;;  %v1001_v26 = vpop.permute.xlu0 %1000  ;;  %v6713_v28 = vsel %vm546_vm5, %v6697_v49, %v584_v51 }
  0xa8   : > { %1196 = vrot.lane.b32.xlu1 %v6280_v7, %s8170_s24  ;;  %1090 = vst.msk [vmem:[#allocation2 + $0xc0] sm:$0xfe] %vm1080_vm15, %v1001_v26 }
  0xa9   : > { %647 = vst.msk [vmem:[#allocation2 + $0x270] sm:$0xfe] %vm622_vm7, %v6697_v49 }
  0xaa   : > { %v1169_v55 = vpop.permute.xlu1 %1168  ;;  %v2001_v6 = vld [vmem:[#allocation2 + $0xe0] sm:$0xff]  ;;  %648 = vst.msk [vmem:[#allocation2 + $0x288] sm:$0xff] %vm496_vm0, %v6713_v28 }
  0xab   : > { %1194 = vrot.lane.b32.xlu0 %v6290_v12, %s8170_s24  ;;  %1264 = vst.msk [vmem:[#allocation2 + $0x20] sm:$0x7f] %vm1263_vm10, %v1169_v55  ;;  %v1167_v14 = vpop.permute.xlu0 %1166  ;;  %v1998_v24 = vld [vmem:[#allocation2 + $0xc8] sm:$0xff]  ;;  %v832_v55 = vrot.slane %v6688_v21, 1 }
  0xac   : > { %682 = vrot.lane.b32.xlu1 %v6135_v8, %s8170_s24  ;;  %1262 = vst.msk [vmem:[#allocation2 + $0x8] sm:$0xff] %vm653_vm2, %v1167_v14  ;;  %v2022_v1 = vpack.c.bf16 %v2001_v6, %v1998_v24  ;;  %v6742_v6 = vrot.slane %v6691_v63, 1 }
  0xad   : > { %1298 = vst.msk [vmem:[#allocation2 + $0x8] sm:$0x1] %vm779_vm11, %v8169_v32 }
  0xae   : > { %v1316_v34 = vpop.permute.xlu1 %1315  ;;  %v2000_v53 = vld [vmem:[#allocation2 + $0xd8] sm:$0xff]  ;;  %2221 = vmatprep.mubr.bf16.mxu1 %v2022_v1  ;;  %1627 = vst.msk [vmem:[#allocation2 + $0x238] sm:$0x7f] %vm1604_vm3, %v6742_v6  ;;  %v412_v1 = vld [vmem:[%s5868_s30 + $0xd0] sm:$0xff] }
  0xaf   : > { %680 = vrot.lane.b32.xlu0 %v6124_v5, %s8170_s24  ;;  %1405 = vst.msk [vmem:[#allocation2 + $0x20] sm:$0xff] %vm776_vm8, %v1316_v34  ;;  %v1314_v2 = vpop.permute.xlu0 %1313  ;;  %v1997_v8 = vld [vmem:[#allocation2 + $0xc0] sm:$0xff]  ;;  %v413_v34 = vld [vmem:[%s5868_s30 + $0xd8] sm:$0xff] }
  0xb0   : > { %1343 = vrot.lane.b32.xlu1 %v6392_v3, %s8171_s15  ;;  %1404 = vst.msk [vmem:[#allocation2 + $0x8] sm:$0xfe] %vm1403_vm13, %v1314_v2  ;;  %v2021_v50 = vpack.c.bf16 %v2000_v53, %v1997_v8  ;;  %v451_v53 = vmul.f32 %v6532_v36, %v412_v1  ;;  %v452_v2 = vmul.f32 %v6532_v36, %v413_v34 }
  0xb2   : > { %v1439_v51 = vpop.permute.xlu1 %1438  ;;  %2222 = vmatmul.mubr.bf16.vlgmr.msra.gmra.mxu1 %v2021_v50 }
  0xb3   : > { %1341 = vrot.lane.b32.xlu0 %v6370_v16, %s8171_s15  ;;  %1527 = vst.msk [vmem:[#allocation2 + $0x20] sm:$0xff] %vm1082_vm14, %v1439_v51  ;;  %v1437_v5 = vpop.permute.xlu0 %1436 }
  0xb4   : > { %867 = vrot.lane.b32.xlu1 %v6169_v19, %s8171_s15  ;;  %1526 = vst.msk [vmem:[#allocation2 + $0x8] sm:$0xff] %vm1082_vm14, %v1437_v5  ;;  %v6749_v19 = vsel %vm795_vm4, %v832_v55, %v6742_v6  ;;  %v6766_v5 = vadd.f32 %v6541_v59, %v451_v53 }
  0xb5   : > { %1626 = vst.msk [vmem:[#allocation2 + $0x220] sm:$0xff] %vm496_vm0, %v6749_v19 }
  0xb6   : > { %v987_v26 = vpop.permute.xlu1 %986  ;;  %1140 = vst.msk [vmem:[#allocation2 + $0x278] sm:$0xff] %vm496_vm0, %v6766_v5 }
  0xb7   : > { %865 = vrot.lane.b32.xlu0 %v6204_v38, %s8171_s15  ;;  %1083 = vst.msk [vmem:[#allocation2 + $0x18] sm:$0xff] %vm1082_vm14, %v987_v26  ;;  %v985_v14 = vpop.permute.xlu0 %984  ;;  %v6769_v26 = vadd.f32 %v6541_v59, %v452_v2 }
  0xb8   : > { %1466 = vrot.lane.b32.xlu1 %v6359_v48, %s5729_s14  ;;  %1081 = vst.msk [vmem:[#allocation2] sm:$0xfe] %vm1080_vm15, %v985_v14 }
  0xb9   : > { %1141 = vst.msk [vmem:[#allocation2 + $0x290] sm:$0xff] %vm496_vm0, %v6769_v26 }
  0xba   : > { %v1189_v38 = vpop.permute.xlu1 %1188  ;;  %v1639_v24 = vld [vmem:[#allocation2 + $0x20] sm:$0xff]  ;;  %1160 = vst.msk [vmem:[#allocation2 + $0x297] sm:$0x1] %vm1146_vm6, %v8169_v32 }
  0xbb   : > { %1464 = vrot.lane.b32.xlu0 %v6356_v42, %s5729_s14  ;;  %1274 = vst.msk [vmem:[#allocation2 + $0x110] sm:$0x7f] %vm1263_vm10, %v1189_v38  ;;  %v1187_v8 = vpop.permute.xlu0 %1186  ;;  %v1636_v50 = vld [vmem:[#allocation2 + $0x8] sm:$0xff]  ;;  %v587_v38 = vrot.slane %v6769_v26, 7 }
  0xbc   : > { %1014 = vrot.lane.b32.xlu1 %v6253_v54, %s5729_s14  ;;  %1273 = vst.msk [vmem:[#allocation2 + $0xf8] sm:$0xff] %vm653_vm2, %v1187_v8  ;;  %v1660_v51 = vpack.c.bf16 %v1639_v24, %v1636_v50  ;;  %v6777_v54 = vrot.slane %v6766_v5, 7  ;;  %v5545_v8 = vld [vmem:[%s8147_s1 + $0x78] sm:$0xff]   ;;  %v5547_v50 = vld [vmem:[%s8147_s1 + $0x70] sm:$0xff]  }
  0xbd   : > { %1303 = vst.msk [vmem:[#allocation2 + $0xf8] sm:$0x1] %vm779_vm11, %v8169_v32  ;;  %5124 = vmatprep.subr.bf16.mxu1 %v5545_v8 }
  0xbe   : > { %v675_v55 = vpop.permute.xlu1 %674  ;;  %v1638_v14 = vld [vmem:[#allocation2 + $0x18] sm:$0xff]  ;;  %1859 = vmatprep.mubr.bf16.mxu0 %v1660_v51  ;;  %649 = vst.msk [vmem:[#allocation2 + $0x2a0] sm:$0xfe] %vm622_vm7, %v6777_v54  ;;  %v6795_v34 = vsel %vm546_vm5, %v6777_v54, %v587_v38  ;;  %v5548_v51 = vld [vmem:[%s8147_s1 + $0x30] sm:$0xff]   ;;  %v5549_v38 = vld [vmem:[%s8147_s1 + $0x88] sm:$0xff]  }
  0xbf   : > { %1012 = vrot.lane.b32.xlu0 %v6209_v41, %s5729_s14  ;;  %755 = vst.msk [vmem:[#allocation2 + $0x108] sm:$0xff] %vm653_vm2, %v675_v55  ;;  %v673_v24 = vpop.permute.xlu0 %672  ;;  %v1635_v41 = vld [vmem:[#allocation2] sm:$0xff]  ;;  %v6836_v55 = vrot.slane %v6769_v26, 1  ;;  %5369 = vmatprep.subr.bf16.mxu0 %v5549_v38 }
  0xc0   : > { %784 = vst.msk [vmem:[#allocation2 + $0x10f] sm:$0x1] %vm779_vm11, %v8169_v32  ;;  %1180 = vrot.lane.b32.xlu1 %v6002_v35, %s8170_s24  ;;  %v1659_v1 = vpack.c.bf16 %v1638_v14, %v1635_v41 }
  0xc1   : > { %754 = vst.msk [vmem:[#allocation2 + $0xf0] sm:$0xff] %vm653_vm2, %v673_v24  ;;  %v5550_v24 = vld [vmem:[%s8147_s1 + $0x68] sm:$0xff]  }
  0xc2   : > { %v1336_v53 = vpop.permute.xlu1 %1335  ;;  %650 = vst.msk [vmem:[#allocation2 + $0x2b8] sm:$0xff] %vm496_vm0, %v6795_v34  ;;  %1860 = vmatmul.mubr.bf16.vlgmr.msra.gmra.mxu0 %v1659_v1  ;;  %v5551_v1 = vld [vmem:[%s8147_s1 + $0x28] sm:$0xff]  }
  0xc3   : > { %1178 = vrot.lane.b32.xlu0 %v6044_v46, %s8170_s24  ;;  %1415 = vst.msk [vmem:[#allocation2 + $0x110] sm:$0xff] %vm776_vm8, %v1336_v53  ;;  %v1334_v35 = vpop.permute.xlu0 %1333  ;;  %v414_v53 = vld [vmem:[%s5868_s30 + $0xe0] sm:$0xff]  ;;  %5370 = vmatpush3.bf16.msra.mxu0 %v5549_v38 }
  0xc4   : > { %666 = vrot.lane.b32.xlu1 %v6166_v18, %s8170_s24  ;;  %1414 = vst.msk [vmem:[#allocation2 + $0xf8] sm:$0xfe] %vm1403_vm13, %v1334_v35  ;;  %v5546_v18 = vld [vmem:[%s8147_s1 + $0x38] sm:$0xff]   ;;  %v453_v35 = vmul.f32 %v6532_v36, %v414_v53 }
  0xc5   : > { %5125 = vmatpush3.bf16.msra.mxu1 %v5546_v18  ;;  %1629 = vst.msk [vmem:[#allocation2 + $0x268] sm:$0x7f] %vm1604_vm3, %v6836_v55  ;;  %v5552_v18 = vld [vmem:[%s8147_s1 + $0x80] sm:$0xff]  }
  0xc6   : > { %v860_v2 = vpop.permute.xlu1 %859  ;;  %5126 = vmatprep.subr.bf16.mxu1 %v5547_v50  ;;  %v6875_v50 = vadd.f32 %v6541_v59, %v453_v35  ;;  %5371 = vmatprep.subr.bf16.mxu0 %v5552_v18  ;;  %v5556_v35 = vld [vmem:[%s8147_s1 + $0x18] sm:$0xff]  }
  0xc7   : > { %664 = vrot.lane.b32.xlu0 %v6157_v15, %s8170_s24  ;;  %941 = vst.msk [vmem:[#allocation2 + $0x108] sm:$0x7f] %vm932_vm12, %v860_v2  ;;  %v858_v46 = vpop.permute.xlu0 %857  ;;  %v415_v2 = vld [vmem:[%s5868_s30 + $0xe8] sm:$0xff]  ;;  %5372 = vmatpush3.bf16.msra.mxu0 %v5552_v18 }
  0xc8   : > { %1327 = vrot.lane.b32.xlu1 %v6048_v47, %s8171_s15  ;;  %940 = vst.msk [vmem:[#allocation2 + $0xf0] sm:$0xff] %vm776_vm8, %v858_v46  ;;  %v454_v8 = vmul.f32 %v6532_v36, %v415_v2  ;;  %v5560_v18 = vld [vmem:[%s8147_s1 + $0x8] sm:$0xff]  }
  0xc9   : > { %968 = vst.msk [vmem:[#allocation2 + $0xf0] sm:$0x1] %vm962_vm9, %v8169_v32  ;;  %5127 = vmatpush3.bf16.msra.mxu1 %v5548_v51  ;;  %v5554_v51 = vld [vmem:[%s8147_s1 + $0x20] sm:$0xff]  }
  0xca   : > { %v1459_v15 = vpop.permute.xlu1 %1458  ;;  %5128 = vmatprep.subr.bf16.mxu1 %v5550_v24  ;;  %1142 = vst.msk [vmem:[#allocation2 + $0x2a8] sm:$0xff] %vm496_vm0, %v6875_v50 }
  0xcb   : > { %1325 = vrot.lane.b32.xlu0 %v6008_v37, %s8171_s15  ;;  %1537 = vst.msk [vmem:[#allocation2 + $0x110] sm:$0xff] %vm1082_vm14, %v1459_v15 }
  0xcc   : > { %851 = vrot.lane.b32.xlu1 %v6223_v43, %s8171_s15  ;;  %v835_v43 = vrot.slane %v6766_v5, 1 }
  0xcd   : > { %v1457_v47 = vpop.permute.xlu0 %1456  ;;  %5129 = vmatpush3.bf16.msra.mxu1 %v5551_v1 }
  0xce   : > { %1536 = vst.msk [vmem:[#allocation2 + $0xf8] sm:$0xff] %vm1082_vm14, %v1457_v47  ;;  %v1007_v37 = vpop.permute.xlu1 %1006  ;;  %v5553_v47 = vld [vmem:[%s8147_s1 + $0x60] sm:$0xff]  }
  0xcf   : > { %849 = vrot.lane.b32.xlu0 %v6257_v56, %s8171_s15  ;;  %1093 = vst.msk [vmem:[#allocation2 + $0x108] sm:$0xff] %vm1082_vm14, %v1007_v37  ;;  %v6843_v56 = vsel %vm795_vm4, %v835_v43, %v6836_v55  ;;  %v6885_v43 = vadd.f32 %v6541_v59, %v454_v8  ;;  %5130 = vmatprep.subr.bf16.mxu1 %v5553_v47  ;;  %v5558_v8 = vld [vmem:[%s8147_s1 + $0x10] sm:$0xff]   ;;  %v6949_v47 = vld [vmem:[%s8147_s1 + $0x88] sm:$0xff]  }
  0xd0   : > { %1450 = vrot.lane.b32.xlu1 %v5958_v20, %s5729_s14  ;;  %1628 = vst.msk [vmem:[#allocation2 + $0x250] sm:$0xff] %vm496_vm0, %v6843_v56  ;;  %5381 = vmatprep.subr.bf16.mxu0 %v6949_v47 }
  0xd1   : > { %v1005_v14 = vpop.permute.xlu0 %1004  ;;  %v590_v24 = vrot.slane %v6885_v43, 7  ;;  %1143 = vst.msk [vmem:[#allocation2 + $0x2c0] sm:$0xff] %vm496_vm0, %v6885_v43  ;;  %5131 = vmatpush3.bf16.msra.mxu1 %v5554_v51 }
  0xd2   : > { %1092 = vst.msk [vmem:[#allocation2 + $0xf0] sm:$0xfe] %vm1080_vm15, %v1005_v14  ;;  %v1173_v20 = vpop.permute.xlu1 %1172  ;;  %v2007_v41 = vld [vmem:[#allocation2 + $0x110] sm:$0xff]  ;;  %v6889_v14 = vrot.slane %v6875_v50, 7 }
  0xd3   : > { %1448 = vrot.lane.b32.xlu0 %v5972_v25, %s5729_s14  ;;  %1266 = vst.msk [vmem:[#allocation2 + $0x50] sm:$0x7f] %vm1263_vm10, %v1173_v20 }
  0xd4   : > { %998 = vrot.lane.b32.xlu1 %v6263_v57, %s5729_s14  ;;  %651 = vst.msk [vmem:[#allocation2 + $0x2d0] sm:$0xfe] %vm622_vm7, %v6889_v14  ;;  %v6912_v53 = vsel %vm546_vm5, %v6889_v14, %v590_v24  ;;  %vm3118_vm7 = vcmask 1048064  }
  0xd5   : > { %v1171_v46 = vpop.permute.xlu0 %1170  ;;  %v2004_v25 = vld [vmem:[#allocation2 + $0xf8] sm:$0xff]  ;;  %1161 = vst.msk [vmem:[#allocation2 + $0x2c7] sm:$0x1] %vm1146_vm6, %v8169_v32 }
  0xd6   : > { %1265 = vst.msk [vmem:[#allocation2 + $0x38] sm:$0xff] %vm653_vm2, %v1171_v46  ;;  %v2025_v15 = vpack.c.bf16 %v2007_v41, %v2004_v25  ;;  %v659_v57 = vpop.permute.xlu1 %658  ;;  %v2006_v37 = vld [vmem:[#allocation2 + $0x108] sm:$0xff]  ;;  %v5555_v41 = vld [vmem:[%s8147_s1 + $0x58] sm:$0xff]   ;;  %v5557_v46 = vld [vmem:[%s8147_s1 + $0x50] sm:$0xff]  }
  0xd7   : > { %1299 = vst.msk [vmem:[#allocation2 + $0x38] sm:$0x1] %vm779_vm11, %v8169_v32  ;;  %996 = vrot.lane.b32.xlu0 %v6191_v33, %s5729_s14  ;;  %5132 = vmatprep.subr.bf16.mxu1 %v5555_v41 }
  0xd8   : > { %2229 = vmatprep.mubr.bf16.mxu1 %v2025_v15  ;;  %747 = vst.msk [vmem:[#allocation2 + $0x48] sm:$0xff] %vm653_vm2, %v659_v57  ;;  %1200 = vrot.lane.b32.xlu1 %v6449_v27, %s8170_s24 }
  0xd9   : > { %v657_v33 = vpop.permute.xlu0 %656  ;;  %780 = vst.msk [vmem:[#allocation2 + $0x4f] sm:$0x1] %vm779_vm11, %v8169_v32  ;;  %v2003_v38 = vld [vmem:[#allocation2 + $0xf0] sm:$0xff]  ;;  %5133 = vmatpush3.bf16.msra.mxu1 %v5556_v35  ;;  %v417_v35 = vld [vmem:[%s5868_s30 + $0xf8] sm:$0xff] }
  0xda   : > { %746 = vst.msk [vmem:[#allocation2 + $0x30] sm:$0xff] %vm653_vm2, %v657_v33  ;;  %v2024_v20 = vpack.c.bf16 %v2006_v37, %v2003_v38  ;;  %v1320_v1 = vpop.permute.xlu1 %1319  ;;  %5134 = vmatprep.subr.bf16.mxu1 %v5557_v46  ;;  %v5562_v37 = vld [vmem:[%s8147_s1 + $0x40] sm:$0xff]   ;;  %v6966_v38 = vrot.slane %v6885_v43, 1 }
  0xdb   : > { %1198 = vrot.lane.b32.xlu0 %v6455_v60, %s8170_s24  ;;  %1407 = vst.msk [vmem:[#allocation2 + $0x50] sm:$0xff] %vm776_vm8, %v1320_v1  ;;  %v5563_v33 = vld [vmem:[%s8147_s1] sm:$0xff]   ;;  %v416_v1 = vld [vmem:[%s5868_s30 + $0xf0] sm:$0xff] }
  0xdc   : > { %2230 = vmatmul.mubr.bf16.gmra.mxu1 %v2024_v20  ;;  %652 = vst.msk [vmem:[#allocation2 + $0x2e8] sm:$0xff] %vm496_vm0, %v6912_v53  ;;  %686 = vrot.lane.b32.xlu1 %v6185_v29, %s8170_s24  ;;  %v5559_v29 = vld [vmem:[%s8147_s1 + $0x48] sm:$0xff]  }
  0xdd   : > { %v1318_v2 = vpop.permute.xlu0 %1317  ;;  %5135 = vmatpush3.bf16.msra.mxu1 %v5558_v8  ;;  %1631 = vst.msk [vmem:[#allocation2 + $0x298] sm:$0x7f] %vm1604_vm3, %v6966_v38  ;;  %v456_v8 = vmul.f32 %v6532_v36, %v417_v35 }
  0xde   : > { %1406 = vst.msk [vmem:[#allocation2 + $0x38] sm:$0xfe] %vm1403_vm13, %v1318_v2  ;;  %v844_v25 = vpop.permute.xlu1 %843  ;;  %5136 = vmatprep.subr.bf16.mxu1 %v5559_v29 }
  0xdf   : > { %684 = vrot.lane.b32.xlu0 %v6172_v23, %s8170_s24  ;;  %933 = vst.msk [vmem:[#allocation2 + $0x48] sm:$0x7f] %vm932_vm12, %v844_v25  ;;  %v455_v25 = vmul.f32 %v6532_v36, %v416_v1 }
  0xe0   : > { %1347 = vrot.lane.b32.xlu1 %v6493_v4, %s8171_s15  ;;  %3119 = vst.msk [vmem:[#allocation4] sm:$0xff] %vm3118_vm7, %v8169_v32 }
  0xe1   : > { %v842_v15 = vpop.permute.xlu0 %841  ;;  %5137 = vmatpush3.bf16.msra.mxu1 %v5560_v18  ;;  %v6994_v18 = vadd.f32 %v6541_v59, %v455_v25 }
  0xe2   : > { %931 = vst.msk [vmem:[#allocation2 + $0x30] sm:$0xff] %vm776_vm8, %v842_v15  ;;  %v1443_v23 = vpop.permute.xlu1 %1442  ;;  %5138 = vmatprep.subr.bf16.mxu1 %v5562_v37 }
  0xe3   : > { %964 = vst.msk [vmem:[#allocation2 + $0x30] sm:$0x1] %vm962_vm9, %v8169_v32  ;;  %1345 = vrot.lane.b32.xlu0 %v6478_v17, %s8171_s15 }
  0xe4   : > { %1529 = vst.msk [vmem:[#allocation2 + $0x50] sm:$0xff] %vm1082_vm14, %v1443_v23  ;;  %871 = vrot.lane.b32.xlu1 %v6280_v7, %s8171_s15  ;;  %v838_v7 = vrot.slane %v6875_v50, 1 }
  0xe5   : > { %v1441_v57 = vpop.permute.xlu0 %1440  ;;  %5139 = vmatpush3.bf16.msra.mxu1 %v5563_v33  ;;  %1144 = vst.msk [vmem:[#allocation2 + $0x2d8] sm:$0xff] %vm496_vm0, %v6994_v18 }
  0xe6   : > { %1528 = vst.msk [vmem:[#allocation2 + $0x38] sm:$0xff] %vm1082_vm14, %v1441_v57  ;;  %v991_v51 = vpop.permute.xlu1 %990 }
  0xe7   : > { %869 = vrot.lane.b32.xlu0 %v6290_v12, %s8171_s15  ;;  %1085 = vst.msk [vmem:[#allocation2 + $0x48] sm:$0xff] %vm1082_vm14, %v991_v51  ;;  %v6973_v12 = vsel %vm795_vm4, %v838_v7, %v6966_v38 }
  0xe8   : > { %1470 = vrot.lane.b32.xlu1 %v6473_v10, %s5729_s14  ;;  %1630 = vst.msk [vmem:[#allocation2 + $0x280] sm:$0xff] %vm496_vm0, %v6973_v12 }
  0xe9   : > { %v989_v24 = vpop.permute.xlu0 %988 }
  0xea   : > { %1084 = vst.msk [vmem:[#allocation2 + $0x30] sm:$0xfe] %vm1080_vm15, %v989_v24  ;;  %v1193_v20 = vpop.permute.xlu1 %1192  ;;  %v1163_v24 = vrot.slane %v6994_v18, 1 }
  0xeb   : > { %1468 = vrot.lane.b32.xlu0 %v6470_v52, %s5729_s14  ;;  %v1645_v41 = vld [vmem:[#allocation2 + $0x50] sm:$0xff]  ;;  %1276 = vst.msk [vmem:[#allocation2 + $0x140] sm:$0x7f] %vm1263_vm10, %v1193_v20 }
  0xec   : > { %1018 = vrot.lane.b32.xlu1 %v6392_v3, %s5729_s14  ;;  %v6997_v3 = vadd.f32 %v6541_v59, %v456_v8 }
  0xed   : > { %v1191_v2 = vpop.permute.xlu0 %1190  ;;  %v1642_v46 = vld [vmem:[#allocation2 + $0x38] sm:$0xff] }
  0xee   : > { %1275 = vst.msk [vmem:[#allocation2 + $0x128] sm:$0xff] %vm653_vm2, %v1191_v2  ;;  %v1663_v15 = vpack.c.bf16 %v1645_v41, %v1642_v46  ;;  %v679_v29 = vpop.permute.xlu1 %678  ;;  %v1644_v23 = vld [vmem:[#allocation2 + $0x48] sm:$0xff]  ;;  %v7036_v20 = vrot.slane %v6997_v3, 1 }
  0xef   : > { %1304 = vst.msk [vmem:[#allocation2 + $0x128] sm:$0x1] %vm779_vm11, %v8169_v32  ;;  %1016 = vrot.lane.b32.xlu0 %v6370_v16, %s5729_s14 }
  0xf0   : > { %1867 = vmatprep.mubr.bf16.mxu0 %v1663_v15  ;;  %757 = vst.msk [vmem:[#allocation2 + $0x138] sm:$0xff] %vm653_vm2, %v679_v29  ;;  %1204 = vrot.lane.b32.xlu1 %v6513_v45, %s8170_s24 }
  0xf1   : > { %v677_v36 = vpop.permute.xlu0 %676  ;;  %785 = vst.msk [vmem:[#allocation2 + $0x13f] sm:$0x1] %vm779_vm11, %v8169_v32  ;;  %v1641_v57 = vld [vmem:[#allocation2 + $0x30] sm:$0xff] }
  0xf2   : > { %1145 = vst.msk [vmem:[#allocation2 + $0x2f0] sm:$0xff] %vm496_vm0, %v6997_v3  ;;  %v1662_v16 = vpack.c.bf16 %v1644_v23, %v1641_v57  ;;  %v1340_v59 = vpop.permute.xlu1 %1339 }
  0xf3   : > { %756 = vst.msk [vmem:[#allocation2 + $0x120] sm:$0xff] %vm653_vm2, %v677_v36  ;;  %1202 = vrot.lane.b32.xlu0 %v6519_v39, %s8170_s24 }
  0xf4   : > { %1162 = vst.msk [vmem:[#allocation2 + $0x2f7] sm:$0x1] %vm1146_vm6, %v8169_v32  ;;  %1868 = vmatmul.mubr.bf16.gmra.mxu0 %v1662_v16  ;;  %690 = vrot.lane.b32.xlu1 %v6359_v48, %s8170_s24  ;;  %vm3066_vm6 = vcmask 516096  }
  0xf5   : > { %1417 = vst.msk [vmem:[#allocation2 + $0x140] sm:$0xff] %vm776_vm8, %v1340_v59  ;;  %v1338_v37 = vpop.permute.xlu0 %1337 }
  0xf6   : > { %1416 = vst.msk [vmem:[#allocation2 + $0x128] sm:$0xfe] %vm1403_vm13, %v1338_v37  ;;  %v864_v51 = vpop.permute.xlu1 %863 }
  0xf7   : > { %688 = vrot.lane.b32.xlu0 %v6356_v42, %s8170_s24  ;;  %943 = vst.msk [vmem:[#allocation2 + $0x138] sm:$0x7f] %vm932_vm12, %v864_v51 }
  0xf8   : > { %1351 = vrot.lane.b32.xlu1 %v6567_v58, %s8171_s15  ;;  %1633 = vst.msk [vmem:[#allocation2 + $0x2c8] sm:$0x7f] %vm1604_vm3, %v7036_v20 }
  0xf9   : > { %v862_v33 = vpop.permute.xlu0 %861  ;;  %3328 = vst.msk [vmem:[#allocation4 + $0x18] sm:$0x1] %vm3066_vm6, %v8169_v32  ;;  %3067 = vst.msk [vmem:[#allocation4 + $0x28] sm:$0x1] %vm3066_vm6, %v8169_v32 }
  0xfa   : > { %942 = vst.msk [vmem:[#allocation2 + $0x120] sm:$0xff] %vm776_vm8, %v862_v33  ;;  %v1463_v48 = vpop.permute.xlu1 %1462 }
  0xfb   : > { %969 = vst.msk [vmem:[#allocation2 + $0x120] sm:$0x1] %vm962_vm9, %v8169_v32  ;;  %1349 = vrot.lane.b32.xlu0 %v6552_v44, %s8171_s15 }
  0xfc   : > { %1539 = vst.msk [vmem:[#allocation2 + $0x140] sm:$0xff] %vm1082_vm14, %v1463_v48  ;;  %875 = vrot.lane.b32.xlu1 %v6449_v27, %s8171_s15  ;;  %v7043_v27 = vsel %vm795_vm4, %v1163_v24, %v7036_v20  ;;  %vm3183_vm4 = vcmask 1040896  }
  0xfd   : > { %v1461_v7 = vpop.permute.xlu0 %1460  ;;  %1632 = vst.msk [vmem:[#allocation2 + $0x2b0] sm:$0xff] %vm496_vm0, %v7043_v27 }
  0xfe   : > { %1538 = vst.msk [vmem:[#allocation2 + $0x128] sm:$0xff] %vm1082_vm14, %v1461_v7  ;;  %v1011_v42 = vpop.permute.xlu1 %1010 }
  0xff   : > { %873 = vrot.lane.b32.xlu0 %v6455_v60, %s8171_s15  ;;  %1095 = vst.msk [vmem:[#allocation2 + $0x138] sm:$0xff] %vm1082_vm14, %v1011_v42 }
 0x100   : > { %1474 = vrot.lane.b32.xlu1 %v6547_v30, %s5729_s14  ;;  %3184 = vst.msk [vmem:[#allocation4 + $0x8] sm:$0x1] %vm3183_vm4, %v8169_v32 }
 0x101   : > { %v1009_v41 = vpop.permute.xlu0 %1008  ;;  %3068 = vst.msk [vmem:[#allocation4 + $0x50] sm:$0x1] %vm3066_vm6, %v8169_v32  ;;  %3069 = vst.msk [vmem:[#allocation4 + $0x78] sm:$0x1] %vm3066_vm6, %v8169_v32 }
 0x102   : > { %1094 = vst.msk [vmem:[#allocation2 + $0x120] sm:$0xfe] %vm1080_vm15, %v1009_v41  ;;  %v1177_v60 = vpop.permute.xlu1 %1176 }
 0x103   : > { %1472 = vrot.lane.b32.xlu0 %v6544_v61, %s5729_s14  ;;  %v2013_v1 = vld [vmem:[#allocation2 + $0x140] sm:$0xff]  ;;  %1268 = vst.msk [vmem:[#allocation2 + $0x80] sm:$0x7f] %vm1263_vm10, %v1177_v60 }
 0x104   : > { %1022 = vrot.lane.b32.xlu1 %v6493_v4, %s5729_s14  ;;  %3070 = vst.msk [vmem:[#allocation4 + $0xa0] sm:$0x1] %vm3066_vm6, %v8169_v32  ;;  %3071 = vst.msk [vmem:[#allocation4 + $0xc8] sm:$0x1] %vm3066_vm6, %v8169_v32 }
 0x105   : > { %v1175_v35 = vpop.permute.xlu0 %1174  ;;  %v2010_v2 = vld [vmem:[#allocation2 + $0x128] sm:$0xff]  ;;  %3072 = vst.msk [vmem:[#allocation4 + $0xf0] sm:$0x1] %vm3066_vm6, %v8169_v32  ;;  %3073 = vst.msk [vmem:[#allocation4 + $0x118] sm:$0x1] %vm3066_vm6, %v8169_v32 }
 0x106   : > { %1267 = vst.msk [vmem:[#allocation2 + $0x68] sm:$0xff] %vm653_vm2, %v1175_v35  ;;  %v2028_v46 = vpack.c.bf16 %v2013_v1, %v2010_v2  ;;  %v663_v25 = vpop.permute.xlu1 %662  ;;  %v2012_v8 = vld [vmem:[#allocation2 + $0x138] sm:$0xff] }
 0x107   : > { %1300 = vst.msk [vmem:[#allocation2 + $0x68] sm:$0x1] %vm779_vm11, %v8169_v32  ;;  %1020 = vrot.lane.b32.xlu0 %v6478_v17, %s5729_s14  ;;  %v5565_v35 = vld [vmem:[%s8147_s1 + $0x78] sm:$0xff]  }
 0x108   : > { %2237 = vmatprep.mubr.bf16.mxu1 %v2028_v46  ;;  %749 = vst.msk [vmem:[#allocation2 + $0x78] sm:$0xff] %vm653_vm2, %v663_v25  ;;  %1208 = vrot.lane.b32.xlu1 %v6587_v11, %s8170_s24 }
 0x109   : > { %v661_v15 = vpop.permute.xlu0 %660  ;;  %781 = vst.msk [vmem:[#allocation2 + $0x7f] sm:$0x1] %vm779_vm11, %v8169_v32  ;;  %v2009_v4 = vld [vmem:[#allocation2 + $0x120] sm:$0xff]  ;;  %5170 = vmatprep.subr.bf16.mxu1 %v5565_v35 }
 0x10a   : > { %748 = vst.msk [vmem:[#allocation2 + $0x60] sm:$0xff] %vm653_vm2, %v661_v15  ;;  %v2027_v29 = vpack.c.bf16 %v2012_v8, %v2009_v4  ;;  %v1324_v17 = vpop.permute.xlu1 %1323 }
 0x10b   : > { %1206 = vrot.lane.b32.xlu0 %v6593_v22, %s8170_s24  ;;  %1409 = vst.msk [vmem:[#allocation2 + $0x80] sm:$0xff] %vm776_vm8, %v1324_v17 }
 0x10c   : > { %2238 = vmatmul.mubr.bf16.gmra.mxu1 %v2027_v29  ;;  %694 = vrot.lane.b32.xlu1 %v6473_v10, %s8170_s24  ;;  %3329 = vst.msk [vmem:[#allocation4 + $0x40] sm:$0x1] %vm3066_vm6, %v8169_v32  ;;  %3330 = vst.msk [vmem:[#allocation4 + $0x68] sm:$0x1] %vm3066_vm6, %v8169_v32 }
 0x10d   : > { %v1322_v23 = vpop.permute.xlu0 %1321  ;;  %3331 = vst.msk [vmem:[#allocation4 + $0x90] sm:$0x1] %vm3066_vm6, %v8169_v32  ;;  %3332 = vst.msk [vmem:[#allocation4 + $0xb8] sm:$0x1] %vm3066_vm6, %v8169_v32 }
 0x10e   : > { %1408 = vst.msk [vmem:[#allocation2 + $0x68] sm:$0xfe] %vm1403_vm13, %v1322_v23  ;;  %v848_v36 = vpop.permute.xlu1 %847 }
 0x10f   : > { %692 = vrot.lane.b32.xlu0 %v6470_v52, %s8170_s24  ;;  %935 = vst.msk [vmem:[#allocation2 + $0x78] sm:$0x7f] %vm932_vm12, %v848_v36 }
 0x110   : > { %1355 = vrot.lane.b32.xlu1 %v6631_v13, %s8171_s15  ;;  %3333 = vst.msk [vmem:[#allocation4 + $0xe0] sm:$0x1] %vm3066_vm6, %v8169_v32  ;;  %3334 = vst.msk [vmem:[#allocation4 + $0x108] sm:$0x1] %vm3066_vm6, %v8169_v32 }
 0x111   : > { %v846_v57 = vpop.permute.xlu0 %845  ;;  %3335 = vst.msk [vmem:[#allocation4 + $0x130] sm:$0x1] %vm3066_vm6, %v8169_v32  ;;  %vm3110_vm6 = vcmask 523265  }
 0x112   : > { %934 = vst.msk [vmem:[#allocation2 + $0x60] sm:$0xff] %vm776_vm8, %v846_v57  ;;  %v1447_v10 = vpop.permute.xlu1 %1446 }
 0x113   : > { %965 = vst.msk [vmem:[#allocation2 + $0x60] sm:$0x1] %vm962_vm9, %v8169_v32  ;;  %1353 = vrot.lane.b32.xlu0 %v6616_v9, %s8171_s15 }
 0x114   : > { %1531 = vst.msk [vmem:[#allocation2 + $0x80] sm:$0xff] %vm1082_vm14, %v1447_v10  ;;  %879 = vrot.lane.b32.xlu1 %v6513_v45, %s8171_s15 }
 0x115   : > { %v1445_v16 = vpop.permute.xlu0 %1444 }
 0x116   : > { %1530 = vst.msk [vmem:[#allocation2 + $0x68] sm:$0xff] %vm1082_vm14, %v1445_v16  ;;  %v995_v52 = vpop.permute.xlu1 %994 }
 0x117   : > { %877 = vrot.lane.b32.xlu0 %v6519_v39, %s8171_s15  ;;  %1087 = vst.msk [vmem:[#allocation2 + $0x78] sm:$0xff] %vm1082_vm14, %v995_v52 }
 0x118   : > { %1478 = vrot.lane.b32.xlu1 %v6611_v40, %s5729_s14 }
 0x119   : > { %v993_v59 = vpop.permute.xlu0 %992 }
 0x11a   : > { %1086 = vst.msk [vmem:[#allocation2 + $0x60] sm:$0xfe] %vm1080_vm15, %v993_v59  ;;  %v1197_v37 = vpop.permute.xlu1 %1196 }
 0x11b   : > { %1476 = vrot.lane.b32.xlu0 %v6608_v31, %s5729_s14  ;;  %v1651_v51 = vld [vmem:[#allocation2 + $0x80] sm:$0xff]  ;;  %1278 = vst.msk [vmem:[#allocation2 + $0x170] sm:$0x7f] %vm1263_vm10, %v1197_v37 }
 0x11c   : > { %1026 = vrot.lane.b32.xlu1 %v6567_v58, %s5729_s14 }
 0x11d   : > { %v1195_v45 = vpop.permute.xlu0 %1194  ;;  %v1648_v39 = vld [vmem:[#allocation2 + $0x68] sm:$0xff] }
 0x11e   : > { %1277 = vst.msk [vmem:[#allocation2 + $0x158] sm:$0xff] %vm653_vm2, %v1195_v45  ;;  %v1666_v33 = vpack.c.bf16 %v1651_v51, %v1648_v39  ;;  %v683_v48 = vpop.permute.xlu1 %682  ;;  %v1650_v7 = vld [vmem:[#allocation2 + $0x78] sm:$0xff]  ;;  %v1999_v45 = vld [vmem:[#allocation2 + $0xd0] sm:$0xff]  ;;  %v2002_v39 = vld [vmem:[#allocation2 + $0xe8] sm:$0xff] }
 0x11f   : > { %1305 = vst.msk [vmem:[#allocation2 + $0x158] sm:$0x1] %vm779_vm11, %v8169_v32  ;;  %1024 = vrot.lane.b32.xlu0 %v6552_v44, %s5729_s14 }
 0x120   : > { %1875 = vmatprep.mubr.bf16.mxu0 %v1666_v33  ;;  %759 = vst.msk [vmem:[#allocation2 + $0x168] sm:$0xff] %vm653_vm2, %v683_v48  ;;  %1212 = vrot.lane.b32.xlu1 %v6662_v62, %s8170_s24 }
 0x121   : > { %v681_v42 = vpop.permute.xlu0 %680  ;;  %786 = vst.msk [vmem:[#allocation2 + $0x16f] sm:$0x1] %vm779_vm11, %v8169_v32  ;;  %v1647_v58 = vld [vmem:[#allocation2 + $0x60] sm:$0xff] }
 0x122   : > { %758 = vst.msk [vmem:[#allocation2 + $0x150] sm:$0xff] %vm653_vm2, %v681_v42  ;;  %v1665_v24 = vpack.c.bf16 %v1650_v7, %v1647_v58  ;;  %v1344_v44 = vpop.permute.xlu1 %1343  ;;  %v2023_v42 = vpack.c.bf16 %v2002_v39, %v1999_v45  ;;  %v5567_v39 = vld [vmem:[%s8147_s1 + $0x70] sm:$0xff]  }
 0x123   : > { %1210 = vrot.lane.b32.xlu0 %v6669_v0, %s8170_s24  ;;  %1419 = vst.msk [vmem:[#allocation2 + $0x170] sm:$0xff] %vm776_vm8, %v1344_v44  ;;  %v2005_v44 = vld [vmem:[#allocation2 + $0x100] sm:$0xff] }
 0x124   : > { %1876 = vmatmul.mubr.bf16.gmra.mxu0 %v1665_v24  ;;  %698 = vrot.lane.b32.xlu1 %v6547_v30, %s8170_s24 }
 0x125   : > { %v1342_v41 = vpop.permute.xlu0 %1341 }
 0x126   : > { %1418 = vst.msk [vmem:[#allocation2 + $0x158] sm:$0xfe] %vm1403_vm13, %v1342_v41  ;;  %v868_v60 = vpop.permute.xlu1 %867  ;;  %v2008_v41 = vld [vmem:[#allocation2 + $0x118] sm:$0xff] }
 0x127   : > { %696 = vrot.lane.b32.xlu0 %v6544_v61, %s8170_s24  ;;  %945 = vst.msk [vmem:[#allocation2 + $0x168] sm:$0x7f] %vm932_vm12, %v868_v60  ;;  %v2011_v60 = vld [vmem:[#allocation2 + $0x130] sm:$0xff] }
 0x128   : > { %1359 = vrot.lane.b32.xlu1 %v6713_v28, %s8171_s15 }
 0x129   : > { %v866_v1 = vpop.permute.xlu0 %865 }
 0x12a   : > { %944 = vst.msk [vmem:[#allocation2 + $0x150] sm:$0xff] %vm776_vm8, %v866_v1  ;;  %v1467_v61 = vpop.permute.xlu1 %1466  ;;  %v2014_v1 = vld [vmem:[#allocation2 + $0x148] sm:$0xff] }
 0x12b   : > { %970 = vst.msk [vmem:[#allocation2 + $0x150] sm:$0x1] %vm962_vm9, %v8169_v32  ;;  %1357 = vrot.lane.b32.xlu0 %v6697_v49, %s8171_s15 }
 0x12c   : > { %1541 = vst.msk [vmem:[#allocation2 + $0x170] sm:$0xff] %vm1082_vm14, %v1467_v61  ;;  %883 = vrot.lane.b32.xlu1 %v6587_v11, %s8171_s15  ;;  %v2026_v61 = vpack.c.bf16 %v2008_v41, %v2005_v44  ;;  %v5569_v44 = vld [vmem:[%s8147_s1 + $0x68] sm:$0xff]  }
 0x12d   : > { %v1465_v30 = vpop.permute.xlu0 %1464 }
 0x12e   : > { %1540 = vst.msk [vmem:[#allocation2 + $0x158] sm:$0xff] %vm1082_vm14, %v1465_v30  ;;  %v1015_v2 = vpop.permute.xlu1 %1014 }
 0x12f   : > { %881 = vrot.lane.b32.xlu0 %v6593_v22, %s8171_s15  ;;  %1097 = vst.msk [vmem:[#allocation2 + $0x168] sm:$0xff] %vm1082_vm14, %v1015_v2 }
 0x130   : > { %1482 = vrot.lane.b32.xlu1 %v6691_v63, %s5729_s14 }
 0x131   : > { %v1013_v46 = vpop.permute.xlu0 %1012 }
 0x132   : > { %1096 = vst.msk [vmem:[#allocation2 + $0x150] sm:$0xfe] %vm1080_vm15, %v1013_v46  ;;  %v1181_v25 = vpop.permute.xlu1 %1180 }
 0x133   : > { %1480 = vrot.lane.b32.xlu0 %v6688_v21, %s5729_s14  ;;  %v2019_v8 = vld [vmem:[#allocation2 + $0x170] sm:$0xff]  ;;  %1270 = vst.msk [vmem:[#allocation2 + $0xb0] sm:$0x7f] %vm1263_vm10, %v1181_v25  ;;  %v2017_v25 = vld [vmem:[#allocation2 + $0x160] sm:$0xff] }
 0x134   : > { %1030 = vrot.lane.b32.xlu1 %v6631_v13, %s5729_s14 }
 0x135   : > { %v1179_v11 = vpop.permute.xlu0 %1178  ;;  %v2016_v22 = vld [vmem:[#allocation2 + $0x158] sm:$0xff] }
 0x136   : > { %1269 = vst.msk [vmem:[#allocation2 + $0x98] sm:$0xff] %vm653_vm2, %v1179_v11  ;;  %v2031_v15 = vpack.c.bf16 %v2019_v8, %v2016_v22  ;;  %v667_v4 = vpop.permute.xlu1 %666  ;;  %v2018_v29 = vld [vmem:[#allocation2 + $0x168] sm:$0xff]  ;;  %v2020_v8 = vld [vmem:[#allocation2 + $0x178] sm:$0xff]  ;;  %v2355_v11 = vld [vmem:[#allocation2 + $0x190] sm:$0xff] }
 0x137   : > { %1301 = vst.msk [vmem:[#allocation2 + $0x98] sm:$0x1] %vm779_vm11, %v8169_v32  ;;  %1028 = vrot.lane.b32.xlu0 %v6616_v9, %s5729_s14  ;;  %v2358_v22 = vld [vmem:[#allocation2 + $0x1a8] sm:$0xff] }
 0x138   : > { %2245 = vmatprep.mubr.bf16.mxu1 %v2031_v15  ;;  %751 = vst.msk [vmem:[#allocation2 + $0xa8] sm:$0xff] %vm653_vm2, %v667_v4  ;;  %1216 = vrot.lane.b32.xlu1 %v6742_v6, %s8170_s24  ;;  %v5579_v4 = vld [vmem:[%s8147_s1 + $0x88] sm:$0xff]  }
 0x139   : > { %v665_v17 = vpop.permute.xlu0 %664  ;;  %782 = vst.msk [vmem:[#allocation2 + $0xaf] sm:$0x1] %vm779_vm11, %v8169_v32  ;;  %v2015_v13 = vld [vmem:[#allocation2 + $0x150] sm:$0xff] }
 0x13a   : > { %750 = vst.msk [vmem:[#allocation2 + $0x90] sm:$0xff] %vm653_vm2, %v665_v17  ;;  %v2030_v23 = vpack.c.bf16 %v2018_v29, %v2015_v13  ;;  %v1328_v9 = vpop.permute.xlu1 %1327  ;;  %v2379_v17 = vpack.c.bf16 %v2358_v22, %v2355_v11  ;;  %v5575_v11 = vld [vmem:[%s8147_s1 + $0x50] sm:$0xff]  }
 0x13b   : > { %1214 = vrot.lane.b32.xlu0 %v6749_v19, %s8170_s24  ;;  %1411 = vst.msk [vmem:[#allocation2 + $0xb0] sm:$0xff] %vm776_vm8, %v1328_v9  ;;  %v2361_v9 = vld [vmem:[#allocation2 + $0x1c0] sm:$0xff] }
 0x13c   : > { %2246 = vmatmul.mubr.bf16.gmra.mxu1 %v2030_v23  ;;  %702 = vrot.lane.b32.xlu1 %v6611_v40, %s8170_s24 }
 0x13d   : > { %v1326_v36 = vpop.permute.xlu0 %1325 }
 0x13e   : > { %1410 = vst.msk [vmem:[#allocation2 + $0x98] sm:$0xfe] %vm1403_vm13, %v1326_v36  ;;  %v852_v57 = vpop.permute.xlu1 %851  ;;  %v2364_v36 = vld [vmem:[#allocation2 + $0x1d8] sm:$0xff] }
 0x13f   : > { %700 = vrot.lane.b32.xlu0 %v6608_v31, %s8170_s24  ;;  %937 = vst.msk [vmem:[#allocation2 + $0xa8] sm:$0x7f] %vm932_vm12, %v852_v57 }
 0x140   : > { %1363 = vrot.lane.b32.xlu1 %v6795_v34, %s8171_s15 }
 0x141   : > { %v850_v10 = vpop.permute.xlu0 %849 }
 0x142   : > { %936 = vst.msk [vmem:[#allocation2 + $0x90] sm:$0xff] %vm776_vm8, %v850_v10  ;;  %v1451_v40 = vpop.permute.xlu1 %1450  ;;  %v2367_v10 = vld [vmem:[#allocation2 + $0x1f0] sm:$0xff] }
 0x143   : > { %966 = vst.msk [vmem:[#allocation2 + $0x90] sm:$0x1] %vm962_vm9, %v8169_v32  ;;  %1361 = vrot.lane.b32.xlu0 %v6777_v54, %s8171_s15 }
 0x144   : > { %1533 = vst.msk [vmem:[#allocation2 + $0xb0] sm:$0xff] %vm1082_vm14, %v1451_v40  ;;  %887 = vrot.lane.b32.xlu1 %v6662_v62, %s8171_s15  ;;  %v2370_v40 = vld [vmem:[#allocation2 + $0x208] sm:$0xff] }
 0x145   : > { %v1449_v16 = vpop.permute.xlu0 %1448 }
 0x146   : > { %1532 = vst.msk [vmem:[#allocation2 + $0x98] sm:$0xff] %vm1082_vm14, %v1449_v16  ;;  %v999_v31 = vpop.permute.xlu1 %998 }
 0x147   : > { %885 = vrot.lane.b32.xlu0 %v6669_v0, %s8171_s15  ;;  %1089 = vst.msk [vmem:[#allocation2 + $0xa8] sm:$0xff] %vm1082_vm14, %v999_v31 }
 0x148   : > { %1486 = vrot.lane.b32.xlu1 %v6769_v26, %s5729_s14 }
 0x149   : > { %v997_v52 = vpop.permute.xlu0 %996 }
 0x14a   : > { %1088 = vst.msk [vmem:[#allocation2 + $0x90] sm:$0xfe] %vm1080_vm15, %v997_v52  ;;  %v1201_v59 = vpop.permute.xlu1 %1200 }
 0x14b   : > { %1484 = vrot.lane.b32.xlu0 %v6766_v5, %s5729_s14  ;;  %v1657_v37 = vld [vmem:[#allocation2 + $0xb0] sm:$0xff]  ;;  %1280 = vst.msk [vmem:[#allocation2 + $0x1a0] sm:$0x7f] %vm1263_vm10, %v1201_v59 }
 0x14c   : > { %1034 = vrot.lane.b32.xlu1 %v6713_v28, %s5729_s14 }
 0x14d   : > { %v1199_v62 = vpop.permute.xlu0 %1198  ;;  %v1654_v0 = vld [vmem:[#allocation2 + $0x98] sm:$0xff] }
 0x14e   : > { %1279 = vst.msk [vmem:[#allocation2 + $0x188] sm:$0xff] %vm653_vm2, %v1199_v62  ;;  %v1669_v51 = vpack.c.bf16 %v1657_v37, %v1654_v0  ;;  %v687_v33 = vpop.permute.xlu1 %686  ;;  %v1656_v48 = vld [vmem:[#allocation2 + $0xa8] sm:$0xff]  ;;  %v2385_v37 = vpack.c.bf16 %v2370_v40, %v2367_v10  ;;  %v982_v0 = vrot.slane %v6997_v3, 7 }
 0x14f   : > { %1306 = vst.msk [vmem:[#allocation2 + $0x188] sm:$0x1] %vm779_vm11, %v8169_v32  ;;  %1032 = vrot.lane.b32.xlu0 %v6697_v49, %s5729_s14 }
 0x150   : > { %1883 = vmatprep.mubr.bf16.mxu0 %v1669_v51  ;;  %761 = vst.msk [vmem:[#allocation2 + $0x198] sm:$0xff] %vm653_vm2, %v687_v33  ;;  %1220 = vrot.lane.b32.xlu1 %v6836_v55, %s8170_s24  ;;  %v5566_v51 = vld [vmem:[%s8147_s1 + $0x38] sm:$0xff]   ;;  %v5582_v33 = vld [vmem:[%s8147_s1 + $0x80] sm:$0xff]  }
 0x151   : > { %v685_v7 = vpop.permute.xlu0 %684  ;;  %787 = vst.msk [vmem:[#allocation2 + $0x19f] sm:$0x1] %vm779_vm11, %v8169_v32  ;;  %v1653_v28 = vld [vmem:[#allocation2 + $0x90] sm:$0xff] }
 0x152   : > { %760 = vst.msk [vmem:[#allocation2 + $0x180] sm:$0xff] %vm653_vm2, %v685_v7  ;;  %v1668_v58 = vpack.c.bf16 %v1656_v48, %v1653_v28  ;;  %v1348_v49 = vpop.permute.xlu1 %1347  ;;  %v2373_v7 = vld [vmem:[#allocation2 + $0x220] sm:$0xff]  ;;  %v2376_v28 = vld [vmem:[#allocation2 + $0x238] sm:$0xff] }
 0x153   : > { %1218 = vrot.lane.b32.xlu0 %v6843_v56, %s8170_s24  ;;  %1421 = vst.msk [vmem:[#allocation2 + $0x1a0] sm:$0xff] %vm776_vm8, %v1348_v49  ;;  %v2711_v49 = vld [vmem:[#allocation2 + $0x250] sm:$0xff]  ;;  %v2388_v41 = vpack.c.bf16 %v2376_v28, %v2373_v7 }
 0x154   : > { %1884 = vmatmul.mubr.bf16.gmra.mxu0 %v1668_v58  ;;  %706 = vrot.lane.b32.xlu1 %v6691_v63, %s8170_s24  ;;  %v2029_v63 = vpack.c.bf16 %v2014_v1, %v2011_v60  ;;  %v5568_v58 = vld [vmem:[%s8147_s1 + $0x30] sm:$0xff]  }
 0x155   : > { %v1346_v24 = vpop.permute.xlu0 %1345  ;;  %5373 = vmatprep.mubr.msk.bf16.mxu0 %vm496_vm0, %v2023_v42 }
 0x156   : > { %1420 = vst.msk [vmem:[#allocation2 + $0x188] sm:$0xfe] %vm1403_vm13, %v1346_v24  ;;  %v872_v35 = vpop.permute.xlu1 %871  ;;  %v2714_v24 = vld [vmem:[#allocation2 + $0x268] sm:$0xff] }
 0x157   : > { %704 = vrot.lane.b32.xlu0 %v6688_v21, %s8170_s24  ;;  %947 = vst.msk [vmem:[#allocation2 + $0x198] sm:$0x7f] %vm932_vm12, %v872_v35  ;;  %v5564_v21 = vld [vmem:[%s8147_s1 + $0x80] sm:$0xff]   ;;  %v2735_v1 = vpack.c.bf16 %v2714_v24, %v2711_v49 }
 0x158   : > { %1367 = vrot.lane.b32.xlu1 %v6912_v53, %s8171_s15 }
 0x159   : > { %v870_v30 = vpop.permute.xlu0 %869 }
 0x15a   : > { %946 = vst.msk [vmem:[#allocation2 + $0x180] sm:$0xff] %vm776_vm8, %v870_v30  ;;  %v1471_v2 = vpop.permute.xlu1 %1470 }
 0x15b   : > { %971 = vst.msk [vmem:[#allocation2 + $0x180] sm:$0x1] %vm962_vm9, %v8169_v32  ;;  %1365 = vrot.lane.b32.xlu0 %v6889_v14, %s8171_s15 }
 0x15c   : > { %5374 = vmatmul.mubr.msk.bf16.vlgmr.msra.gmra.mxu0 %vm496_vm0, %v2026_v61  ;;  %1543 = vst.msk [vmem:[#allocation2 + $0x1a0] sm:$0xff] %vm1082_vm14, %v1471_v2  ;;  %891 = vrot.lane.b32.xlu1 %v6742_v6, %s8171_s15  ;;  %v2032_v6 = vpack.c.bf16 %v2020_v8, %v2017_v25  ;;  %v5571_v61 = vld [vmem:[%s8147_s1 + $0x60] sm:$0xff]   ;;  %v2720_v2 = vld [vmem:[#allocation2 + $0x298] sm:$0xff] }
 0x15d   : > { %v1469_v46 = vpop.permute.xlu0 %1468  ;;  %5377 = vmatprep.mubr.msk.bf16.mxu0 %vm496_vm0, %v2029_v63  ;;  %5382 = vmatpush3.bf16.msra.mxu0 %v6949_v47  ;;  %v2717_v63 = vld [vmem:[#allocation2 + $0x280] sm:$0xff] }
 0x15e   : > { %1542 = vst.msk [vmem:[#allocation2 + $0x188] sm:$0xff] %vm1082_vm14, %v1469_v46  ;;  %v1019_v15 = vpop.permute.xlu1 %1018  ;;  %5383 = vmatprep.subr.bf16.mxu0 %v5564_v21  ;;  %v2738_v25 = vpack.c.bf16 %v2720_v2, %v2717_v63 }
 0x15f   : > { %889 = vrot.lane.b32.xlu0 %v6749_v19, %s8171_s15  ;;  %1099 = vst.msk [vmem:[#allocation2 + $0x198] sm:$0xff] %vm1082_vm14, %v1019_v15 }
 0x160   : > { %1490 = vrot.lane.b32.xlu1 %v6885_v43, %s5729_s14 }
 0x161   : > { %v1017_v29 = vpop.permute.xlu0 %1016  ;;  %5384 = vmatpush3.bf16.msra.mxu0 %v5564_v21  ;;  %v5572_v21 = vld [vmem:[%s8147_s1 + $0x20] sm:$0xff]  }
 0x162   : > { %1098 = vst.msk [vmem:[#allocation2 + $0x180] sm:$0xfe] %vm1080_vm15, %v1017_v29  ;;  %v1205_v19 = vpop.permute.xlu1 %1204  ;;  %5393 = vmatprep.subr.bf16.mxu0 %v5579_v4 }
 0x163   : > { %1488 = vrot.lane.b32.xlu0 %v6875_v50, %s5729_s14  ;;  %v2357_v47 = vld [vmem:[#allocation2 + $0x1a0] sm:$0xff]  ;;  %1282 = vst.msk [vmem:[#allocation2 + $0x1d0] sm:$0x7f] %vm1263_vm10, %v1205_v19 }
 0x164   : > { %5378 = vmatmul.mubr.msk.bf16.gmra.mxu0 %vm496_vm0, %v2032_v6  ;;  %1038 = vrot.lane.b32.xlu1 %v6795_v34, %s5729_s14  ;;  %v2382_v34 = vpack.c.bf16 %v2364_v36, %v2361_v9  ;;  %v2726_v6 = vld [vmem:[#allocation2 + $0x2c8] sm:$0xff]  ;;  %v2729_v19 = vld [vmem:[#allocation2 + $0x2e0] sm:$0xff]  ;;  %v7341_v36 = vpop.f32.mrf.mxu1 }
 0x165   : > { %v1203_v13 = vpop.permute.xlu0 %1202  ;;  %v2354_v23 = vld [vmem:[#allocation2 + $0x188] sm:$0xff]  ;;  %5385 = vmatprep.mubr.msk.bf16.mxu0 %vm496_vm0, %v2379_v17 }
 0x166   : > { %1281 = vst.msk [vmem:[#allocation2 + $0x1b8] sm:$0xff] %vm653_vm2, %v1203_v13  ;;  %v2378_v57 = vpack.c.bf16 %v2357_v47, %v2354_v23  ;;  %v691_v16 = vpop.permute.xlu1 %690  ;;  %v2356_v31 = vld [vmem:[#allocation2 + $0x198] sm:$0xff]  ;;  %v5576_v13 = vld [vmem:[%s8147_s1 + $0x10] sm:$0xff]   ;;  %v5577_v9 = vld [vmem:[%s8147_s1 + $0x48] sm:$0xff]  }
 0x167   : > { %1307 = vst.msk [vmem:[#allocation2 + $0x1b8] sm:$0x1] %vm779_vm11, %v8169_v32  ;;  %1036 = vrot.lane.b32.xlu0 %v6777_v54, %s5729_s14  ;;  %v7253_v54 = vrot.slane %v6994_v18, 7  ;;  %v2732_v47 = vld [vmem:[#allocation2 + $0x2f8] sm:$0xff] }
 0x168   : > { %2577 = vmatprep.mubr.bf16.mxu1 %v2378_v57  ;;  %763 = vst.msk [vmem:[#allocation2 + $0x1c8] sm:$0xff] %vm653_vm2, %v691_v16  ;;  %1224 = vrot.lane.b32.xlu1 %v6966_v38, %s8170_s24  ;;  %v2744_v57 = vpack.c.bf16 %v2732_v47, %v2729_v19  ;;  %v5578_v16 = vld [vmem:[%s8147_s1 + $0x8] sm:$0xff]  }
 0x169   : > { %v689_v52 = vpop.permute.xlu0 %688  ;;  %788 = vst.msk [vmem:[#allocation2 + $0x1cf] sm:$0x1] %vm779_vm11, %v8169_v32  ;;  %v2353_v59 = vld [vmem:[#allocation2 + $0x180] sm:$0xff]  ;;  %v7275_v42 = vsel %vm546_vm5, %v7253_v54, %v982_v0 }
 0x16a   : > { %762 = vst.msk [vmem:[#allocation2 + $0x1b0] sm:$0xff] %vm653_vm2, %v689_v52  ;;  %v2377_v62 = vpack.c.bf16 %v2356_v31, %v2353_v59  ;;  %v1352_v45 = vpop.permute.xlu1 %1351  ;;  %v1926_v52 = vpop.f32.mrf.mxu1 }
 0x16b   : > { %1222 = vrot.lane.b32.xlu0 %v6973_v12, %s8170_s24  ;;  %1423 = vst.msk [vmem:[#allocation2 + $0x1d0] sm:$0xff] %vm776_vm8, %v1352_v45 }
 0x16c   : > { %2578 = vmatmul.mubr.bf16.vlgmr.msra.gmra.mxu1 %v2377_v62  ;;  %5386 = vmatmul.mubr.msk.bf16.vlgmr.msra.gmra.mxu0 %vm496_vm0, %v2382_v34  ;;  %v5580_v34 = vld [vmem:[%s8147_s1 + $0x40] sm:$0xff]  }
 0x16d   : > { %v1350_v48 = vpop.permute.xlu0 %1349  ;;  %710 = vrot.lane.b32.xlu1 %v6769_v26, %s8170_s24  ;;  %5389 = vmatprep.mubr.msk.bf16.mxu0 %vm496_vm0, %v2385_v37  ;;  %v5581_v37 = vld [vmem:[%s8147_s1] sm:$0xff]  }
 0x16e   : > { %1422 = vst.msk [vmem:[#allocation2 + $0x1b8] sm:$0xfe] %vm1403_vm13, %v1350_v48  ;;  %5171 = vmatpush3.bf16.msra.mxu1 %v5566_v51  ;;  %5394 = vmatpush3.bf16.msra.mxu0 %v5579_v4  ;;  %v876_v26 = vpop.permute.xlu1 %875  ;;  %v2723_v4 = vld [vmem:[#allocation2 + $0x2b0] sm:$0xff]  ;;  %v7367_v51 = vpop.f32.mrf.mxu1 }
 0x16f   : > { %708 = vrot.lane.b32.xlu0 %v6766_v5, %s8170_s24  ;;  %5172 = vmatprep.subr.bf16.mxu1 %v5567_v39  ;;  %949 = vst.msk [vmem:[#allocation2 + $0x1c8] sm:$0x7f] %vm932_vm12, %v876_v26  ;;  %v5570_v5 = vld [vmem:[%s8147_s1 + $0x28] sm:$0xff]  }
 0x170   : > { %5395 = vmatprep.subr.bf16.mxu0 %v5582_v33 }
 0x171   : > { %v874_v60 = vpop.permute.xlu0 %873  ;;  %1371 = vrot.lane.b32.xlu1 %v7275_v42, %s8171_s15 }
 0x172   : > { %948 = vst.msk [vmem:[#allocation2 + $0x1b0] sm:$0xff] %vm776_vm8, %v874_v60  ;;  %5173 = vmatpush3.bf16.msra.mxu1 %v5568_v58  ;;  %5396 = vmatpush3.bf16.msra.mxu0 %v5582_v33  ;;  %v1475_v35 = vpop.permute.xlu1 %1474  ;;  %v1929_v58 = vpop.f32.mrf.mxu1 }
 0x173   : > { %972 = vst.msk [vmem:[#allocation2 + $0x1b0] sm:$0x1] %vm962_vm9, %v8169_v32  ;;  %1369 = vrot.lane.b32.xlu0 %v7253_v54, %s8171_s15  ;;  %5174 = vmatprep.subr.bf16.mxu1 %v5569_v44 }
 0x174   : > { %1545 = vst.msk [vmem:[#allocation2 + $0x1d0] sm:$0xff] %vm1082_vm14, %v1475_v35  ;;  %5390 = vmatmul.mubr.msk.bf16.gmra.mxu0 %vm496_vm0, %v2388_v41 }
 0x175   : > { %v1473_v30 = vpop.permute.xlu0 %1472  ;;  %895 = vrot.lane.b32.xlu1 %v6836_v55, %s8171_s15  ;;  %5397 = vmatprep.mubr.msk.bf16.mxu0 %vm496_vm0, %v2735_v1  ;;  %v5573_v55 = vld [vmem:[%s8147_s1 + $0x58] sm:$0xff]  }
 0x176   : > { %1544 = vst.msk [vmem:[#allocation2 + $0x1b8] sm:$0xff] %vm1082_vm14, %v1473_v30  ;;  %5175 = vmatpush3.bf16.msra.mxu1 %v5570_v5  ;;  %v1023_v46 = vpop.permute.xlu1 %1022 }
 0x177   : > { %893 = vrot.lane.b32.xlu0 %v6843_v56, %s8171_s15  ;;  %5176 = vmatprep.subr.bf16.mxu1 %v5571_v61  ;;  %1101 = vst.msk [vmem:[#allocation2 + $0x1c8] sm:$0xff] %vm1082_vm14, %v1023_v46  ;;  %v5574_v56 = vld [vmem:[%s8147_s1 + $0x18] sm:$0xff]  }
 0x179   : > { %v1021_v8 = vpop.permute.xlu0 %1020  ;;  %1494 = vrot.lane.b32.xlu1 %v6997_v3, %s5729_s14  ;;  %v2741_v3 = vpack.c.bf16 %v2726_v6, %v2723_v4 }
 0x17a   : > { %1100 = vst.msk [vmem:[#allocation2 + $0x1b0] sm:$0xfe] %vm1080_vm15, %v1021_v8  ;;  %5177 = vmatpush3.bf16.msra.mxu1 %v5572_v21  ;;  %v1209_v22 = vpop.permute.xlu1 %1208 }
 0x17b   : > { %1492 = vrot.lane.b32.xlu0 %v6994_v18, %s5729_s14  ;;  %v2363_v15 = vld [vmem:[#allocation2 + $0x1d0] sm:$0xff]  ;;  %5178 = vmatprep.subr.bf16.mxu1 %v5573_v55  ;;  %1284 = vst.msk [vmem:[#allocation2 + $0x200] sm:$0x7f] %vm1263_vm10, %v1209_v22 }
 0x17c   : > { %5398 = vmatmul.mubr.msk.bf16.vlgmr.msra.gmra.mxu0 %vm496_vm0, %v2738_v25 }
 0x17d   : > { %v1207_v29 = vpop.permute.xlu0 %1206  ;;  %1042 = vrot.lane.b32.xlu1 %v6912_v53, %s5729_s14  ;;  %v2360_v17 = vld [vmem:[#allocation2 + $0x1b8] sm:$0xff]  ;;  %5401 = vmatprep.mubr.msk.bf16.mxu0 %vm496_vm0, %v2741_v3 }
 0x17e   : > { %1283 = vst.msk [vmem:[#allocation2 + $0x1e8] sm:$0xff] %vm653_vm2, %v1207_v29  ;;  %v2381_v18 = vpack.c.bf16 %v2363_v15, %v2360_v17  ;;  %5179 = vmatpush3.bf16.msra.mxu1 %v5574_v56  ;;  %v695_v53 = vpop.permute.xlu1 %694  ;;  %v2362_v23 = vld [vmem:[#allocation2 + $0x1c8] sm:$0xff] }
 0x17f   : > { %1308 = vst.msk [vmem:[#allocation2 + $0x1e8] sm:$0x1] %vm779_vm11, %v8169_v32  ;;  %1040 = vrot.lane.b32.xlu0 %v6889_v14, %s5729_s14  ;;  %5180 = vmatprep.subr.bf16.mxu1 %v5575_v11 }
 0x180   : > { %2585 = vmatprep.mubr.bf16.mxu1 %v2381_v18  ;;  %765 = vst.msk [vmem:[#allocation2 + $0x1f8] sm:$0xff] %vm653_vm2, %v695_v53 }
 0x181   : > { %v693_v10 = vpop.permute.xlu0 %692  ;;  %789 = vst.msk [vmem:[#allocation2 + $0x1ff] sm:$0x1] %vm779_vm11, %v8169_v32  ;;  %1228 = vrot.lane.b32.xlu1 %v7036_v20, %s8170_s24  ;;  %v2359_v14 = vld [vmem:[#allocation2 + $0x1b0] sm:$0xff] }
 0x182   : > { %764 = vst.msk [vmem:[#allocation2 + $0x1e0] sm:$0xff] %vm653_vm2, %v693_v10  ;;  %v2380_v40 = vpack.c.bf16 %v2362_v23, %v2359_v14  ;;  %5181 = vmatpush3.bf16.msra.mxu1 %v5576_v13  ;;  %v1356_v31 = vpop.permute.xlu1 %1355  ;;  %v5048_v20 = vpop.f32.mrf.mxu0 }
 0x183   : > { %1226 = vrot.lane.b32.xlu0 %v7043_v27, %s8170_s24  ;;  %5182 = vmatprep.subr.bf16.mxu1 %v5577_v9  ;;  %1425 = vst.msk [vmem:[#allocation2 + $0x200] sm:$0xff] %vm776_vm8, %v1356_v31 }
 0x184   : > { %2586 = vmatmul.mubr.bf16.gmra.mxu1 %v2380_v40  ;;  %5402 = vmatmul.mubr.msk.bf16.gmra.mxu0 %vm496_vm0, %v2744_v57  ;;  %v5049_v27 = vpop.f32.mrf.mxu0 }
 0x185   : > { %v1354_v59 = vpop.permute.xlu0 %1353  ;;  %714 = vrot.lane.b32.xlu1 %v6885_v43, %s8170_s24  ;;  %v5050_v62 = vadd.f32 %v5049_v27, %v5048_v20  ;;  %v7372_v43 = vld [vmem:[%s8148_s2] ss:$0 sm:$0xff] }
 0x186   : > { %1424 = vst.msk [vmem:[#allocation2 + $0x1e8] sm:$0xfe] %vm1403_vm13, %v1354_v59  ;;  %5183 = vmatpush3.bf16.msra.mxu1 %v5578_v16  ;;  %v880_v0 = vpop.permute.xlu1 %879  ;;  %v5051_v45 = vpop.f32.mrf.mxu0 }
 0x187   : > { %712 = vrot.lane.b32.xlu0 %v6875_v50, %s8170_s24  ;;  %5184 = vmatprep.subr.bf16.mxu1 %v5580_v34  ;;  %951 = vst.msk [vmem:[#allocation2 + $0x1f8] sm:$0x7f] %vm932_vm12, %v880_v0  ;;  %v1927_v39 = vadd.f32 %v5050_v62, %v1926_v52 }
 0x188   : > { %v5052_v50 = vpop.f32.mrf.mxu0 }
 0x189   : > { %v878_v33 = vpop.permute.xlu0 %877  ;;  %899 = vrot.lane.b32.xlu1 %v6966_v38, %s8171_s15  ;;  %vm1957_vm3 = vcmp.gt.f32.partialorder %v1927_v39, 0.0  ;;  %v1971_v48 = vmul.f32 %v7372_v43, %v1927_v39  ;;  %v5053_v7 = vadd.f32 %v5052_v50, %v5051_v45 }
 0x18a   : > { %950 = vst.msk [vmem:[#allocation2 + $0x1e0] sm:$0xff] %vm776_vm8, %v878_v33  ;;  %5185 = vmatpush3.bf16.msra.mxu1 %v5581_v37  ;;  %v1479_v28 = vpop.permute.xlu1 %1478 }
 0x18b   : > { %973 = vst.msk [vmem:[#allocation2 + $0x1e0] sm:$0x1] %vm962_vm9, %v8169_v32  ;;  %897 = vrot.lane.b32.xlu0 %v6973_v12, %s8171_s15  ;;  %v1979_v38 = vsel %vm1957_vm3, %v1927_v39, %v1971_v48  ;;  %v1930_v49 = vadd.f32 %v5053_v7, %v1929_v58 }
 0x18c   : > { %1547 = vst.msk [vmem:[#allocation2 + $0x200] sm:$0xff] %vm1082_vm14, %v1479_v28 }
 0x18d   : > { %v1477_v24 = vpop.permute.xlu0 %1476  ;;  %1046 = vrot.lane.b32.xlu1 %v7275_v42, %s5729_s14  ;;  %1988 = vst.msk [vmem:[#allocation3] sm:$0xff] %vm1987_vm1, %v1979_v38  ;;  %vm1958_vm5 = vcmp.gt.f32.partialorder %v1930_v49, 0.0  ;;  %v1972_v12 = vmul.f32 %v7372_v43, %v1930_v49 }
 0x18e   : > { %1546 = vst.msk [vmem:[#allocation2 + $0x1e8] sm:$0xff] %vm1082_vm14, %v1477_v24  ;;  %v1027_v26 = vpop.permute.xlu1 %1026 }
 0x18f   : > { %1044 = vrot.lane.b32.xlu0 %v7253_v54, %s5729_s14  ;;  %1103 = vst.msk [vmem:[#allocation2 + $0x1f8] sm:$0xff] %vm1082_vm14, %v1027_v26  ;;  %v1980_v44 = vsel %vm1958_vm5, %v1930_v49, %v1972_v12  ;;  %s5031_s14 = sshll.u32 %s5815_s21, 10 }
 0x190   : > { %1989 = vst.msk [vmem:[#allocation3 + $0x8] sm:$0xff] %vm1987_vm1, %v1980_v44 }
 0x191   : > { %v1025_v41 = vpop.permute.xlu0 %1024 }
 0x192   : > { %1102 = vst.msk [vmem:[#allocation2 + $0x1e0] sm:$0xfe] %vm1080_vm15, %v1025_v41  ;;  %v1213_v42 = vpop.permute.xlu1 %1212 }
 0x193   : > { %v2369_v60 = vld [vmem:[#allocation2 + $0x200] sm:$0xff]  ;;  %1286 = vst.msk [vmem:[#allocation2 + $0x230] sm:$0x7f] %vm1263_vm10, %v1213_v42 }
 0x195   : > { %v1211_v1 = vpop.permute.xlu0 %1210  ;;  %v2366_v5 = vld [vmem:[#allocation2 + $0x1e8] sm:$0xff] }
 0x196   : > { %1285 = vst.msk [vmem:[#allocation2 + $0x218] sm:$0xff] %vm653_vm2, %v1211_v1  ;;  %v2384_v35 = vpack.c.bf16 %v2369_v60, %v2366_v5  ;;  %v699_v54 = vpop.permute.xlu1 %698  ;;  %v2368_v61 = vld [vmem:[#allocation2 + $0x1f8] sm:$0xff] }
 0x197   : > { %1309 = vst.msk [vmem:[#allocation2 + $0x218] sm:$0x1] %vm779_vm11, %v8169_v32  ;;  %v3193_v63 = vld [vmem:[#allocation3 + $0x1] ss:$2 sm:$0x7f] }
 0x198   : > { %2593 = vmatprep.mubr.bf16.mxu1 %v2384_v35  ;;  %767 = vst.msk [vmem:[#allocation2 + $0x228] sm:$0xff] %vm653_vm2, %v699_v54  ;;  %v3216_v21 = vrot.slane %v3193_v63, 7  ;;  %v3257_v55 = vld [vmem:[#allocation3] ss:$2 sm:$0xff] }
 0x199   : > { %v697_v30 = vpop.permute.xlu0 %696  ;;  %790 = vst.msk [vmem:[#allocation2 + $0x22f] sm:$0x1] %vm779_vm11, %v8169_v32  ;;  %v2365_v2 = vld [vmem:[#allocation2 + $0x1e0] sm:$0xff] }
 0x19a   : > { %766 = vst.msk [vmem:[#allocation2 + $0x210] sm:$0xff] %vm653_vm2, %v697_v30  ;;  %v2383_v46 = vpack.c.bf16 %v2368_v61, %v2365_v2  ;;  %v1360_v25 = vpop.permute.xlu1 %1359  ;;  %3224 = vrot.lane.b32.xlu0 %v3216_v21, %s8171_s15 }
 0x19b   : > { %3272 = vst.msk [vmem:[#allocation4 + $0x10] sm:$0xff] %vm1987_vm1, %v3257_v55 }
 0x19c   : > { %2594 = vmatmul.mubr.bf16.gmra.mxu1 %v2383_v46  ;;  %1427 = vst.msk [vmem:[#allocation2 + $0x230] sm:$0xff] %vm776_vm8, %v1360_v25 }
 0x19d   : > { %v1358_v8 = vpop.permute.xlu0 %1357 }
 0x19e   : > { %1426 = vst.msk [vmem:[#allocation2 + $0x218] sm:$0xfe] %vm1403_vm13, %v1358_v8  ;;  %v884_v56 = vpop.permute.xlu1 %883 }
 0x19f   : > { %953 = vst.msk [vmem:[#allocation2 + $0x228] sm:$0x7f] %vm932_vm12, %v884_v56  ;;  %v5583_v56 = vld [vmem:[%s8149_s3 + $0x78] sm:$0xff]  }
 0x1a0   : > { %5216 = vmatprep.subr.bf16.mxu0 %v5583_v56 }
 0x1a1   : > { %v882_v11 = vpop.permute.xlu0 %881 }
 0x1a2   : > { %952 = vst.msk [vmem:[#allocation2 + $0x210] sm:$0xff] %vm776_vm8, %v882_v11  ;;  %v1483_v22 = vpop.permute.xlu1 %1482  ;;  %v5584_v11 = vld [vmem:[%s8149_s3 + $0x38] sm:$0xff]  }
 0x1a3   : > { %974 = vst.msk [vmem:[#allocation2 + $0x210] sm:$0x1] %vm962_vm9, %v8169_v32  ;;  %5217 = vmatpush3.bf16.msra.mxu0 %v5584_v11 }
 0x1a4   : > { %1549 = vst.msk [vmem:[#allocation2 + $0x230] sm:$0xff] %vm1082_vm14, %v1483_v22 }
 0x1a5   : > { %v1481_v15 = vpop.permute.xlu0 %1480 }
 0x1a6   : > { %1548 = vst.msk [vmem:[#allocation2 + $0x218] sm:$0xff] %vm1082_vm14, %v1481_v15  ;;  %v1031_v4 = vpop.permute.xlu1 %1030 }
 0x1a7   : > { %1105 = vst.msk [vmem:[#allocation2 + $0x228] sm:$0xff] %vm1082_vm14, %v1031_v4  ;;  %v7506_v4 = vpop.f32.mrf.mxu1 }
 0x1a9   : > { %v1029_v6 = vpop.permute.xlu0 %1028 }
 0x1aa   : > { %1104 = vst.msk [vmem:[#allocation2 + $0x210] sm:$0xfe] %vm1080_vm15, %v1029_v6  ;;  %v1217_v3 = vpop.permute.xlu1 %1216 }
 0x1ab   : > { %v2375_v29 = vld [vmem:[#allocation2 + $0x230] sm:$0xff]  ;;  %1288 = vst.msk [vmem:[#allocation2 + $0x260] sm:$0x7f] %vm1263_vm10, %v1217_v3 }
 0x1ad   : > { %v1215_v17 = vpop.permute.xlu0 %1214  ;;  %v2372_v19 = vld [vmem:[#allocation2 + $0x218] sm:$0xff] }
 0x1ae   : > { %1287 = vst.msk [vmem:[#allocation2 + $0x248] sm:$0xff] %vm653_vm2, %v1215_v17  ;;  %v2387_v47 = vpack.c.bf16 %v2375_v29, %v2372_v19  ;;  %v703_v18 = vpop.permute.xlu1 %702  ;;  %v2374_v13 = vld [vmem:[#allocation2 + $0x228] sm:$0xff]  ;;  %v5585_v17 = vld [vmem:[%s8149_s3 + $0x70] sm:$0xff]  }
 0x1af   : > { %1310 = vst.msk [vmem:[#allocation2 + $0x248] sm:$0x1] %vm779_vm11, %v8169_v32  ;;  %5218 = vmatprep.subr.bf16.mxu0 %v5585_v17 }
 0x1b0   : > { %2601 = vmatprep.mubr.bf16.mxu1 %v2387_v47  ;;  %769 = vst.msk [vmem:[#allocation2 + $0x258] sm:$0xff] %vm653_vm2, %v703_v18  ;;  %v5586_v18 = vld [vmem:[%s8149_s3 + $0x30] sm:$0xff]  }
 0x1b1   : > { %v701_v53 = vpop.permute.xlu0 %700  ;;  %791 = vst.msk [vmem:[#allocation2 + $0x25f] sm:$0x1] %vm779_vm11, %v8169_v32  ;;  %v2371_v23 = vld [vmem:[#allocation2 + $0x210] sm:$0xff]  ;;  %5219 = vmatpush3.bf16.msra.mxu0 %v5586_v18 }
 0x1b2   : > { %768 = vst.msk [vmem:[#allocation2 + $0x240] sm:$0xff] %vm653_vm2, %v701_v53  ;;  %v2386_v9 = vpack.c.bf16 %v2374_v13, %v2371_v23  ;;  %v1364_v57 = vpop.permute.xlu1 %1363  ;;  %v1942_v13 = vpop.f32.mrf.mxu1 }
 0x1b3   : > { %1429 = vst.msk [vmem:[#allocation2 + $0x260] sm:$0xff] %vm776_vm8, %v1364_v57  ;;  %v5587_v57 = vld [vmem:[%s8149_s3 + $0x68] sm:$0xff]  }
 0x1b4   : > { %v5054_v10 = vpop.f32.mrf.mxu0  ;;  %2602 = vmatmul.mubr.bf16.gmra.mxu1 %v2386_v9  ;;  %5220 = vmatprep.subr.bf16.mxu0 %v5587_v57 }
 0x1b5   : > { %v1362_v14 = vpop.permute.xlu0 %1361 }
 0x1b6   : > { %1428 = vst.msk [vmem:[#allocation2 + $0x248] sm:$0xfe] %vm1403_vm13, %v1362_v14  ;;  %v5055_v40 = vpop.f32.mrf.mxu0  ;;  %v888_v31 = vpop.permute.xlu1 %887  ;;  %v5588_v14 = vld [vmem:[%s8149_s3 + $0x28] sm:$0xff]  }
 0x1b7   : > { %v5056_v16 = vadd.f32 %v5055_v40, %v5054_v10  ;;  %955 = vst.msk [vmem:[#allocation2 + $0x258] sm:$0x7f] %vm932_vm12, %v888_v31  ;;  %5221 = vmatpush3.bf16.msra.mxu0 %v5588_v14 }
 0x1b8   : > { %v5057_v34 = vpop.f32.mrf.mxu0 }
 0x1b9   : > { %v1935_v52 = vadd.f32 %v7341_v36, %v5056_v16  ;;  %v886_v20 = vpop.permute.xlu0 %885  ;;  %v7528_v16 = vpop.f32.mrf.mxu1 }
 0x1ba   : > { %954 = vst.msk [vmem:[#allocation2 + $0x240] sm:$0xff] %vm776_vm8, %v886_v20  ;;  %v5058_v59 = vpop.f32.mrf.mxu0  ;;  %v1487_v62 = vpop.permute.xlu1 %1486 }
 0x1bb   : > { %vm1959_vm3 = vcmp.gt.f32.partialorder %v1935_v52, 0.0  ;;  %v1973_v27 = vmul.f32 %v7372_v43, %v1935_v52  ;;  %975 = vst.msk [vmem:[#allocation2 + $0x240] sm:$0x1] %vm962_vm9, %v8169_v32  ;;  %v5059_v37 = vadd.f32 %v5058_v59, %v5057_v34 }
 0x1bc   : > { %1551 = vst.msk [vmem:[#allocation2 + $0x260] sm:$0xff] %vm1082_vm14, %v1487_v62  ;;  %v1945_v62 = vpop.f32.mrf.mxu1 }
 0x1bd   : > { %v1981_v36 = vsel %vm1959_vm3, %v1935_v52, %v1973_v27  ;;  %v1938_v0 = vadd.f32 %v7367_v51, %v5059_v37  ;;  %v1485_v45 = vpop.permute.xlu0 %1484  ;;  %v5589_v52 = vld [vmem:[%s8149_s3 + $0x60] sm:$0xff]  }
 0x1be   : > { %1990 = vst.msk [vmem:[#allocation3 + $0x10] sm:$0xff] %vm1987_vm1, %v1981_v36  ;;  %v1035_v33 = vpop.permute.xlu1 %1034  ;;  %v5590_v27 = vld [vmem:[%s8149_s3 + $0x20] sm:$0xff]   ;;  %5222 = vmatprep.subr.bf16.mxu0 %v5589_v52 }
 0x1bf   : > { %1550 = vst.msk [vmem:[#allocation2 + $0x248] sm:$0xff] %vm1082_vm14, %v1485_v45  ;;  %vm1960_vm5 = vcmp.gt.f32.partialorder %v1938_v0, 0.0  ;;  %v1974_v39 = vmul.f32 %v7372_v43, %v1938_v0  ;;  %1107 = vst.msk [vmem:[#allocation2 + $0x258] sm:$0xff] %vm1082_vm14, %v1035_v33  ;;  %5223 = vmatpush3.bf16.msra.mxu0 %v5590_v27  ;;  %v5592_v33 = vld [vmem:[%s8149_s3 + $0x18] sm:$0xff]  }
 0x1c1   : > { %v1982_v50 = vsel %vm1960_vm5, %v1938_v0, %v1974_v39  ;;  %v1033_v48 = vpop.permute.xlu0 %1032  ;;  %v5591_v39 = vld [vmem:[%s8149_s3 + $0x58] sm:$0xff]  }
 0x1c2   : > { %1991 = vst.msk [vmem:[#allocation3 + $0x18] sm:$0xff] %vm1987_vm1, %v1982_v50  ;;  %v1221_v7 = vpop.permute.xlu1 %1220  ;;  %v5593_v50 = vld [vmem:[%s8149_s3 + $0x50] sm:$0xff]   ;;  %5224 = vmatprep.subr.bf16.mxu0 %v5591_v39 }
 0x1c3   : > { %1106 = vst.msk [vmem:[#allocation2 + $0x240] sm:$0xfe] %vm1080_vm15, %v1033_v48  ;;  %v2713_v28 = vld [vmem:[#allocation2 + $0x260] sm:$0xff]  ;;  %5225 = vmatpush3.bf16.msra.mxu0 %v5592_v33 }
 0x1c4   : > { %1290 = vst.msk [vmem:[#allocation2 + $0x290] sm:$0x7f] %vm1263_vm10, %v1221_v7  ;;  %5226 = vmatprep.subr.bf16.mxu0 %v5593_v50 }
 0x1c5   : > { %v1219_v51 = vpop.permute.xlu0 %1218 }
 0x1c6   : > { %v2710_v58 = vld [vmem:[#allocation2 + $0x248] sm:$0xff]  ;;  %1289 = vst.msk [vmem:[#allocation2 + $0x278] sm:$0xff] %vm653_vm2, %v1219_v51  ;;  %v707_v49 = vpop.permute.xlu1 %706  ;;  %v2712_v24 = vld [vmem:[#allocation2 + $0x258] sm:$0xff]  ;;  %v7552_v51 = vpop.f32.mrf.mxu1 }
 0x1c7   : > { %v2734_v38 = vpack.c.bf16 %v2713_v28, %v2710_v58  ;;  %1311 = vst.msk [vmem:[#allocation2 + $0x278] sm:$0x1] %vm779_vm11, %v8169_v32 }
 0x1c8   : > { %771 = vst.msk [vmem:[#allocation2 + $0x288] sm:$0xff] %vm653_vm2, %v707_v49 }
 0x1c9   : > { %2933 = vmatprep.mubr.bf16.mxu1 %v2734_v38  ;;  %v3426_v12 = vld [vmem:[#allocation3 + $0x11] ss:$2 sm:$0xff]  ;;  %v705_v26 = vpop.permute.xlu0 %704  ;;  %792 = vst.msk [vmem:[#allocation2 + $0x28f] sm:$0x1] %vm779_vm11, %v8169_v32  ;;  %v3377_v44 = vld [vmem:[#allocation3 + $0x10] ss:$2 sm:$0xff] }
 0x1ca   : > { %v3120_v41 = vld [vmem:[#allocation3 + $0x10] ss:$2 sm:$0xff]  ;;  %3434 = vst.msk [vmem:[#allocation4 + $0x20] sm:$0xff] %vm1987_vm1, %v3426_v12  ;;  %3394 = vrot.lane.b32.xlu1 %v3377_v44, %s8171_s15  ;;  %v2709_v42 = vld [vmem:[#allocation2 + $0x240] sm:$0xff]  ;;  %v3169_v1 = vld [vmem:[#allocation3 + $0x11] ss:$2 sm:$0xff]  ;;  %v1368_v35 = vpop.permute.xlu1 %1367 }
 0x1cb   : > { %770 = vst.msk [vmem:[#allocation2 + $0x270] sm:$0xff] %vm653_vm2, %v705_v26  ;;  %3140 = vrot.lane.b32.xlu0 %v3120_v41, %s8171_s15  ;;  %v3336_v60 = vld [vmem:[#allocation3 + $0x11] ss:$2 sm:$0x7f]  ;;  %v2733_v5 = vpack.c.bf16 %v2712_v24, %v2709_v42  ;;  %v5595_v44 = vld [vmem:[%s8149_s3 + $0x48] sm:$0xff]   ;;  %v7564_v41 = vpop.f32.mrf.mxu1 }
 0x1cc   : > { %v3353_v54 = vrot.slane %v3336_v60, 7  ;;  %v3076_v61 = vld [vmem:[#allocation3 + $0x11] ss:$2 sm:$0x7f]  ;;  %3176 = vst.msk [vmem:[#allocation4 + $0x30] sm:$0xff] %vm1987_vm1, %v3169_v1  ;;  %v5596_v1 = vld [vmem:[%s8149_s3 + $0x8] sm:$0xff]  }
 0x1cd   : > { %1431 = vst.msk [vmem:[#allocation2 + $0x290] sm:$0xff] %vm776_vm8, %v1368_v35  ;;  %v3096_v30 = vrot.slane %v3076_v61, 7  ;;  %2934 = vmatmul.mubr.bf16.vlgmr.msra.gmra.mxu1 %v2733_v5  ;;  %v1366_v63 = vpop.permute.xlu0 %1365  ;;  %v5594_v26 = vld [vmem:[%s8149_s3 + $0x10] sm:$0xff]  }
 0x1ce   : > { %3185 = vst.msk [vmem:[#allocation4 + $0x30] sm:$0x1] %vm3183_vm4, %v8169_v32  ;;  %v892_v2 = vpop.permute.xlu1 %891  ;;  %5227 = vmatpush3.bf16.msra.mxu0 %v5594_v26 }
 0x1cf   : > { %3369 = vst.msk [vmem:[#allocation4 + $0x18] sm:$0xfe] %vm3110_vm6, %v3353_v54  ;;  %3111 = vst.msk [vmem:[#allocation4 + $0x28] sm:$0xfe] %vm3110_vm6, %v3096_v30  ;;  %5228 = vmatprep.subr.bf16.mxu0 %v5595_v44  ;;  %v7572_v54 = vpop.f32.mrf.mxu1 }
 0x1d0   : > { %1430 = vst.msk [vmem:[#allocation2 + $0x278] sm:$0xfe] %vm1403_vm13, %v1366_v63 }
 0x1d1   : > { %957 = vst.msk [vmem:[#allocation2 + $0x288] sm:$0x7f] %vm932_vm12, %v892_v2  ;;  %v890_v21 = vpop.permute.xlu0 %889  ;;  %v5597_v2 = vld [vmem:[%s8149_s3 + $0x40] sm:$0xff]  }
 0x1d2   : > { %956 = vst.msk [vmem:[#allocation2 + $0x270] sm:$0xff] %vm776_vm8, %v890_v21  ;;  %v1491_v46 = vpop.permute.xlu1 %1490  ;;  %5229 = vmatpush3.bf16.msra.mxu0 %v5596_v1 }
 0x1d3   : > { %976 = vst.msk [vmem:[#allocation2 + $0x270] sm:$0x1] %vm962_vm9, %v8169_v32  ;;  %5230 = vmatprep.subr.bf16.mxu0 %v5597_v2 }
 0x1d4   : > { %1553 = vst.msk [vmem:[#allocation2 + $0x290] sm:$0xff] %vm1082_vm14, %v1491_v46 }
 0x1d5   : > { %v1489_v55 = vpop.permute.xlu0 %1488 }
 0x1d6   : > { %1552 = vst.msk [vmem:[#allocation2 + $0x278] sm:$0xff] %vm1082_vm14, %v1489_v55  ;;  %v1039_v25 = vpop.permute.xlu1 %1038  ;;  %v5598_v55 = vld [vmem:[%s8149_s3] sm:$0xff]  }
 0x1d7   : > { %1109 = vst.msk [vmem:[#allocation2 + $0x288] sm:$0xff] %vm1082_vm14, %v1039_v25  ;;  %v7590_v25 = vpop.f32.mrf.mxu1  ;;  %5231 = vmatpush3.bf16.msra.mxu0 %v5598_v55 }
 0x1d9   : > { %v1037_v8 = vpop.permute.xlu0 %1036 }
 0x1da   : > { %1108 = vst.msk [vmem:[#allocation2 + $0x270] sm:$0xfe] %vm1080_vm15, %v1037_v8  ;;  %v1225_v22 = vpop.permute.xlu1 %1224 }
 0x1db   : > { %v2719_v15 = vld [vmem:[#allocation2 + $0x290] sm:$0xff]  ;;  %1292 = vst.msk [vmem:[#allocation2 + $0x2c0] sm:$0x7f] %vm1263_vm10, %v1225_v22 }
 0x1dd   : > { %v1223_v6 = vpop.permute.xlu0 %1222  ;;  %v2716_v3 = vld [vmem:[#allocation2 + $0x278] sm:$0xff] }
 0x1de   : > { %1291 = vst.msk [vmem:[#allocation2 + $0x2a8] sm:$0xff] %vm653_vm2, %v1223_v6  ;;  %v2737_v29 = vpack.c.bf16 %v2719_v15, %v2716_v3  ;;  %v2718_v47 = vld [vmem:[#allocation2 + $0x288] sm:$0xff]  ;;  %v5100_v3 = vpop.f32.mrf.mxu1 }
 0x1df   : > { %1312 = vst.msk [vmem:[#allocation2 + $0x2a8] sm:$0x1] %vm779_vm11, %v8169_v32  ;;  %v711_v19 = vpop.permute.xlu1 %710 }
 0x1e0   : > { %2941 = vmatprep.mubr.bf16.mxu1 %v2737_v29  ;;  %773 = vst.msk [vmem:[#allocation2 + $0x2b8] sm:$0xff] %vm653_vm2, %v711_v19 }
 0x1e1   : > { %v709_v53 = vpop.permute.xlu0 %708  ;;  %793 = vst.msk [vmem:[#allocation2 + $0x2bf] sm:$0x1] %vm779_vm11, %v8169_v32  ;;  %v2715_v23 = vld [vmem:[#allocation2 + $0x270] sm:$0xff] }
 0x1e2   : > { %772 = vst.msk [vmem:[#allocation2 + $0x2a0] sm:$0xff] %vm653_vm2, %v709_v53  ;;  %v2736_v9 = vpack.c.bf16 %v2718_v47, %v2715_v23  ;;  %v5101_v47 = vpop.f32.mrf.mxu1 }
 0x1e3   : > { %v1372_v10 = vpop.permute.xlu1 %1371  ;;  %v5102_v33 = vadd.f32 %v5101_v47, %v5100_v3 }
 0x1e4   : > { %v5060_v40 = vpop.f32.mrf.mxu0  ;;  %2942 = vmatmul.mubr.bf16.gmra.mxu1 %v2736_v9  ;;  %1433 = vst.msk [vmem:[#allocation2 + $0x2c0] sm:$0xff] %vm776_vm8, %v1372_v10  ;;  %v5103_v9 = vpop.f32.mrf.mxu1 }
 0x1e5   : > { %v1370_v31 = vpop.permute.xlu0 %1369 }
 0x1e6   : > { %1432 = vst.msk [vmem:[#allocation2 + $0x2a8] sm:$0xfe] %vm1403_vm13, %v1370_v31  ;;  %v5061_v34 = vpop.f32.mrf.mxu0  ;;  %v5104_v57 = vpop.f32.mrf.mxu1 }
 0x1e7   : > { %v5062_v20 = vadd.f32 %v5061_v34, %v5060_v40  ;;  %v896_v59 = vpop.permute.xlu1 %895  ;;  %v5105_v26 = vadd.f32 %v5104_v57, %v5103_v9  ;;  %v5606_v57 = vld [vmem:[%s8149_s3 + $0xa0] sm:$0xff]  }
 0x1e8   : > { %v5063_v37 = vpop.f32.mrf.mxu0  ;;  %959 = vst.msk [vmem:[#allocation2 + $0x2b8] sm:$0x7f] %vm932_vm12, %v896_v59  ;;  %v5106_v14 = vpop.f32.mrf.mxu1 }
 0x1e9   : > { %v1943_v36 = vadd.f32 %v5062_v20, %v1942_v13  ;;  %v894_v0 = vpop.permute.xlu0 %893 }
 0x1ea   : > { %958 = vst.msk [vmem:[#allocation2 + $0x2a0] sm:$0xff] %vm776_vm8, %v894_v0  ;;  %v5064_v45 = vpop.f32.mrf.mxu0  ;;  %v5107_v34 = vpop.f32.mrf.mxu1 }
 0x1eb   : > { %vm1961_vm13 = vcmp.gt.f32.partialorder %v1943_v36, 0.0  ;;  %v1975_v48 = vmul.f32 %v7372_v43, %v1943_v36  ;;  %977 = vst.msk [vmem:[#allocation2 + $0x2a0] sm:$0x1] %vm962_vm9, %v8169_v32  ;;  %v5065_v7 = vadd.f32 %v5064_v45, %v5063_v37  ;;  %v1495_v28 = vpop.permute.xlu1 %1494 }
 0x1ec   : > { %1555 = vst.msk [vmem:[#allocation2 + $0x2c0] sm:$0xff] %vm1082_vm14, %v1495_v28  ;;  %v7604_v20 = vpop.f32.mrf.mxu1  ;;  %v5599_v28 = vld [vmem:[%s8149_s3 + $0xf8] sm:$0xff]  }
 0x1ed   : > { %v1983_v58 = vsel %vm1961_vm13, %v1943_v36, %v1975_v48  ;;  %v1946_v38 = vadd.f32 %v5065_v7, %v1945_v62  ;;  %v1493_v49 = vpop.permute.xlu0 %1492  ;;  %5244 = vmatprep.subr.bf16.mxu1 %v5599_v28 }
 0x1ee   : > { %1992 = vst.msk [vmem:[#allocation3 + $0x20] sm:$0xff] %vm1987_vm1, %v1983_v58  ;;  %v7606_v27 = vpop.f32.mrf.mxu1  ;;  %v5600_v58 = vld [vmem:[%s8149_s3 + $0xb8] sm:$0xff]  }
 0x1ef   : > { %1554 = vst.msk [vmem:[#allocation2 + $0x2a8] sm:$0xff] %vm1082_vm14, %v1493_v49  ;;  %vm1962_vm3 = vcmp.gt.f32.partialorder %v1946_v38, 0.0  ;;  %v1976_v24 = vmul.f32 %v7372_v43, %v1946_v38  ;;  %v1043_v12 = vpop.permute.xlu1 %1042  ;;  %5245 = vmatpush3.bf16.msra.mxu1 %v5600_v58 }
 0x1f0   : > { %1111 = vst.msk [vmem:[#allocation2 + $0x2b8] sm:$0xff] %vm1082_vm14, %v1043_v12  ;;  %v5096_v12 = vadd.f32 %v7564_v41, %v7552_v51 }
 0x1f1   : > { %v1984_v42 = vsel %vm1962_vm3, %v1946_v38, %v1976_v24  ;;  %v1041_v60 = vpop.permute.xlu0 %1040 }
 0x1f2   : > { %1993 = vst.msk [vmem:[#allocation3 + $0x28] sm:$0xff] %vm1987_vm1, %v1984_v42  ;;  %v5601_v42 = vld [vmem:[%s8149_s3 + $0xf0] sm:$0xff]  }
 0x1f3   : > { %1110 = vst.msk [vmem:[#allocation2 + $0x2a0] sm:$0xfe] %vm1080_vm15, %v1041_v60  ;;  %v1229_v5 = vpop.permute.xlu1 %1228  ;;  %v2725_v35 = vld [vmem:[#allocation2 + $0x2c0] sm:$0xff]  ;;  %v5602_v60 = vld [vmem:[%s8149_s3 + $0xb0] sm:$0xff]   ;;  %5246 = vmatprep.subr.bf16.mxu1 %v5601_v42 }
 0x1f4   : > { %1294 = vst.msk [vmem:[#allocation2 + $0x2f0] sm:$0x7f] %vm1263_vm10, %v1229_v5  ;;  %5247 = vmatpush3.bf16.msra.mxu1 %v5602_v60 }
 0x1f5   : > { %v1227_v61 = vpop.permute.xlu0 %1226  ;;  %1297 = vst.msk [vmem:[#allocation2 + $0x2f0] sm:$0xff] %vm776_vm8, %v8169_v32 }
 0x1f6   : > { %v2722_v30 = vld [vmem:[#allocation2 + $0x2a8] sm:$0xff]  ;;  %1293 = vst.msk [vmem:[#allocation2 + $0x2d8] sm:$0xff] %vm653_vm2, %v1227_v61 }
 0x1f7   : > { %1435 = vst.msk [vmem:[#allocation2 + $0x2f0] sm:$0xff] %vm1082_vm14, %v8169_v32  ;;  %v2740_v63 = vpack.c.bf16 %v2725_v35, %v2722_v30  ;;  %v715_v21 = vpop.permute.xlu1 %714  ;;  %v2724_v46 = vld [vmem:[#allocation2 + $0x2b8] sm:$0xff]  ;;  %v5099_v35 = vadd.f32 %v7590_v25, %v7572_v54 }
 0x1f8   : > { %1296 = vst.msk [vmem:[#allocation2 + $0x2d8] sm:$0xff] %vm776_vm8, %v8169_v32 }
 0x1f9   : > { %1434 = vst.msk [vmem:[#allocation2 + $0x2d8] sm:$0xff] %vm1082_vm14, %v8169_v32  ;;  %2949 = vmatprep.mubr.bf16.mxu1 %v2740_v63  ;;  %v713_v8 = vpop.permute.xlu0 %712  ;;  %v3195_v11 = vld [vmem:[#allocation3 + $0x21] ss:$2 sm:$0x7f]  ;;  %v3259_v6 = vld [vmem:[#allocation3 + $0x20] ss:$2 sm:$0xff] }
 0x1fa   : > { %775 = vst.msk [vmem:[#allocation2 + $0x2e8] sm:$0xff] %vm653_vm2, %v715_v21  ;;  %v2721_v56 = vld [vmem:[#allocation2 + $0x2a0] sm:$0xff]  ;;  %774 = vst.msk [vmem:[#allocation2 + $0x2d0] sm:$0xff] %vm653_vm2, %v713_v8  ;;  %v3217_v15 = vrot.slane %v3195_v11, 7  ;;  %vm3248_vm2 = vcmask 1048065  }
 0x1fb   : > { %794 = vst.msk [vmem:[#allocation2 + $0x2ef] sm:$0x1] %vm779_vm11, %v8169_v32  ;;  %v2739_v22 = vpack.c.bf16 %v2724_v46, %v2721_v56  ;;  %v900_v29 = vpop.permute.xlu1 %899  ;;  %v5603_v46 = vld [vmem:[%s8149_s3 + $0xe8] sm:$0xff]   ;;  %v5108_v56 = vadd.f32 %v5107_v34, %v5106_v14 }
 0x1fc   : > { %3273 = vst.msk [vmem:[#allocation4 + $0x38] sm:$0xff] %vm1987_vm1, %v3259_v6  ;;  %3226 = vrot.lane.b32.xlu1 %v3217_v15, %s8171_s15  ;;  %v5112_v62 = vpop.f32.mrf.mxu1  ;;  %5248 = vmatprep.subr.bf16.mxu1 %v5603_v46  ;;  %v5604_v15 = vld [vmem:[%s8149_s3 + $0xa8] sm:$0xff]  }
 0x1fd   : > { %2950 = vmatmul.mubr.bf16.gmra.mxu1 %v2739_v22  ;;  %961 = vst.msk [vmem:[#allocation2 + $0x2e8] sm:$0x7f] %vm932_vm12, %v900_v29  ;;  %v898_v17 = vpop.permute.xlu0 %897 }
 0x1fe   : > { %v2731_v19 = vld [vmem:[#allocation2 + $0x2f0] sm:$0xff]  ;;  %960 = vst.msk [vmem:[#allocation2 + $0x2d0] sm:$0xff] %vm776_vm8, %v898_v17  ;;  %v5113_v50 = vpop.f32.mrf.mxu1  ;;  %5249 = vmatpush3.bf16.msra.mxu1 %v5604_v15  ;;  %v3280_v15 = vld [vmem:[#allocation3 + $0x1] ss:$2 sm:$0xff] }
 0x1ff   : > { %978 = vst.msk [vmem:[#allocation2 + $0x2d0] sm:$0x1] %vm962_vm9, %v8169_v32  ;;  %v1047_v18 = vpop.permute.xlu1 %1046  ;;  %v5114_v55 = vadd.f32 %v5113_v50, %v5112_v62 }
 0x200   : > { %v2728_v13 = vld [vmem:[#allocation2 + $0x2d8] sm:$0xff]  ;;  %1113 = vst.msk [vmem:[#allocation2 + $0x2e8] sm:$0xff] %vm1082_vm14, %v1047_v18  ;;  %v5115_v1 = vpop.f32.mrf.mxu1 }
 0x201   : > { %v2743_v53 = vpack.c.bf16 %v2731_v19, %v2728_v13  ;;  %v1045_v23 = vpop.permute.xlu0 %1044 }
 0x202   : > { %1112 = vst.msk [vmem:[#allocation2 + $0x2d0] sm:$0xfe] %vm1080_vm15, %v1045_v23  ;;  %v5116_v8 = vpop.f32.mrf.mxu1  ;;  %v5111_v23 = vadd.f32 %v7606_v27, %v7604_v20 }
 0x203   : > { %2957 = vmatprep.mubr.bf16.mxu1 %v2743_v53  ;;  %v5117_v17 = vadd.f32 %v5116_v8, %v5115_v1  ;;  %v5605_v53 = vld [vmem:[%s8149_s3 + $0xe0] sm:$0xff]  }
 0x204   : > { %5250 = vmatprep.subr.bf16.mxu1 %v5605_v53 }
 0x205   : > { %5251 = vmatpush3.bf16.msra.mxu1 %v5606_v57  ;;  %v5616_v57 = vld [vmem:[%s8149_s3 + $0x80] sm:$0xff]  }
 0x207   : > { %v2730_v10 = vld [vmem:[#allocation2 + $0x2e8] sm:$0xff] }
 0x209   : > { %v2727_v40 = vld [vmem:[#allocation2 + $0x2d0] sm:$0xff] }
 0x20a   : > { %v2742_v31 = vpack.c.bf16 %v2730_v10, %v2727_v40 }
 0x20c   : > { %2958 = vmatmul.mubr.bf16.gmra.mxu1 %v2742_v31  ;;  %v3225_v52 = vpop.permute.xlu0 %3224 }
 0x20d   : > { %3249 = vst.msk [vmem:[#allocation4 + $0x8] sm:$0xfe] %vm3248_vm2, %v3225_v52 }
 0x214   : > { %v5066_v59 = vpop.f32.mrf.mxu0 }
 0x216   : > { %v5067_v37 = vpop.f32.mrf.mxu0 }
 0x217   : > { %v5068_v36 = vadd.f32 %v5067_v37, %v5066_v59 }
 0x218   : > { %v5069_v0 = vpop.f32.mrf.mxu0 }
 0x219   : > { %v1951_v45 = vadd.f32 %v7506_v4, %v5068_v36 }
 0x21a   : > { %v5070_v39 = vpop.f32.mrf.mxu0 }
 0x21b   : > { %vm1963_vm8 = vcmp.gt.f32.partialorder %v1951_v45, 0.0  ;;  %v1977_v48 = vmul.f32 %v7372_v43, %v1951_v45  ;;  %v5071_v7 = vadd.f32 %v5070_v39, %v5069_v0 }
 0x21c   : > { %v5375_v38 = vpop.f32.mrf.mxu0 }
 0x21d   : > { %v1985_v49 = vsel %vm1963_vm8, %v1951_v45, %v1977_v48  ;;  %v1954_v24 = vadd.f32 %v7528_v16, %v5071_v7  ;;  %v2297_v4 = vadd.f32 %v5375_v38, %v5102_v33  ;;  %v5607_v48 = vld [vmem:[%s8149_s3 + $0xd8] sm:$0xff]  }
 0x21e   : > { %1994 = vst.msk [vmem:[#allocation3 + $0x30] sm:$0xff] %vm1987_vm1, %v1985_v49  ;;  %v2288_v44 = vpop.f32.mrf.mxu0  ;;  %v5608_v7 = vld [vmem:[%s8149_s3 + $0x98] sm:$0xff]   ;;  %5252 = vmatprep.subr.bf16.mxu1 %v5607_v48 }
 0x21f   : > { %vm1964_vm9 = vcmp.gt.f32.partialorder %v1954_v24, 0.0  ;;  %v1978_v16 = vmul.f32 %v7372_v43, %v1954_v24  ;;  %vm2321_vm10 = vcmp.gt.f32.partialorder %v2297_v4, 0.0  ;;  %v2329_v51 = vmul.f32 %v7372_v43, %v2297_v4  ;;  %5253 = vmatpush3.bf16.msra.mxu1 %v5608_v7 }
 0x220   : > { %v2289_v41 = vadd.f32 %v5096_v12, %v2288_v44  ;;  %v5376_v5 = vpop.f32.mrf.mxu0 }
 0x221   : > { %v1986_v61 = vsel %vm1964_vm9, %v1954_v24, %v1978_v16  ;;  %v2337_v30 = vsel %vm2321_vm10, %v2297_v4, %v2329_v51  ;;  %v2300_v63 = vadd.f32 %v5376_v5, %v5105_v26 }
 0x222   : > { %1995 = vst.msk [vmem:[#allocation3 + $0x38] sm:$0xff] %vm1987_vm1, %v1986_v61  ;;  %2346 = vst.msk [vmem:[#allocation3 + $0x50] sm:$0xff] %vm1987_vm1, %v2337_v30  ;;  %vm2319_vm11 = vcmp.gt.f32.partialorder %v2289_v41, 0.0  ;;  %v2327_v2 = vmul.f32 %v7372_v43, %v2289_v41  ;;  %v2291_v21 = vpop.f32.mrf.mxu0  ;;  %v5609_v30 = vld [vmem:[%s8149_s3 + $0xd0] sm:$0xff]  }
 0x223   : > { %vm2322_vm12 = vcmp.gt.f32.partialorder %v2300_v63, 0.0  ;;  %v2330_v54 = vmul.f32 %v7372_v43, %v2300_v63  ;;  %v2292_v25 = vadd.f32 %v5099_v35, %v2291_v21  ;;  %5254 = vmatprep.subr.bf16.mxu1 %v5609_v30 }
 0x224   : > { %v2335_v11 = vsel %vm2319_vm11, %v2289_v41, %v2327_v2  ;;  %v5379_v22 = vpop.f32.mrf.mxu0  ;;  %v7691_v2 = vld [vmem:[%s8149_s3 + $0x118] sm:$0xff]  }
 0x225   : > { %2344 = vst.msk [vmem:[#allocation3 + $0x40] sm:$0xff] %vm1987_vm1, %v2335_v11  ;;  %v2338_v6 = vsel %vm2322_vm12, %v2300_v63, %v2330_v54  ;;  %vm2320_vm14 = vcmp.gt.f32.partialorder %v2292_v25, 0.0  ;;  %v2328_v3 = vmul.f32 %v7372_v43, %v2292_v25  ;;  %v2313_v29 = vadd.f32 %v5379_v22, %v5114_v55  ;;  %v5610_v63 = vld [vmem:[%s8149_s3 + $0x90] sm:$0xff]   ;;  %5405 = vmatprep.subr.bf16.mxu0 %v7691_v2 }
 0x226   : > { %2347 = vst.msk [vmem:[#allocation3 + $0x58] sm:$0xff] %vm1987_vm1, %v2338_v6  ;;  %v2304_v19 = vpop.f32.mrf.mxu0  ;;  %5255 = vmatpush3.bf16.msra.mxu1 %v5610_v63  ;;  %v5613_v6 = vld [vmem:[%s8149_s3 + $0x88] sm:$0xff]  }
 0x227   : > { %v2336_v47 = vsel %vm2320_vm14, %v2292_v25, %v2328_v3  ;;  %vm2325_vm15 = vcmp.gt.f32.partialorder %v2313_v29, 0.0  ;;  %v2333_v18 = vmul.f32 %v7372_v43, %v2313_v29  ;;  %v2305_v13 = vadd.f32 %v5108_v56, %v2304_v19  ;;  %v5612_v25 = vld [vmem:[%s8149_s3 + $0xc8] sm:$0xff]  }
 0x228   : > { %2345 = vst.msk [vmem:[#allocation3 + $0x48] sm:$0xff] %vm1987_vm1, %v2336_v47  ;;  %v5380_v9 = vpop.f32.mrf.mxu0  ;;  %5256 = vmatprep.subr.bf16.mxu1 %v5612_v25 }
 0x229   : > { %v3427_v10 = vld [vmem:[#allocation3 + $0x31] ss:$2 sm:$0xff]  ;;  %v2341_v14 = vsel %vm2325_vm15, %v2313_v29, %v2333_v18  ;;  %vm2323_vm5 = vcmp.gt.f32.partialorder %v2305_v13, 0.0  ;;  %v2331_v40 = vmul.f32 %v7372_v43, %v2305_v13  ;;  %v2316_v31 = vadd.f32 %v5380_v9, %v5117_v17  ;;  %v3122_v34 = vld [vmem:[#allocation3 + $0x30] ss:$2 sm:$0xff] }
 0x22a   : > { %3435 = vst.msk [vmem:[#allocation4 + $0x48] sm:$0xff] %vm1987_vm1, %v3427_v10  ;;  %2350 = vst.msk [vmem:[#allocation3 + $0x70] sm:$0xff] %vm1987_vm1, %v2341_v14  ;;  %v2307_v52 = vpop.f32.mrf.mxu0  ;;  %3142 = vrot.lane.b32.xlu1 %v3122_v34, %s8171_s15  ;;  %v3378_v20 = vld [vmem:[#allocation3 + $0x30] ss:$2 sm:$0xff]  ;;  %v3170_v0 = vld [vmem:[#allocation3 + $0x31] ss:$2 sm:$0xff]  ;;  %5257 = vmatpush3.bf16.msra.mxu1 %v5613_v6 }
 0x22b   : > { %v3078_v59 = vld [vmem:[#allocation3 + $0x31] ss:$2 sm:$0x7f]  ;;  %v2339_v27 = vsel %vm2323_vm5, %v2305_v13, %v2331_v40  ;;  %vm2326_vm13 = vcmp.gt.f32.partialorder %v2316_v31, 0.0  ;;  %v2334_v37 = vmul.f32 %v7372_v43, %v2316_v31  ;;  %v2308_v62 = vadd.f32 %v5111_v23, %v2307_v52  ;;  %3396 = vrot.lane.b32.xlu0 %v3378_v20, %s8171_s15  ;;  %3177 = vst.msk [vmem:[#allocation4 + $0x58] sm:$0xff] %vm1987_vm1, %v3170_v0  ;;  %v5615_v13 = vld [vmem:[%s8149_s3 + $0xc0] sm:$0xff]  }
 0x22c   : > { %v3337_v36 = vld [vmem:[#allocation3 + $0x31] ss:$2 sm:$0x7f]  ;;  %2348 = vst.msk [vmem:[#allocation3 + $0x60] sm:$0xff] %vm1987_vm1, %v2339_v27  ;;  %v5140_v45 = vpop.f32.mrf.mxu1  ;;  %v7660_v39 = vpop.f32.mrf.mxu0  ;;  %v3097_v33 = vrot.slane %v3078_v59, 7  ;;  %5258 = vmatprep.subr.bf16.mxu1 %v5615_v13 }
 0x22d   : > { %v3354_v50 = vrot.slane %v3337_v36, 7  ;;  %v3428_v28 = vld [vmem:[#allocation3 + $0x51] ss:$2 sm:$0xff]  ;;  %v2342_v58 = vsel %vm2326_vm13, %v2316_v31, %v2334_v37  ;;  %vm2324_vm3 = vcmp.gt.f32.partialorder %v2308_v62, 0.0  ;;  %v2332_v38 = vmul.f32 %v7372_v43, %v2308_v62  ;;  %v3124_v49 = vld [vmem:[#allocation3 + $0x50] ss:$2 sm:$0xff] }
 0x22e   : > { %3186 = vst.msk [vmem:[#allocation4 + $0x58] sm:$0x1] %vm3183_vm4, %v8169_v32  ;;  %v5141_v24 = vpop.f32.mrf.mxu1  ;;  %v2644_v4 = vpop.f32.mrf.mxu0  ;;  %v3080_v12 = vld [vmem:[#allocation3 + $0x51] ss:$2 sm:$0x7f]  ;;  %5259 = vmatpush3.bf16.msra.mxu1 %v5616_v57 }
 0x22f   : > { %3436 = vst.msk [vmem:[#allocation4 + $0x70] sm:$0xff] %vm1987_vm1, %v3428_v28  ;;  %2351 = vst.msk [vmem:[#allocation3 + $0x78] sm:$0xff] %vm1987_vm1, %v2342_v58  ;;  %v2340_v26 = vsel %vm2324_vm3, %v2308_v62, %v2332_v38  ;;  %v5142_v44 = vadd.f32 %v5141_v24, %v5140_v45  ;;  %3144 = vrot.lane.b32.xlu0 %v3124_v49, %s8171_s15  ;;  %v3197_v42 = vld [vmem:[#allocation3 + $0x41] ss:$2 sm:$0x7f]  ;;  %v3098_v60 = vrot.slane %v3080_v12, 7 }
 0x230   : > { %3112 = vst.msk [vmem:[#allocation4 + $0x50] sm:$0xfe] %vm3110_vm6, %v3097_v33  ;;  %3370 = vst.msk [vmem:[#allocation4 + $0x40] sm:$0xfe] %vm3110_vm6, %v3354_v50  ;;  %v5143_v1 = vpop.f32.mrf.mxu1  ;;  %v7678_v16 = vpop.f32.mrf.mxu0  ;;  %v3218_v51 = vrot.slane %v3197_v42, 7 }
 0x231   : > { %2349 = vst.msk [vmem:[#allocation3 + $0x68] sm:$0xff] %vm1987_vm1, %v2340_v26  ;;  %v3338_v41 = vld [vmem:[#allocation3 + $0x51] ss:$2 sm:$0x7f]  ;;  %v2645_v35 = vadd.f32 %v5142_v44, %v2644_v4  ;;  %v3261_v55 = vld [vmem:[#allocation3 + $0x40] ss:$2 sm:$0xff] }
 0x232   : > { %v3171_v5 = vld [vmem:[#allocation3 + $0x51] ss:$2 sm:$0xff]  ;;  %3113 = vst.msk [vmem:[#allocation4 + $0x78] sm:$0xfe] %vm3110_vm6, %v3098_v60  ;;  %v3355_v61 = vrot.slane %v3338_v41, 7  ;;  %v5144_v21 = vpop.f32.mrf.mxu1  ;;  %3228 = vrot.lane.b32.xlu1 %v3218_v51, %s8171_s15  ;;  %v2647_v46 = vpop.f32.mrf.mxu0 }
 0x233   : > { %3178 = vst.msk [vmem:[#allocation4 + $0x80] sm:$0xff] %vm1987_vm1, %v3171_v5  ;;  %vm2675_vm8 = vcmp.gt.f32.partialorder %v2645_v35, 0.0  ;;  %v2683_v8 = vmul.f32 %v7372_v43, %v2645_v35  ;;  %v5145_v54 = vadd.f32 %v5144_v21, %v5143_v1  ;;  %3274 = vst.msk [vmem:[#allocation4 + $0x60] sm:$0xff] %vm1987_vm1, %v3261_v55  ;;  %v3379_v23 = vld [vmem:[#allocation3 + $0x50] ss:$2 sm:$0xff] }
 0x234   : > { %3187 = vst.msk [vmem:[#allocation4 + $0x80] sm:$0x1] %vm3183_vm4, %v8169_v32  ;;  %v3282_v31 = vld [vmem:[#allocation3 + $0x41] ss:$2 sm:$0xff]  ;;  %v7737_v50 = vld [vmem:[%s8148_s2] ss:$0 sm:$0xff]  ;;  %v5391_v24 = vpop.f32.mrf.mxu0 }
 0x235   : > { %3371 = vst.msk [vmem:[#allocation4 + $0x68] sm:$0xfe] %vm3110_vm6, %v3355_v61  ;;  %v2691_v11 = vsel %vm2675_vm8, %v2645_v35, %v2683_v8  ;;  %v2648_v22 = vadd.f32 %v5145_v54, %v2647_v46  ;;  %v3281_v34 = vld [vmem:[#allocation3 + $0x21] ss:$2 sm:$0xff] }
 0x236   : > { %v3429_v56 = vld [vmem:[#allocation3 + $0x71] ss:$2 sm:$0xff]  ;;  %2700 = vst.msk [vmem:[#allocation3 + $0x80] sm:$0xff] %vm1987_vm1, %v2691_v11  ;;  %3296 = vrot.lane.b32.xlu1 %v3280_v15, %s8171_s15  ;;  %v3126_v52 = vld [vmem:[#allocation3 + $0x70] ss:$2 sm:$0xff]  ;;  %v2660_v42 = vpop.f32.mrf.mxu0 }
 0x237   : > { %3437 = vst.msk [vmem:[#allocation4 + $0x98] sm:$0xff] %vm1987_vm1, %v3429_v56  ;;  %v3082_v3 = vld [vmem:[#allocation3 + $0x71] ss:$2 sm:$0x7f]  ;;  %vm2676_vm9 = vcmp.gt.f32.partialorder %v2648_v22, 0.0  ;;  %v2684_v29 = vmul.f32 %v7372_v43, %v2648_v22 }
 0x238   : > { %v3199_v17 = vld [vmem:[#allocation3 + $0x61] ss:$2 sm:$0x7f]  ;;  %v3099_v47 = vrot.slane %v3082_v3, 7  ;;  %v3263_v10 = vld [vmem:[#allocation3 + $0x60] ss:$2 sm:$0xff]  ;;  %v5392_v30 = vpop.f32.mrf.mxu0 }
 0x239   : > { %v3219_v19 = vrot.slane %v3199_v17, 7  ;;  %v3339_v18 = vld [vmem:[#allocation3 + $0x71] ss:$2 sm:$0x7f]  ;;  %v2692_v53 = vsel %vm2676_vm9, %v2648_v22, %v2684_v29  ;;  %3275 = vst.msk [vmem:[#allocation4 + $0x88] sm:$0xff] %vm1987_vm1, %v3263_v10 }
 0x23a   : > { %v3356_v9 = vrot.slane %v3339_v18, 7  ;;  %2701 = vst.msk [vmem:[#allocation3 + $0x88] sm:$0xff] %vm1987_vm1, %v2692_v53  ;;  %3398 = vrot.lane.b32.xlu1 %v3379_v23, %s8171_s15  ;;  %v3172_v43 = vld [vmem:[#allocation3 + $0x71] ss:$2 sm:$0xff]  ;;  %v3380_v20 = vld [vmem:[#allocation3 + $0x70] ss:$2 sm:$0xff]  ;;  %v2663_v8 = vpop.f32.mrf.mxu0 }
 0x23b   : > { %3230 = vrot.lane.b32.xlu0 %v3219_v19, %s8171_s15  ;;  %3114 = vst.msk [vmem:[#allocation4 + $0xa0] sm:$0xfe] %vm3110_vm6, %v3099_v47  ;;  %v3283_v37 = vld [vmem:[#allocation3 + $0x61] ss:$2 sm:$0xff] }
 0x23c   : > { %3372 = vst.msk [vmem:[#allocation4 + $0x90] sm:$0xfe] %vm3110_vm6, %v3356_v9  ;;  %v3395_v14 = vpop.permute.xlu1 %3394  ;;  %v3443_v47 = vld [vmem:[#allocation4] sm:$0xff]  ;;  %v3444_v53 = vld [vmem:[#allocation4 + $0x8] sm:$0xff] }
 0x23d   : > { %3179 = vst.msk [vmem:[#allocation4 + $0xa8] sm:$0xff] %vm1987_vm1, %v3172_v43  ;;  %v3141_v40 = vpop.permute.xlu0 %3140 }
 0x23e   : > { %3188 = vst.msk [vmem:[#allocation4 + $0xa8] sm:$0x1] %vm3183_vm4, %v8169_v32  ;;  %3300 = vrot.lane.b32.xlu1 %v3282_v31, %s8171_s15 }
 0x23f   : > { %3418 = vst.msk [vmem:[#allocation4 + $0x18] sm:$0xff] %vm3118_vm7, %v3395_v14  ;;  %3161 = vst.msk [vmem:[#allocation4 + $0x28] sm:$0xff] %vm3118_vm7, %v3141_v40  ;;  %3298 = vrot.lane.b32.xlu0 %v3281_v34, %s8171_s15  ;;  %v5614_v14 = vld [vmem:[%s8149_s3 + $0x110] sm:$0xff]  }
 0x241   : > { %v3265_v59 = vld [vmem:[#allocation3 + $0x80] ss:$2 sm:$0xff]  ;;  %v3201_v4 = vld [vmem:[#allocation3 + $0x81] ss:$2 sm:$0x7f] }
 0x242   : > { %3146 = vrot.lane.b32.xlu1 %v3126_v52, %s8171_s15  ;;  %3276 = vst.msk [vmem:[#allocation4 + $0xb0] sm:$0xff] %vm1987_vm1, %v3265_v59  ;;  %v3220_v35 = vrot.slane %v3201_v4, 7 }
 0x243   : > { %3400 = vrot.lane.b32.xlu0 %v3380_v20, %s8171_s15  ;;  %v5617_v20 = vld [vmem:[%s8149_s3 + $0x108] sm:$0xff]  }
 0x244   : > { %v5146_v27 = vpop.f32.mrf.mxu1 }
 0x246   : > { %v5147_v62 = vpop.f32.mrf.mxu1  ;;  %v3448_v18 = vld [vmem:[#allocation4 + $0x28] sm:$0xff] }
 0x247   : > { %3302 = vrot.lane.b32.xlu0 %v3283_v37, %s8171_s15  ;;  %v5148_v36 = vadd.f32 %v5147_v62, %v5146_v27  ;;  %v3463_v43 = vpack.c.bf16 %v3448_v18, %v3443_v47  ;;  %v5618_v62 = vld [vmem:[%s8149_s3 + $0x100] sm:$0xff]  }
 0x248   : > { %v5149_v0 = vpop.f32.mrf.mxu1 }
 0x249   : > { %v2653_v45 = vadd.f32 %v7660_v39, %v5148_v36  ;;  %v5619_v39 = vld [vmem:[%s8149_s3 + $0x78] sm:$0xff]  }
 0x24a   : > { %v5150_v33 = vpop.f32.mrf.mxu1  ;;  %5278 = vmatprep.subr.bf16.mxu1 %v5619_v39 }
 0x24b   : > { %vm2677_vm10 = vcmp.gt.f32.partialorder %v2653_v45, 0.0  ;;  %v2685_v48 = vmul.f32 %v7737_v50, %v2653_v45  ;;  %v5151_v7 = vadd.f32 %v5150_v33, %v5149_v0 }
 0x24d   : > { %v2693_v28 = vsel %vm2677_vm10, %v2653_v45, %v2685_v48  ;;  %v2656_v58 = vadd.f32 %v7678_v16, %v5151_v7 }
 0x24e   : > { %2702 = vst.msk [vmem:[#allocation3 + $0x90] sm:$0xff] %vm1987_vm1, %v2693_v28 }
 0x24f   : > { %vm2678_vm11 = vcmp.gt.f32.partialorder %v2656_v58, 0.0  ;;  %v2686_v38 = vmul.f32 %v7737_v50, %v2656_v58 }
 0x251   : > { %v2694_v49 = vsel %vm2678_vm11, %v2656_v58, %v2686_v38 }
 0x252   : > { %2703 = vst.msk [vmem:[#allocation3 + $0x98] sm:$0xff] %vm1987_vm1, %v2694_v49 }
 0x259   : > { %v3430_v12 = vld [vmem:[#allocation3 + $0x91] ss:$2 sm:$0xff]  ;;  %v3381_v26 = vld [vmem:[#allocation3 + $0x90] ss:$2 sm:$0xff] }
 0x25a   : > { %v3128_v44 = vld [vmem:[#allocation3 + $0x90] ss:$2 sm:$0xff]  ;;  %3438 = vst.msk [vmem:[#allocation4 + $0xc0] sm:$0xff] %vm1987_vm1, %v3430_v12  ;;  %3402 = vrot.lane.b32.xlu1 %v3381_v26, %s8171_s15  ;;  %v3340_v60 = vld [vmem:[#allocation3 + $0x91] ss:$2 sm:$0x7f] }
 0x25b   : > { %3148 = vrot.lane.b32.xlu0 %v3128_v44, %s8171_s15  ;;  %v3084_v1 = vld [vmem:[#allocation3 + $0x91] ss:$2 sm:$0x7f]  ;;  %v3357_v16 = vrot.slane %v3340_v60, 7 }
 0x25c   : > { %v3100_v51 = vrot.slane %v3084_v1, 7  ;;  %v3173_v41 = vld [vmem:[#allocation3 + $0x91] ss:$2 sm:$0xff]  ;;  %v5152_v5 = vpop.f32.mrf.mxu1 }
 0x25d   : > { %3180 = vst.msk [vmem:[#allocation4 + $0xd0] sm:$0xff] %vm1987_vm1, %v3173_v41 }
 0x25e   : > { %3373 = vst.msk [vmem:[#allocation4 + $0xb8] sm:$0xfe] %vm3110_vm6, %v3357_v16  ;;  %3115 = vst.msk [vmem:[#allocation4 + $0xc8] sm:$0xfe] %vm3110_vm6, %v3100_v51  ;;  %v5153_v61 = vpop.f32.mrf.mxu1  ;;  %3232 = vrot.lane.b32.xlu1 %v3220_v35, %s8171_s15 }
 0x25f   : > { %3189 = vst.msk [vmem:[#allocation4 + $0xd0] sm:$0x1] %vm3183_vm4, %v8169_v32  ;;  %v5154_v63 = vadd.f32 %v5153_v61, %v5152_v5 }
 0x260   : > { %v5155_v21 = vpop.f32.mrf.mxu1 }
 0x261   : > { %v2661_v46 = vadd.f32 %v5154_v63, %v2660_v42 }
 0x262   : > { %v5156_v55 = vpop.f32.mrf.mxu1 }
 0x263   : > { %vm2679_vm12 = vcmp.gt.f32.partialorder %v2661_v46, 0.0  ;;  %v2687_v54 = vmul.f32 %v7737_v50, %v2661_v46  ;;  %v5157_v25 = vadd.f32 %v5156_v55, %v5155_v21 }
 0x265   : > { %v2695_v56 = vsel %vm2679_vm12, %v2661_v46, %v2687_v54  ;;  %v2664_v11 = vadd.f32 %v5157_v25, %v2663_v8  ;;  %v3446_v25 = vld [vmem:[#allocation4 + $0x18] sm:$0xff] }
 0x266   : > { %2704 = vst.msk [vmem:[#allocation3 + $0xa0] sm:$0xff] %vm1987_vm1, %v2695_v56 }
 0x267   : > { %vm2680_vm14 = vcmp.gt.f32.partialorder %v2664_v11, 0.0  ;;  %v2688_v22 = vmul.f32 %v7737_v50, %v2664_v11 }
 0x269   : > { %v2696_v15 = vsel %vm2680_vm14, %v2664_v11, %v2688_v22 }
 0x26a   : > { %2705 = vst.msk [vmem:[#allocation3 + $0xa8] sm:$0xff] %vm1987_vm1, %v2696_v15 }
 0x26e   : > { %v3227_v6 = vpop.permute.xlu1 %3226 }
 0x26f   : > { %3250 = vst.msk [vmem:[#allocation4 + $0x30] sm:$0xfe] %vm3248_vm2, %v3227_v6 }
 0x271   : > { %v3203_v3 = vld [vmem:[#allocation3 + $0xa1] ss:$2 sm:$0x7f]  ;;  %v3267_v17 = vld [vmem:[#allocation3 + $0xa0] ss:$2 sm:$0xff] }
 0x272   : > { %v3221_v29 = vrot.slane %v3203_v3, 7  ;;  %3277 = vst.msk [vmem:[#allocation4 + $0xd8] sm:$0xff] %vm1987_vm1, %v3267_v17  ;;  %v3284_v3 = vld [vmem:[#allocation3 + $0x81] ss:$2 sm:$0xff] }
 0x274   : > { %v5158_v19 = vpop.f32.mrf.mxu1  ;;  %3234 = vrot.lane.b32.xlu0 %v3221_v29, %s8171_s15 }
 0x276   : > { %v5159_v13 = vpop.f32.mrf.mxu1  ;;  %v3449_v23 = vld [vmem:[#allocation4 + $0x30] sm:$0xff] }
 0x277   : > { %v5160_v9 = vadd.f32 %v5159_v13, %v5158_v19  ;;  %v3464_v57 = vpack.c.bf16 %v3449_v23, %v3444_v53 }
 0x278   : > { %v5161_v10 = vpop.f32.mrf.mxu1 }
 0x279   : > { %v2669_v40 = vadd.f32 %v5391_v24, %v5160_v9  ;;  %3805 = vmatprep.mubr.bf16.mxu0 %v3464_v57 }
 0x27a   : > { %v5162_v31 = vpop.f32.mrf.mxu1  ;;  %3806 = vmatmul.mubr.bf16.vlgmr.msra.gmra.mxu0 %v3463_v43 }
 0x27b   : > { %vm2681_vm15 = vcmp.gt.f32.partialorder %v2669_v40, 0.0  ;;  %v2689_v34 = vmul.f32 %v7737_v50, %v2669_v40  ;;  %v5163_v52 = vadd.f32 %v5162_v31, %v5161_v10  ;;  %5406 = vmatpush3.bf16.msra.mxu0 %v7691_v2  ;;  %v5399_v2 = vpop.f32.mrf.mxu0 }
 0x27c   : > { %5407 = vmatprep.subr.bf16.mxu0 %v5614_v14 }
 0x27d   : > { %v2697_v59 = vsel %vm2681_vm15, %v2669_v40, %v2689_v34  ;;  %v2672_v27 = vadd.f32 %v5392_v30, %v5163_v52  ;;  %v3000_v28 = vpop.f32.mrf.mxu0  ;;  %v5635_v40 = vld [vmem:[%s8149_s3 + $0xf8] sm:$0xff]  }
 0x27e   : > { %2706 = vst.msk [vmem:[#allocation3 + $0xb0] sm:$0xff] %vm1987_vm1, %v2697_v59 }
 0x27f   : > { %vm2682_vm5 = vcmp.gt.f32.partialorder %v2672_v27, 0.0  ;;  %v2690_v37 = vmul.f32 %v7737_v50, %v2672_v27  ;;  %5408 = vmatpush3.bf16.msra.mxu0 %v5614_v14  ;;  %v5400_v4 = vpop.f32.mrf.mxu0 }
 0x280   : > { %5409 = vmatprep.subr.bf16.mxu0 %v5617_v20 }
 0x281   : > { %v2698_v36 = vsel %vm2682_vm5, %v2672_v27, %v2690_v37  ;;  %v3003_v60 = vpop.f32.mrf.mxu0  ;;  %v3452_v27 = vld [vmem:[#allocation4 + $0x48] sm:$0xff] }
 0x282   : > { %2707 = vst.msk [vmem:[#allocation3 + $0xb8] sm:$0xff] %vm1987_vm1, %v2698_v36 }
 0x283   : > { %5410 = vmatpush3.bf16.msra.mxu0 %v5617_v20 }
 0x284   : > { %5411 = vmatprep.subr.bf16.mxu0 %v5618_v62 }
 0x287   : > { %5412 = vmatpush3.bf16.msra.mxu0 %v5618_v62 }
 0x288   : > { %5306 = vmatprep.subr.bf16.mxu0 %v5635_v40 }
 0x289   : > { %v3431_v0 = vld [vmem:[#allocation3 + $0xb1] ss:$2 sm:$0xff]  ;;  %v3130_v45 = vld [vmem:[#allocation3 + $0xb0] ss:$2 sm:$0xff] }
 0x28a   : > { %v3382_v33 = vld [vmem:[#allocation3 + $0xb0] ss:$2 sm:$0xff]  ;;  %3439 = vst.msk [vmem:[#allocation4 + $0xe8] sm:$0xff] %vm1987_vm1, %v3431_v0  ;;  %3150 = vrot.lane.b32.xlu1 %v3130_v45, %s8171_s15  ;;  %v3086_v48 = vld [vmem:[#allocation3 + $0xb1] ss:$2 sm:$0x7f]  ;;  %v7810_v0 = vpop.f32.mrf.mxu0 }
 0x28b   : > { %3404 = vrot.lane.b32.xlu0 %v3382_v33, %s8171_s15  ;;  %v3341_v7 = vld [vmem:[#allocation3 + $0xb1] ss:$2 sm:$0x7f]  ;;  %v3101_v58 = vrot.slane %v3086_v48, 7 }
 0x28c   : > { %v3358_v38 = vrot.slane %v3341_v7, 7  ;;  %v3174_v49 = vld [vmem:[#allocation3 + $0xb1] ss:$2 sm:$0xff] }
 0x28d   : > { %3181 = vst.msk [vmem:[#allocation4 + $0xf8] sm:$0xff] %vm1987_vm1, %v3174_v49  ;;  %v5186_v39 = vpop.f32.mrf.mxu1  ;;  %v5620_v33 = vld [vmem:[%s8149_s3 + $0x38] sm:$0xff]  }
 0x28e   : > { %3116 = vst.msk [vmem:[#allocation4 + $0xf0] sm:$0xfe] %vm3110_vm6, %v3101_v58  ;;  %3374 = vst.msk [vmem:[#allocation4 + $0xe0] sm:$0xfe] %vm3110_vm6, %v3358_v38  ;;  %v5621_v58 = vld [vmem:[%s8149_s3 + $0x70] sm:$0xff]  }
 0x28f   : > { %3190 = vst.msk [vmem:[#allocation4 + $0xf8] sm:$0x1] %vm3183_vm4, %v8169_v32  ;;  %v5187_v24 = vpop.f32.mrf.mxu1 }
 0x290   : > { %v5188_v12 = vadd.f32 %v5187_v24, %v5186_v39 }
 0x291   : > { %v5189_v26 = vpop.f32.mrf.mxu1 }
 0x292   : > { %v3001_v44 = vadd.f32 %v5188_v12, %v3000_v28 }
 0x293   : > { %v5190_v42 = vpop.f32.mrf.mxu1 }
 0x294   : > { %vm3031_vm13 = vcmp.gt.f32.partialorder %v3001_v44, 0.0  ;;  %v3039_v1 = vmul.f32 %v7737_v50, %v3001_v44  ;;  %v5191_v16 = vadd.f32 %v5190_v42, %v5189_v26  ;;  %v3462_v42 = vld [vmem:[#allocation4 + $0x98] sm:$0xff] }
 0x296   : > { %v3047_v51 = vsel %vm3031_vm13, %v3001_v44, %v3039_v1  ;;  %v3004_v41 = vadd.f32 %v5191_v16, %v3003_v60  ;;  %v3457_v44 = vld [vmem:[#allocation4 + $0x70] sm:$0xff] }
 0x297   : > { %3056 = vst.msk [vmem:[#allocation3 + $0xc0] sm:$0xff] %vm1987_vm1, %v3047_v51  ;;  %v5622_v60 = vld [vmem:[%s8149_s3 + $0x30] sm:$0xff]  }
 0x298   : > { %vm3032_vm3 = vcmp.gt.f32.partialorder %v3004_v41, 0.0  ;;  %v3040_v5 = vmul.f32 %v7737_v50, %v3004_v41 }
 0x29a   : > { %v3048_v35 = vsel %vm3032_vm3, %v3004_v41, %v3040_v5 }
 0x29b   : > { %3057 = vst.msk [vmem:[#allocation3 + $0xc8] sm:$0xff] %vm1987_vm1, %v3048_v35 }
 0x29c   : > { %v3143_v61 = vpop.permute.xlu1 %3142 }
 0x29d   : > { %3162 = vst.msk [vmem:[#allocation4 + $0x50] sm:$0xff] %vm3118_vm7, %v3143_v61  ;;  %v3397_v30 = vpop.permute.xlu0 %3396 }
 0x29e   : > { %3419 = vst.msk [vmem:[#allocation4 + $0x40] sm:$0xff] %vm3118_vm7, %v3397_v30 }
 0x2a1   : > { %v3145_v63 = vpop.permute.xlu0 %3144 }
 0x2a2   : > { %3163 = vst.msk [vmem:[#allocation4 + $0x78] sm:$0xff] %vm3118_vm7, %v3145_v63  ;;  %v3205_v21 = vld [vmem:[#allocation3 + $0xc1] ss:$2 sm:$0x7f]  ;;  %v3269_v55 = vld [vmem:[#allocation3 + $0xc0] ss:$2 sm:$0xff] }
 0x2a3   : > { %v3222_v46 = vrot.slane %v3205_v21, 7  ;;  %3278 = vst.msk [vmem:[#allocation4 + $0x100] sm:$0xff] %vm1987_vm1, %v3269_v55  ;;  %v3286_v61 = vld [vmem:[#allocation3 + $0xc1] ss:$2 sm:$0xff]  ;;  %v5636_v21 = vld [vmem:[%s8149_s3 + $0xb8] sm:$0xff]   ;;  %v3472_v55 = vpack.c.bf16 %v3462_v42, %v3457_v44 }
 0x2a4   : > { %v5192_v8 = vpop.f32.mrf.mxu1  ;;  %v3229_v54 = vpop.permute.xlu1 %3228  ;;  %v3453_v62 = vld [vmem:[#allocation4 + $0x50] sm:$0xff]  ;;  %v5623_v63 = vld [vmem:[%s8149_s3 + $0x68] sm:$0xff]  }
 0x2a5   : > { %3236 = vrot.lane.b32.xlu1 %v3222_v46, %s8171_s15  ;;  %3251 = vst.msk [vmem:[#allocation4 + $0x58] sm:$0xfe] %vm3248_vm2, %v3229_v54  ;;  %v3451_v56 = vld [vmem:[#allocation4 + $0x40] sm:$0xff]  ;;  %v5637_v54 = vld [vmem:[%s8149_s3 + $0xf0] sm:$0xff]  }
 0x2a6   : > { %v5193_v11 = vpop.f32.mrf.mxu1  ;;  %v3466_v22 = vpack.c.bf16 %v3451_v56, %v3446_v25 }
 0x2a7   : > { %v5194_v15 = vadd.f32 %v5193_v11, %v5192_v8 }
 0x2a8   : > { %3854 = vmatprep.mubr.bf16.mxu1 %v3466_v22  ;;  %v5195_v6 = vpop.f32.mrf.mxu1  ;;  %v3297_v29 = vpop.permute.xlu1 %3296 }
 0x2a9   : > { %v3009_v17 = vadd.f32 %v5399_v2, %v5194_v15  ;;  %3304 = vrot.lane.b32.xlu1 %v3284_v3, %s8171_s15  ;;  %3320 = vst.msk [vmem:[#allocation4 + $0x10] sm:$0xff] %vm3118_vm7, %v3297_v29  ;;  %v3458_v31 = vld [vmem:[#allocation4 + $0x78] sm:$0xff]  ;;  %v3447_v2 = vld [vmem:[#allocation4 + $0x20] sm:$0xff]  ;;  %v5624_v15 = vld [vmem:[%s8149_s3 + $0x28] sm:$0xff]  }
 0x2aa   : > { %v5196_v19 = vpop.f32.mrf.mxu1  ;;  %v3468_v36 = vpack.c.bf16 %v3458_v31, %v3453_v62  ;;  %v3467_v45 = vpack.c.bf16 %v3452_v27, %v3447_v2  ;;  %v5625_v29 = vld [vmem:[%s8149_s3 + $0x60] sm:$0xff]   ;;  %v5628_v31 = vld [vmem:[%s8149_s3 + $0x18] sm:$0xff]   ;;  %v5630_v62 = vld [vmem:[%s8149_s3 + $0x10] sm:$0xff]  }
 0x2ab   : > { %vm3033_vm8 = vcmp.gt.f32.partialorder %v3009_v17, 0.0  ;;  %v3041_v47 = vmul.f32 %v7737_v50, %v3009_v17  ;;  %v5197_v18 = vadd.f32 %v5196_v19, %v5195_v6  ;;  %v5631_v2 = vld [vmem:[%s8149_s3 + $0x48] sm:$0xff]  }
 0x2ac   : > { %v3399_v13 = vpop.permute.xlu1 %3398  ;;  %v3454_v20 = vld [vmem:[#allocation4 + $0x58] sm:$0xff] }
 0x2ad   : > { %v3231_v53 = vpop.permute.xlu0 %3230  ;;  %v3049_v23 = vsel %vm3033_vm8, %v3009_v17, %v3041_v47  ;;  %v3012_v9 = vadd.f32 %v5400_v4, %v5197_v18  ;;  %3420 = vst.msk [vmem:[#allocation4 + $0x68] sm:$0xff] %vm3118_vm7, %v3399_v13  ;;  %v3016_v4 = vpop.f32.mrf.mxu0  ;;  %v5638_v17 = vld [vmem:[%s8149_s3 + $0xb0] sm:$0xff]   ;;  %v5639_v18 = vld [vmem:[%s8149_s3 + $0xe8] sm:$0xff]  }
 0x2ae   : > { %3252 = vst.msk [vmem:[#allocation4 + $0x80] sm:$0xfe] %vm3248_vm2, %v3231_v53 }
 0x2af   : > { %3058 = vst.msk [vmem:[#allocation3 + $0xd0] sm:$0xff] %vm1987_vm1, %v3049_v23  ;;  %vm3034_vm9 = vcmp.gt.f32.partialorder %v3012_v9, 0.0  ;;  %v3042_v57 = vmul.f32 %v7737_v50, %v3012_v9  ;;  %v7836_v8 = vpop.f32.mrf.mxu0  ;;  %v5626_v23 = vld [vmem:[%s8149_s3 + $0x20] sm:$0xff]  }
 0x2b0   : > { %v3301_v10 = vpop.permute.xlu1 %3300  ;;  %v3445_v7 = vld [vmem:[#allocation4 + $0x10] sm:$0xff] }
 0x2b1   : > { %v3299_v43 = vpop.permute.xlu0 %3298  ;;  %v3050_v14 = vsel %vm3034_vm9, %v3012_v9, %v3042_v57  ;;  %3322 = vst.msk [vmem:[#allocation4 + $0x60] sm:$0xff] %vm3118_vm7, %v3301_v10  ;;  %v3019_v47 = vpop.f32.mrf.mxu0  ;;  %v5627_v10 = vld [vmem:[%s8149_s3 + $0x58] sm:$0xff]  }
 0x2b2   : > { %3321 = vst.msk [vmem:[#allocation4 + $0x38] sm:$0xff] %vm3118_vm7, %v3299_v43  ;;  %v5640_v43 = vld [vmem:[%s8149_s3 + $0xa8] sm:$0xff]  }
 0x2b3   : > { %3059 = vst.msk [vmem:[#allocation3 + $0xd8] sm:$0xff] %vm1987_vm1, %v3050_v14  ;;  %v5641_v14 = vld [vmem:[%s8149_s3 + $0xe0] sm:$0xff]  }
 0x2b4   : > { %v3147_v34 = vpop.permute.xlu1 %3146  ;;  %v3456_v41 = vld [vmem:[#allocation4 + $0x68] sm:$0xff] }
 0x2b5   : > { %v3401_v52 = vpop.permute.xlu0 %3400  ;;  %v3459_v59 = vld [vmem:[#allocation4 + $0x80] sm:$0xff]  ;;  %3164 = vst.msk [vmem:[#allocation4 + $0xa0] sm:$0xff] %vm3118_vm7, %v3147_v34 }
 0x2b6   : > { %3421 = vst.msk [vmem:[#allocation4 + $0x90] sm:$0xff] %vm3118_vm7, %v3401_v52  ;;  %v3469_v37 = vpack.c.bf16 %v3459_v59, %v3454_v20  ;;  %v5629_v52 = vld [vmem:[%s8149_s3 + $0x50] sm:$0xff]   ;;  %v5642_v20 = vld [vmem:[%s8149_s3 + $0xa0] sm:$0xff]   ;;  %v5643_v59 = vld [vmem:[%s8149_s3 + $0xd8] sm:$0xff]  }
 0x2b8   : > { %3813 = vmatprep.mubr.bf16.mxu0 %v3469_v37  ;;  %v3455_v11 = vld [vmem:[#allocation4 + $0x60] sm:$0xff] }
 0x2b9   : > { %v3303_v48 = vpop.permute.xlu0 %3302  ;;  %3814 = vmatmul.mubr.bf16.gmra.mxu0 %v3468_v36  ;;  %v3450_v28 = vld [vmem:[#allocation4 + $0x38] sm:$0xff] }
 0x2ba   : > { %v3432_v38 = vld [vmem:[#allocation3 + $0xd1] ss:$2 sm:$0xff]  ;;  %3323 = vst.msk [vmem:[#allocation4 + $0x88] sm:$0xff] %vm3118_vm7, %v3303_v48  ;;  %5413 = vmatprep.mubr.msk.bf16.mxu0 %vm1987_vm1, %v3467_v45  ;;  %v3383_v49 = vld [vmem:[#allocation3 + $0xd0] ss:$2 sm:$0xff]  ;;  %v3465_v24 = vpack.c.bf16 %v3450_v28, %v3445_v7 }
 0x2bb   : > { %v3132_v39 = vld [vmem:[#allocation3 + $0xd0] ss:$2 sm:$0xff]  ;;  %3440 = vst.msk [vmem:[#allocation4 + $0x110] sm:$0xff] %vm1987_vm1, %v3432_v38  ;;  %3406 = vrot.lane.b32.xlu1 %v3383_v49, %s8171_s15  ;;  %v3342_v12 = vld [vmem:[#allocation3 + $0xd1] ss:$2 sm:$0x7f] }
 0x2bc   : > { %3152 = vrot.lane.b32.xlu0 %v3132_v39, %s8171_s15  ;;  %v3088_v26 = vld [vmem:[#allocation3 + $0xd1] ss:$2 sm:$0x7f]  ;;  %3855 = vmatmul.mubr.bf16.vlgmr.msra.gmra.mxu1 %v3465_v24  ;;  %v3359_v1 = vrot.slane %v3342_v12, 7  ;;  %v5632_v38 = vld [vmem:[%s8149_s3 + $0x8] sm:$0xff]   ;;  %v5633_v24 = vld [vmem:[%s8149_s3 + $0x40] sm:$0xff]  }
 0x2bd   : > { %v3102_v16 = vrot.slane %v3088_v26, 7  ;;  %v5198_v51 = vpop.f32.mrf.mxu1  ;;  %v3461_v5 = vld [vmem:[#allocation4 + $0x90] sm:$0xff]  ;;  %5279 = vmatpush3.bf16.msra.mxu1 %v5620_v33  ;;  %v5644_v45 = vld [vmem:[%s8149_s3 + $0x98] sm:$0xff]  }
 0x2be   : > { %v3175_v35 = vld [vmem:[#allocation3 + $0xd1] ss:$2 sm:$0xff]  ;;  %v3471_v30 = vpack.c.bf16 %v3461_v5, %v3456_v41  ;;  %5280 = vmatprep.subr.bf16.mxu1 %v5621_v58  ;;  %3375 = vst.msk [vmem:[#allocation4 + $0x108] sm:$0xfe] %vm3110_vm6, %v3359_v1  ;;  %v5634_v1 = vld [vmem:[%s8149_s3] sm:$0xff]   ;;  %v5649_v5 = vld [vmem:[%s8149_s3 + $0x88] sm:$0xff]  }
 0x2bf   : > { %3117 = vst.msk [vmem:[#allocation4 + $0x118] sm:$0xfe] %vm3110_vm6, %v3102_v16  ;;  %v5199_v46 = vpop.f32.mrf.mxu1  ;;  %3308 = vrot.lane.b32.xlu1 %v3286_v61, %s8171_s15  ;;  %v5645_v48 = vld [vmem:[%s8149_s3 + $0xd0] sm:$0xff]   ;;  %v5646_v41 = vld [vmem:[%s8149_s3 + $0x118] sm:$0xff]  }
 0x2c0   : > { %3182 = vst.msk [vmem:[#allocation4 + $0x120] sm:$0xff] %vm1987_vm1, %v3175_v35  ;;  %v5200_v25 = vadd.f32 %v5199_v46, %v5198_v51  ;;  %3862 = vmatprep.mubr.bf16.mxu1 %v3471_v30  ;;  %v5651_v35 = vld [vmem:[%s8149_s3 + $0xc0] sm:$0xff]  }
 0x2c1   : > { %3191 = vst.msk [vmem:[#allocation4 + $0x120] sm:$0x1] %vm3183_vm4, %v8169_v32  ;;  %v5201_v56 = vpop.f32.mrf.mxu1  ;;  %5414 = vmatmul.mubr.msk.bf16.vlgmr.msra.gmra.mxu0 %vm1987_vm1, %v3472_v55  ;;  %v3460_v22 = vld [vmem:[#allocation4 + $0x88] sm:$0xff]  ;;  %5281 = vmatpush3.bf16.msra.mxu1 %v5622_v60 }
 0x2c2   : > { %v3017_v6 = vadd.f32 %v5200_v25, %v3016_v4  ;;  %v3470_v3 = vpack.c.bf16 %v3460_v22, %v3455_v11  ;;  %5282 = vmatprep.subr.bf16.mxu1 %v5623_v63  ;;  %5307 = vmatpush3.bf16.msra.mxu0 %v5636_v21  ;;  %v5647_v4 = vld [vmem:[%s8149_s3 + $0x90] sm:$0xff]   ;;  %v3285_v30 = vld [vmem:[#allocation3 + $0xa1] ss:$2 sm:$0xff] }
 0x2c3   : > { %v5202_v19 = vpop.f32.mrf.mxu1  ;;  %5308 = vmatprep.subr.bf16.mxu0 %v5637_v54  ;;  %v5652_v21 = vld [vmem:[%s8149_s3 + $0x80] sm:$0xff]  }
 0x2c4   : > { %vm3035_vm4 = vcmp.gt.f32.partialorder %v3017_v6, 0.0  ;;  %v3043_v13 = vmul.f32 %v7737_v50, %v3017_v6  ;;  %v5203_v53 = vadd.f32 %v5202_v19, %v5201_v56  ;;  %3863 = vmatmul.mubr.bf16.gmra.mxu1 %v3470_v3  ;;  %v5654_v19 = vld [vmem:[%s8149_s3 + $0x100] sm:$0xff]  }
 0x2c5   : > { %5283 = vmatpush3.bf16.msra.mxu1 %v5624_v15 }
 0x2c6   : > { %v3051_v9 = vsel %vm3035_vm4, %v3017_v6, %v3043_v13  ;;  %v3020_v57 = vadd.f32 %v5203_v53, %v3019_v47  ;;  %5284 = vmatprep.subr.bf16.mxu1 %v5625_v29  ;;  %5309 = vmatpush3.bf16.msra.mxu0 %v5638_v17  ;;  %v3925_v6 = vld [vmem:[#allocation4 + $0xa0] sm:$0xff]  ;;  %v5650_v29 = vld [vmem:[%s8149_s3 + $0x110] sm:$0xff]   ;;  %v5653_v17 = vld [vmem:[%s8149_s3 + $0x108] sm:$0xff]  }
 0x2c7   : > { %3060 = vst.msk [vmem:[#allocation3 + $0xe0] sm:$0xff] %vm1987_vm1, %v3051_v9  ;;  %5310 = vmatprep.subr.bf16.mxu0 %v5639_v18 }
 0x2c8   : > { %vm3036_vm10 = vcmp.gt.f32.partialorder %v3020_v57, 0.0  ;;  %v3044_v40 = vmul.f32 %v7737_v50, %v3020_v57 }
 0x2c9   : > { %5285 = vmatpush3.bf16.msra.mxu1 %v5626_v23 }
 0x2ca   : > { %v3052_v34 = vsel %vm3036_vm10, %v3020_v57, %v3044_v40  ;;  %5286 = vmatprep.subr.bf16.mxu1 %v5627_v10  ;;  %5311 = vmatpush3.bf16.msra.mxu0 %v5640_v43 }
 0x2cb   : > { %3061 = vst.msk [vmem:[#allocation3 + $0xe8] sm:$0xff] %vm1987_vm1, %v3052_v34  ;;  %5312 = vmatprep.subr.bf16.mxu0 %v5641_v14 }
 0x2cc   : > { %v5204_v27 = vpop.f32.mrf.mxu1  ;;  %v3403_v37 = vpop.permute.xlu1 %3402 }
 0x2cd   : > { %5287 = vmatpush3.bf16.msra.mxu1 %v5628_v31  ;;  %3422 = vst.msk [vmem:[#allocation4 + $0xb8] sm:$0xff] %vm3118_vm7, %v3403_v37  ;;  %v3149_v36 = vpop.permute.xlu0 %3148 }
 0x2ce   : > { %5288 = vmatprep.subr.bf16.mxu1 %v5629_v52  ;;  %5313 = vmatpush3.bf16.msra.mxu0 %v5642_v20  ;;  %3165 = vst.msk [vmem:[#allocation4 + $0xc8] sm:$0xff] %vm3118_vm7, %v3149_v36  ;;  %v5205_v33 = vpop.f32.mrf.mxu1  ;;  %v3929_v36 = vld [vmem:[#allocation4 + $0xc0] sm:$0xff] }
 0x2cf   : > { %5314 = vmatprep.subr.bf16.mxu0 %v5643_v59  ;;  %v5206_v7 = vadd.f32 %v5205_v33, %v5204_v27  ;;  %v3934_v59 = vld [vmem:[#allocation4 + $0xe8] sm:$0xff] }
 0x2d0   : > { %v5207_v28 = vpop.f32.mrf.mxu1  ;;  %v3233_v58 = vpop.permute.xlu1 %3232 }
 0x2d1   : > { %5289 = vmatpush3.bf16.msra.mxu1 %v5630_v62  ;;  %v3025_v49 = vadd.f32 %v7810_v0, %v5206_v7  ;;  %3253 = vst.msk [vmem:[#allocation4 + $0xa8] sm:$0xfe] %vm3248_vm2, %v3233_v58  ;;  %v5648_v0 = vld [vmem:[%s8149_s3 + $0xc8] sm:$0xff]   ;;  %v3939_v58 = vld [vmem:[#allocation4 + $0x110] sm:$0xff] }
 0x2d2   : > { %v3207_v39 = vld [vmem:[#allocation3 + $0xe1] ss:$2 sm:$0x7f]  ;;  %5290 = vmatprep.subr.bf16.mxu1 %v5631_v2  ;;  %5315 = vmatpush3.bf16.msra.mxu0 %v5644_v45  ;;  %v5208_v12 = vpop.f32.mrf.mxu1  ;;  %v3271_v44 = vld [vmem:[#allocation3 + $0xe0] ss:$2 sm:$0xff]  ;;  %v3949_v2 = vpack.c.bf16 %v3934_v59, %v3929_v36 }
 0x2d3   : > { %v3223_v26 = vrot.slane %v3207_v39, 7  ;;  %5316 = vmatprep.subr.bf16.mxu0 %v5645_v48  ;;  %vm3037_vm11 = vcmp.gt.f32.partialorder %v3025_v49, 0.0  ;;  %v3045_v42 = vmul.f32 %v7737_v50, %v3025_v49  ;;  %v5209_v60 = vadd.f32 %v5208_v12, %v5207_v28  ;;  %3279 = vst.msk [vmem:[#allocation4 + $0x128] sm:$0xff] %vm1987_vm1, %v3271_v44  ;;  %v3287_v54 = vld [vmem:[#allocation3 + $0xe1] ss:$2 sm:$0xff] }
 0x2d4   : > { %v3928_v13 = vld [vmem:[#allocation4 + $0xb8] sm:$0xff]  ;;  %v4437_v59 = vld [vmem:[%s8153_s7 + $0x28] sm:$0xff] }
 0x2d5   : > { %3238 = vrot.lane.b32.xlu0 %v3223_v26, %s8171_s15  ;;  %5291 = vmatpush3.bf16.msra.mxu1 %v5632_v38  ;;  %v3053_v16 = vsel %vm3037_vm11, %v3025_v49, %v3045_v42  ;;  %v3028_v51 = vadd.f32 %v7836_v8, %v5209_v60  ;;  %v3930_v56 = vld [vmem:[#allocation4 + $0xc8] sm:$0xff] }
 0x2d6   : > { %5292 = vmatprep.subr.bf16.mxu1 %v5633_v24  ;;  %5317 = vmatpush3.bf16.msra.mxu0 %v5647_v4  ;;  %3062 = vst.msk [vmem:[#allocation3 + $0xf0] sm:$0xff] %vm1987_vm1, %v3053_v16  ;;  %v3945_v3 = vpack.c.bf16 %v3930_v56, %v3925_v6  ;;  %v4433_v36 = vld [vmem:[%s8153_s7 + $0x8] sm:$0xff] }
 0x2d7   : > { %5318 = vmatprep.subr.bf16.mxu0 %v5648_v0  ;;  %vm3038_vm12 = vcmp.gt.f32.partialorder %v3028_v51, 0.0  ;;  %v3046_v61 = vmul.f32 %v7737_v50, %v3028_v51 }
 0x2d8   : > { %v3926_v11 = vld [vmem:[#allocation4 + $0xa8] sm:$0xff] }
 0x2d9   : > { %3306 = vrot.lane.b32.xlu0 %v3285_v30, %s8171_s15  ;;  %5293 = vmatpush3.bf16.msra.mxu1 %v5634_v1  ;;  %v3054_v63 = vsel %vm3038_vm12, %v3028_v51, %v3046_v61 }
 0x2da   : > { %5417 = vmatprep.subr.bf16.mxu1 %v5646_v41  ;;  %5319 = vmatpush3.bf16.msra.mxu0 %v5649_v5  ;;  %3063 = vst.msk [vmem:[#allocation3 + $0xf8] sm:$0xff] %vm1987_vm1, %v3054_v63  ;;  %v7966_v5 = vld [vmem:[%s8152_s6] ss:$0 sm:$0xff] }
 0x2db   : > { %5320 = vmatprep.subr.bf16.mxu0 %v5651_v35 }
 0x2de   : > { %5321 = vmatpush3.bf16.msra.mxu0 %v5652_v21 }
 0x2e1   : > { %v3433_v46 = vld [vmem:[#allocation3 + $0xf1] ss:$2 sm:$0xff]  ;;  %v3385_v55 = vld [vmem:[#allocation3 + $0xf0] ss:$2 sm:$0xff] }
 0x2e2   : > { %3441 = vst.msk [vmem:[#allocation4 + $0x138] sm:$0xff] %vm1987_vm1, %v3433_v46  ;;  %3408 = vrot.lane.b32.xlu0 %v3385_v55, %s8171_s15  ;;  %v3344_v50 = vld [vmem:[#allocation3 + $0xf1] ss:$2 sm:$0x7f] }
 0x2e3   : > { %v3360_v8 = vrot.slane %v3344_v50, 7 }
 0x2e5   : > { %3376 = vst.msk [vmem:[#allocation4 + $0x130] sm:$0xfe] %vm3110_vm6, %v3360_v8  ;;  %vm4515_vm6 = vcmask 64512  }
 0x2e6   : > { %3310 = vrot.lane.b32.xlu0 %v3287_v54, %s8171_s15  ;;  %v3235_v25 = vpop.permute.xlu0 %3234  ;;  %s8092_s15 = scalar_lea.hbm %s8157_s11, %s5031_s14 }
 0x2e7   : > { %3254 = vst.msk [vmem:[#allocation4 + $0xd0] sm:$0xfe] %vm3248_vm2, %v3235_v25 }
 0x2e9   : > { %v3944_v28 = vld [vmem:[#allocation4 + $0x138] sm:$0xff] }
 0x2ea   : > { %v3954_v49 = vpack.c.bf16 %v3944_v28, %v3939_v58 }
 0x2ee   : > { %v3931_v22 = vld [vmem:[#allocation4 + $0xd0] sm:$0xff] }
 0x2ef   : > { %v3946_v15 = vpack.c.bf16 %v3931_v22, %v3926_v11 }
 0x2f1   : > { %4281 = vmatprep.mubr.bf16.mxu1 %v3946_v15 }
 0x2f2   : > { %4282 = vmatmul.mubr.bf16.vlgmr.msra.gmra.mxu1 %v3945_v3 }
 0x2f3   : > { %5418 = vmatpush3.bf16.msra.mxu1 %v5646_v41 }
 0x2f4   : > { %5419 = vmatprep.subr.bf16.mxu1 %v5650_v29 }
 0x2f7   : > { %5420 = vmatpush3.bf16.msra.mxu1 %v5650_v29 }
 0x2f8   : > { %5421 = vmatprep.subr.bf16.mxu1 %v5653_v17 }
 0x2fb   : > { %5422 = vmatpush3.bf16.msra.mxu1 %v5653_v17 }
 0x2fc   : > { %v3151_v47 = vpop.permute.xlu1 %3150  ;;  %5423 = vmatprep.subr.bf16.mxu1 %v5654_v19 }
 0x2fd   : > { %v3405_v18 = vpop.permute.xlu0 %3404  ;;  %3166 = vst.msk [vmem:[#allocation4 + $0xf0] sm:$0xff] %vm3118_vm7, %v3151_v47 }
 0x2fe   : > { %3423 = vst.msk [vmem:[#allocation4 + $0xe0] sm:$0xff] %vm3118_vm7, %v3405_v18 }
 0x2ff   : > { %5424 = vmatpush3.bf16.msra.mxu1 %v5654_v19 }
 0x300   : > { %5429 = vmatprep.subr.mxu1 %v8169_v32 }
 0x304   : > { %v3935_v37 = vld [vmem:[#allocation4 + $0xf0] sm:$0xff] }
 0x305   : > { %v3933_v53 = vld [vmem:[#allocation4 + $0xe0] sm:$0xff] }
 0x306   : > { %v3948_v23 = vpack.c.bf16 %v3933_v53, %v3928_v13 }
 0x308   : > { %4330 = vmatprep.mubr.bf16.mxu0 %v3948_v23 }
 0x317   : > { %v3237_v9 = vpop.permute.xlu1 %3236 }
 0x318   : > { %3255 = vst.msk [vmem:[#allocation4 + $0xf8] sm:$0xfe] %vm3248_vm2, %v3237_v9 }
 0x31b   : > { %v3305_v57 = vpop.permute.xlu1 %3304 }
 0x31c   : > { %3324 = vst.msk [vmem:[#allocation4 + $0xb0] sm:$0xff] %vm3118_vm7, %v3305_v57 }
 0x31f   : > { %v3936_v52 = vld [vmem:[#allocation4 + $0xf8] sm:$0xff] }
 0x323   : > { %v3927_v45 = vld [vmem:[#allocation4 + $0xb0] sm:$0xff] }
 0x32d   : > { %v3407_v10 = vpop.permute.xlu1 %3406 }
 0x32e   : > { %v3153_v43 = vpop.permute.xlu0 %3152  ;;  %3424 = vst.msk [vmem:[#allocation4 + $0x108] sm:$0xff] %vm3118_vm7, %v3407_v10 }
 0x32f   : > { %3167 = vst.msk [vmem:[#allocation4 + $0x118] sm:$0xff] %vm3118_vm7, %v3153_v43 }
 0x331   : > { %v3309_v14 = vpop.permute.xlu1 %3308 }
 0x332   : > { %3326 = vst.msk [vmem:[#allocation4 + $0x100] sm:$0xff] %vm3118_vm7, %v3309_v14 }
 0x335   : > { %v3938_v39 = vld [vmem:[#allocation4 + $0x108] sm:$0xff] }
 0x336   : > { %v3940_v34 = vld [vmem:[#allocation4 + $0x118] sm:$0xff] }
 0x337   : > { %v3950_v62 = vpack.c.bf16 %v3940_v34, %v3935_v37  ;;  %v4435_v37 = vld [vmem:[%s8153_s7 + $0x18] sm:$0xff] }
 0x339   : > { %v3937_v12 = vld [vmem:[#allocation4 + $0x100] sm:$0xff] }
 0x33a   : > { %v5232_v44 = vpop.f32.mrf.mxu0 }
 0x33c   : > { %v5233_v42 = vpop.f32.mrf.mxu0 }
 0x33d   : > { %v5234_v51 = vadd.f32 %v5233_v42, %v5232_v44 }
 0x33e   : > { %v5235_v60 = vpop.f32.mrf.mxu0 }
 0x33f   : > { %v3808_v63 = vadd.f32 %v5234_v51, %v7966_v5 }
 0x340   : > { %v5236_v1 = vpop.f32.mrf.mxu0 }
 0x341   : > { %v5237_v21 = vadd.f32 %v5236_v1, %v5235_v60 }
 0x343   : > { %v3811_v56 = vadd.f32 %v5237_v21, %v7966_v5 }
 0x347   : > { %v3239_v40 = vpop.permute.xlu0 %3238 }
 0x348   : > { %3256 = vst.msk [vmem:[#allocation4 + $0x120] sm:$0xfe] %vm3248_vm2, %v3239_v40 }
 0x34b   : > { %v3307_v31 = vpop.permute.xlu0 %3306 }
 0x34c   : > { %3325 = vst.msk [vmem:[#allocation4 + $0xd8] sm:$0xff] %vm3118_vm7, %v3307_v31 }
 0x34f   : > { %v3941_v20 = vld [vmem:[#allocation4 + $0x120] sm:$0xff] }
 0x350   : > { %v3951_v27 = vpack.c.bf16 %v3941_v20, %v3936_v52  ;;  %v4439_v52 = vld [vmem:[%s8153_s7 + $0x38] sm:$0xff]  ;;  %v4438_v20 = vld [vmem:[%s8153_s7 + $0x30] sm:$0xff] }
 0x352   : > { %4289 = vmatprep.mubr.bf16.mxu1 %v3951_v27  ;;  %v4436_v27 = vld [vmem:[%s8153_s7 + $0x20] sm:$0xff] }
 0x353   : > { %4290 = vmatmul.mubr.bf16.gmra.mxu1 %v3950_v62  ;;  %v3932_v33 = vld [vmem:[#allocation4 + $0xd8] sm:$0xff]  ;;  %v4434_v62 = vld [vmem:[%s8153_s7 + $0x10] sm:$0xff] }
 0x354   : > { %5425 = vmatprep.mubr.msk.bf16.mxu1 %vm1987_vm1, %v3949_v2  ;;  %v3947_v48 = vpack.c.bf16 %v3932_v33, %v3927_v45  ;;  %v3409_v7 = vpop.permute.xlu0 %3408  ;;  %v4432_v2 = vld [vmem:[%s8153_s7] sm:$0xff] }
 0x355   : > { %3425 = vst.msk [vmem:[#allocation4 + $0x130] sm:$0xff] %vm3118_vm7, %v3409_v7 }
 0x356   : > { %4331 = vmatmul.mubr.bf16.vlgmr.msra.gmra.mxu0 %v3947_v48 }
 0x358   : > { %v3311_v38 = vpop.permute.xlu0 %3310 }
 0x359   : > { %3327 = vst.msk [vmem:[#allocation4 + $0x128] sm:$0xff] %vm3118_vm7, %v3311_v38  ;;  %vm5730_vm7 = vmmov 0  }
 0x35b   : > { %5426 = vmatmul.mubr.msk.bf16.vlgmr.msra.gmra.mxu1 %vm1987_vm1, %v3954_v49 }
 0x35c   : > { %v3943_v24 = vld [vmem:[#allocation4 + $0x130] sm:$0xff]  ;;  %5430 = vmatpush3.msra.mxu1 %v4439_v52  ;;  %5445 = vmatprep.mubr.msk.f32.mxu1 %vm5730_vm7, %v8169_v32 }
 0x35d   : > { %v3953_v4 = vpack.c.bf16 %v3943_v24, %v3938_v39  ;;  %5431 = vmatprep.subr.mxu1 %v8169_v32 }
 0x35e   : > { %5432 = vmatpush3.msra.mxu1 %v4438_v20 }
 0x35f   : > { %4338 = vmatprep.mubr.bf16.mxu0 %v3953_v4  ;;  %5433 = vmatprep.subr.mxu1 %v8169_v32 }
 0x360   : > { %v3942_v26 = vld [vmem:[#allocation4 + $0x128] sm:$0xff]  ;;  %5434 = vmatpush3.msra.mxu1 %v4437_v59 }
 0x361   : > { %v3952_v0 = vpack.c.bf16 %v3942_v26, %v3937_v12  ;;  %5435 = vmatprep.subr.mxu1 %v8169_v32 }
 0x362   : > { %5436 = vmatpush3.msra.mxu1 %v4436_v27 }
 0x363   : > { %4339 = vmatmul.mubr.bf16.gmra.mxu0 %v3952_v0  ;;  %5437 = vmatprep.subr.mxu1 %v8169_v32 }
 0x364   : > { %5438 = vmatpush3.msra.mxu1 %v4435_v37 }
 0x365   : > { %5439 = vmatprep.subr.mxu1 %v8169_v32 }
 0x366   : > { %5440 = vmatpush3.msra.mxu1 %v4434_v62 }
 0x367   : > { %5441 = vmatprep.subr.mxu1 %v8169_v32 }
 0x368   : > { %5442 = vmatpush3.msra.mxu1 %v4433_v36 }
 0x369   : > { %5443 = vmatprep.subr.mxu1 %v8169_v32 }
 0x36a   : > { %5444 = vmatpush3.msra.mxu1 %v4432_v2 }
 0x36b   : > { %5448 = vmatprep.subr.mxu1 %v8169_v32 }
 0x379   : > { %v5238_v16 = vpop.f32.mrf.mxu0 }
 0x37b   : > { %v5239_v41 = vpop.f32.mrf.mxu0 }
 0x37c   : > { %v5260_v35 = vpop.f32.mrf.mxu1  ;;  %v5240_v11 = vadd.f32 %v5239_v41, %v5238_v16 }
 0x37d   : > { %v5241_v61 = vpop.f32.mrf.mxu0 }
 0x37e   : > { %v5261_v30 = vpop.f32.mrf.mxu1  ;;  %v3816_v47 = vadd.f32 %v5240_v11, %v7966_v5 }
 0x37f   : > { %v5262_v46 = vadd.f32 %v5261_v30, %v5260_v35  ;;  %v5242_v55 = vpop.f32.mrf.mxu0 }
 0x380   : > { %v5263_v50 = vpop.f32.mrf.mxu1  ;;  %v5243_v18 = vadd.f32 %v5242_v55, %v5241_v61 }
 0x381   : > { %v5415_v8 = vpop.f32.mrf.mxu0  ;;  %v3857_v54 = vadd.f32 %v5262_v46, %v3808_v63 }
 0x382   : > { %v5264_v25 = vpop.f32.mrf.mxu1  ;;  %v3819_v43 = vadd.f32 %v5243_v18, %v7966_v5 }
 0x383   : > { %v5265_v22 = vadd.f32 %v5264_v25, %v5263_v50  ;;  %v3905_v15 = vpop.f32.mrf.mxu0 }
 0x384   : > { %v3906_v6 = vadd.f32 %v3905_v15, %v3857_v54  ;;  %v5266_v3 = vpop.f32.mrf.mxu1 }
 0x385   : > { %v5416_v29 = vpop.f32.mrf.mxu0  ;;  %v3860_v17 = vadd.f32 %v5265_v22, %v3811_v56 }
 0x386   : > { %3920 = vst.msk [vmem:[#allocation5] sm:$0xff] %vm1987_vm1, %v3906_v6  ;;  %v5267_v19 = vpop.f32.mrf.mxu1 }
 0x387   : > { %v5268_v13 = vadd.f32 %v5267_v19, %v5266_v3  ;;  %v3908_v53 = vpop.f32.mrf.mxu0 }
 0x388   : > { %v3909_v23 = vadd.f32 %v3908_v53, %v3860_v17  ;;  %v5269_v9 = vpop.f32.mrf.mxu1 }
 0x389   : > { %v3865_v57 = vadd.f32 %v5268_v13, %v3816_v47 }
 0x38a   : > { %3921 = vst.msk [vmem:[#allocation5 + $0x8] sm:$0xff] %vm1987_vm1, %v3909_v23  ;;  %v5270_v10 = vpop.f32.mrf.mxu1 }
 0x38b   : > { %v3914_v14 = vadd.f32 %v5415_v8, %v3865_v57  ;;  %v5271_v40 = vadd.f32 %v5270_v10, %v5269_v9 }
 0x38d   : > { %3922 = vst.msk [vmem:[#allocation5 + $0x10] sm:$0xff] %vm1987_vm1, %v3914_v14  ;;  %v3868_v31 = vadd.f32 %v5271_v40, %v3819_v43  ;;  %v8017_v22 = vld [vmem:[#allocation5] sm:$0xff] }
 0x38e   : > { %v4409_v18 = vsel %vm1987_vm1, %v8017_v22, 0.0 }
 0x38f   : > { %v3917_v34 = vadd.f32 %v5416_v29, %v3868_v31 }
 0x391   : > { %3923 = vst.msk [vmem:[#allocation5 + $0x18] sm:$0xff] %vm1987_vm1, %v3917_v34  ;;  %v8014_v8 = vld [vmem:[#allocation5 + $0x8] sm:$0xff] }
 0x392   : > { %v4410_v6 = vsel %vm1987_vm1, %v8014_v8, 0.0 }
 0x393   : > { %v4411_v53 = vadd.f32 %v4410_v6, %v4409_v18  ;;  %v4595_v6 = vlaneseq  ;;  %v5018_v18 = vld [vmem:[%s8156_s10] ss:$0 sm:$0xff] }
 0x394   : > { %v8021_v29 = vld [vmem:[#allocation5 + $0x10] sm:$0xff] }
 0x395   : > { %v4412_v9 = vsel %vm1987_vm1, %v8021_v29, 0.0 }
 0x396   : > { %v4413_v14 = vadd.f32 %v4412_v9, %v4411_v53 }
 0x398   : > { %v8026_v13 = vld [vmem:[#allocation5 + $0x18] sm:$0xff] }
 0x3b2   : > { %v5294_v45 = vpop.f32.mrf.mxu1 }
 0x3b4   : > { %v5295_v33 = vpop.f32.mrf.mxu1 }
 0x3b5   : > { %v5296_v58 = vadd.f32 %v5295_v33, %v5294_v45 }
 0x3b6   : > { %v5297_v48 = vpop.f32.mrf.mxu1 }
 0x3b7   : > { %v4284_v4 = vadd.f32 %v5296_v58, %v7966_v5 }
 0x3b8   : > { %v5298_v7 = vpop.f32.mrf.mxu1 }
 0x3b9   : > { %v5299_v12 = vadd.f32 %v5298_v7, %v5297_v48 }
 0x3bb   : > { %v4287_v16 = vadd.f32 %v5299_v12, %v7966_v5  ;;  %v5011_v12 = vld [vmem:[%s5868_s30 + $0x20] ss:$2 sm:$0xff] }
 0x413   : > { %v5300_v28 = vpop.f32.mrf.mxu1 }
 0x415   : > { %v5301_v38 = vpop.f32.mrf.mxu1 }
 0x416   : > { %v5322_v49 = vpop.f32.mrf.mxu0  ;;  %v5302_v46 = vadd.f32 %v5301_v38, %v5300_v28 }
 0x417   : > { %v5303_v39 = vpop.f32.mrf.mxu1 }
 0x418   : > { %v5323_v24 = vpop.f32.mrf.mxu0  ;;  %v4292_v54 = vadd.f32 %v5302_v46, %v7966_v5 }
 0x419   : > { %v5324_v26 = vadd.f32 %v5323_v24, %v5322_v49  ;;  %v5304_v0 = vpop.f32.mrf.mxu1  ;;  %v4514_v49 = vld [vmem:[%s8154_s8] sm:$0xff] }
 0x41a   : > { %v5325_v44 = vpop.f32.mrf.mxu0  ;;  %v5305_v25 = vadd.f32 %v5304_v0, %v5303_v39  ;;  %v5655_v39 = vld [vmem:[%s8155_s9 + $0x8] sm:$0xff]   ;;  %v5656_v24 = vld [vmem:[%s8155_s9] sm:$0xff]  }
 0x41b   : > { %v5427_v42 = vpop.f32.mrf.mxu1  ;;  %v4333_v60 = vadd.f32 %v5324_v26, %v4284_v4  ;;  %v4607_v4 = vld [vmem:[%s5868_s30] ss:$2 sm:$0xff]  ;;  %5453 = vmatprep.subr.bf16.mxu0 %v5655_v39 }
 0x41c   : > { %v5326_v1 = vpop.f32.mrf.mxu0  ;;  %v4295_v17 = vadd.f32 %v5305_v25, %v7966_v5  ;;  %v4414_v5 = vsel %vm1987_vm1, %v8026_v13, 0.0  ;;  %v4622_v26 = vpack.c.bf16 %v5011_v12, %v4607_v4  ;;  %5454 = vmatpush3.bf16.msra.mxu0 %v5655_v39  ;;  %v5012_v0 = vld [vmem:[%s5868_s30 + $0x40] ss:$2 sm:$0xff] }
 0x41d   : > { %v5327_v51 = vadd.f32 %v5326_v1, %v5325_v44  ;;  %v4381_v41 = vpop.f32.mrf.mxu1  ;;  %v4415_v31 = vadd.f32 %v4414_v5, %v4413_v14  ;;  %v5013_v44 = vld [vmem:[%s5868_s30 + $0x60] ss:$2 sm:$0xff]  ;;  %5455 = vmatprep.subr.bf16.mxu0 %v5656_v24 }
 0x41e   : > { %v4382_v35 = vadd.f32 %v4381_v41, %v4333_v60  ;;  %5457 = vmatprep.mubr.msk.bf16.mxu0 %vm496_vm0, %v4622_v26  ;;  %v4623_v60 = vpack.c.bf16 %v5013_v44, %v5012_v0 }
 0x41f   : > { %v5428_v61 = vpop.f32.mrf.mxu1  ;;  %v4336_v30 = vadd.f32 %v5327_v51, %v4287_v16  ;;  %v5016_v16 = vld [vmem:[%s5868_s30 + $0xc0] ss:$2 sm:$0xff] }
 0x420   : > { %4397 = vst.msk [vmem:[#allocation5 + $0x20] sm:$0xff] %vm1987_vm1, %v4382_v35  ;;  %5456 = vmatpush3.bf16.msra.mxu0 %v5656_v24  ;;  %v5017_v51 = vld [vmem:[%s5868_s30 + $0xe0] ss:$2 sm:$0xff] }
 0x421   : > { %v4384_v63 = vpop.f32.mrf.mxu1  ;;  %v4625_v41 = vpack.c.bf16 %v5017_v51, %v5016_v16 }
 0x422   : > { %v4385_v21 = vadd.f32 %v4384_v63, %v4336_v30 }
 0x423   : > { %v5328_v55 = vpop.f32.mrf.mxu0  ;;  %5458 = vmatmul.mubr.msk.bf16.vlgmr.msra.gmra.mxu0 %vm496_vm0, %v4623_v60 }
 0x424   : > { %4398 = vst.msk [vmem:[#allocation5 + $0x28] sm:$0xff] %vm1987_vm1, %v4385_v21 }
 0x425   : > { %v5329_v50 = vpop.f32.mrf.mxu0 }
 0x426   : > { %v5330_v56 = vadd.f32 %v5329_v50, %v5328_v55 }
 0x427   : > { %v5331_v11 = vpop.f32.mrf.mxu0  ;;  %v8031_v57 = vld [vmem:[#allocation5 + $0x20] sm:$0xff] }
 0x428   : > { %v4341_v15 = vadd.f32 %v5330_v56, %v4292_v54  ;;  %v4416_v40 = vsel %vm1987_vm1, %v8031_v57, 0.0 }
 0x429   : > { %v5332_v3 = vpop.f32.mrf.mxu0  ;;  %v4417_v20 = vadd.f32 %v4416_v40, %v4415_v31 }
 0x42a   : > { %v4390_v19 = vadd.f32 %v5427_v42, %v4341_v15  ;;  %v5333_v47 = vadd.f32 %v5332_v3, %v5331_v11  ;;  %v5015_v42 = vld [vmem:[%s5868_s30 + $0xa0] ss:$2 sm:$0xff] }
 0x42b   : > { %v8035_v43 = vld [vmem:[#allocation5 + $0x28] sm:$0xff] }
 0x42c   : > { %4399 = vst.msk [vmem:[#allocation5 + $0x30] sm:$0xff] %vm1987_vm1, %v4390_v19  ;;  %v4344_v23 = vadd.f32 %v5333_v47, %v4295_v17  ;;  %v4418_v34 = vsel %vm1987_vm1, %v8035_v43, 0.0  ;;  %v4596_v17 = vshrl.u32 %v4595_v6, 7 }
 0x42d   : > { %v4419_v27 = vadd.f32 %v4418_v34, %v4417_v20 }
 0x42e   : > { %v4393_v10 = vadd.f32 %v5428_v61, %v4344_v23  ;;  %v4597_v47 = vsub.s32 0, %v4596_v17 }
 0x430   : > { %4400 = vst.msk [vmem:[#allocation5 + $0x38] sm:$0xff] %vm1987_vm1, %v4393_v10 }
 0x433   : > { %v8042_v52 = vld [vmem:[#allocation5 + $0x30] sm:$0xff] }
 0x434   : > { %v4420_v59 = vsel %vm1987_vm1, %v8042_v52, 0.0 }
 0x435   : > { %v4421_v62 = vadd.f32 %v4420_v59, %v4419_v27 }
 0x437   : > { %v8046_v37 = vld [vmem:[#allocation5 + $0x38] sm:$0xff] }
 0x438   : > { %v4422_v36 = vsel %vm1987_vm1, %v8046_v37, 0.0 }
 0x439   : > { %v4423_v2 = vadd.f32 %v4422_v36, %v4421_v62 }
 0x43b   : > { %v4424_v45 = vrot.slane %v4423_v2, 4 }
 0x43d   : > { %v4425_v33 = vadd.f32 %v4424_v45, %v4423_v2 }
 0x43f   : > { %v4426_v48 = vrot.slane %v4425_v33, 2 }
 0x441   : > { %v4427_v7 = vadd.f32 %v4426_v48, %v4425_v33 }
 0x443   : > { %v4428_v28 = vrot.slane %v4427_v7, 1 }
 0x445   : > { %v4429_v58 = vadd.f32 %v4428_v28, %v4427_v7 }
 0x447   : > { %v4431_v38 = vmul.f32 0.015625, %v4429_v58 }
 0x449   : > { %5446 = vmatmul.mubr.msk.f32.vlgmr.msra.gmra.mxu1 %vm1987_vm1, %v4431_v38 }
 0x44a   : > { %5449 = vmatpush3.msra.mxu1 %v4514_v49  ;;  %5450 = vmatprep.mubr.msk.f32.mxu1 %vm5730_vm7, %v8169_v32  ;;  %v5014_v32 = vld [vmem:[%s5868_s30 + $0x80] ss:$2 sm:$0xff]  ;;  %s377_s30 = sand.u32 1, %s5716_s18  }
 0x44b   : > { %v4624_v1 = vpack.c.bf16 %v5015_v42, %v5014_v32  ;;  %s4837_s29 = sshll.u32 %s377_s30, 6  ;;  %s8106_s22 = scalar_lea.sflag [#allocation7], %s377_s30 }
 0x44c   : > { %s379_s24 = scalar_lea.vmem [#allocation6], %s4837_s29  ;;  %s5668_s29 = sshll.u32 %s5731_s16, 4  ;;  %s5669_s29 = int_to_ptr.vmem [resolvable:$false] %s5668_s29 }
 0x44d   : > { %5461 = vmatprep.mubr.msk.bf16.mxu0 %vm496_vm0, %v4624_v1  ;;  %s4756_s26 = sshll.u32 %s379_s24, 4  ;;  %s5670_s12 = scalar_lea.vmem %s5669_s29, 2048  ;;  %s8094_s26 = int_to_ptr.vmem [resolvable:$true] %s4756_s26 }
 0x44e   : > { %5462 = vmatmul.mubr.msk.bf16.gmra.mxu0 %vm496_vm0, %v4625_v41  ;;  %s5664_s25 = scalar_lea.vmem %s8094_s26, 1024  ;;  %p5671_p0 = scmp.lt.s32.totalorder %s8094_s26, %s5669_s29 }
 0x44f   : > { %p5665_p11 = scmp.ne.s32.totalorder %s8094_s26, %s5664_s25  ;;  %p5672_p1 = scmp.lt.s32.totalorder %s5670_s12, %s5664_s25 }
 0x451   : > { %p5666_p12 = pnand %p5665_p11, %p5832_p5  ;;  %p5673_p2 = por %p5672_p1, %p5671_p0 }
 0x453   : > { %p5667_p13 = pneg %p5666_p12 }
 0x455   : > { %p5674_p3 = pnand %p5673_p2, %p5667_p13 }
 0x4e3   : > { %v5459_v55 = vpop.f32.mrf.mxu0 }
 0x4e4   : > { %v4704_v9 = vadd.f32 %v5459_v55, %v5018_v18 }
 0x4e5   : > { %v4695_v50 = vpop.f32.mrf.mxu0 }
 0x4e6   : > { %v4696_v5 = vadd.f32 %v5018_v18, %v4695_v50 }
 0x4e7   : > { %v5460_v54 = vpop.f32.mrf.mxu0 }
 0x4e8   : > { %v4707_v14 = vadd.f32 %v5460_v54, %v5018_v18 }
 0x4e9   : > { %v4698_v25 = vpop.f32.mrf.mxu0 }
 0x4ea   : > { %v4699_v40 = vadd.f32 %v5018_v18, %v4698_v25 }
 0x509   : > { %v4509_v35 = vpop.f32.mrf.mxu1 }
 0x50a   : > { %v4513_v61 = vmax.f32 %v4509_v35, 0.0 }
 0x50b   : > { %v5447_v30 = vpop.f32.mrf.mxu1 }
 0x50c   : > { %5451 = vmatmul.mubr.msk.f32.vlgmr.msra.gmra.mxu1 %vm4515_vm6, %v4513_v61 }
 0x50e   : > { %v5463_v15 = vpop.f32.mrf.mxu0 }
 0x50f   : > { %v4720_v31 = vadd.f32 %v5463_v15, %v5018_v18 }
 0x510   : > { %v4711_v3 = vpop.f32.mrf.mxu0 }
 0x511   : > { %v4712_v34 = vadd.f32 %v5018_v18, %v4711_v3 }
 0x512   : > { %v5464_v19 = vpop.f32.mrf.mxu0 }
 0x513   : > { %v4723_v20 = vadd.f32 %v5464_v19, %v5018_v18 }
 0x514   : > { %v4714_v53 = vpop.f32.mrf.mxu0 }
 0x515   : > { %v4715_v59 = vadd.f32 %v5018_v18, %v4714_v53 }
 0x5cc   : > { %v4585_v63 = vpop.f32.mrf.mxu1 }
 0x5cd   : > { %v5010_v21 = vmul.f32 -1.442695, %v4585_v63 }
 0x5ce   : > { %v5452_v46 = vpop.f32.mrf.mxu1 }
 0x5cf   : > { %5657 = vpow2.f32 %v5010_v21 }
 0x5dc   : > { %v5658_v56 = vpop.eup %5657 }
 0x5dd   : > { %v4592_v11 = vadd.f32 1.0, %v5658_v56 }
 0x5df   : > { %5659 = vrcp.f32 %v4592_v11 }
 0x5ec   : > { %v5660_v23 = vpop.eup %5659 }
 0x5ed   : > { %v4598_v10 = vrot.slane %v5660_v23, %v4597_v47 }
 0x5ef   : > { %v4601_v27 = vmul.f32 %v4598_v10, %v8021_v29  ;;  %v4599_v62 = vmul.f32 %v4598_v10, %v8017_v22  ;;  %v4602_v36 = vmul.f32 %v4598_v10, %v8026_v13  ;;  %v4600_v2 = vmul.f32 %v4598_v10, %v8014_v8 }
 0x5f0   : > { %v4605_v45 = vmul.f32 %v4598_v10, %v8042_v52  ;;  %v4603_v33 = vmul.f32 %v4598_v10, %v8031_v57  ;;  %v4606_v48 = vmul.f32 %v4598_v10, %v8046_v37  ;;  %v4604_v7 = vmul.f32 %v4598_v10, %v8035_v43 }
 0x5f1   : > { %v4728_v28 = vadd.f32 %v4704_v9, %v4601_v27  ;;  %v4726_v58 = vadd.f32 %v4696_v5, %v4599_v62  ;;  %v4729_v38 = vadd.f32 %v4707_v14, %v4602_v36  ;;  %v4727_v49 = vadd.f32 %v4699_v40, %v4600_v2 }
 0x5f2   : > { %v4732_v8 = vadd.f32 %v4720_v31, %v4605_v45  ;;  %v4730_v22 = vadd.f32 %v4712_v34, %v4603_v33  ;;  %v4733_v29 = vadd.f32 %v4723_v20, %v4606_v48  ;;  %v4731_v13 = vadd.f32 %v4715_v59, %v4604_v7 }
 0x5f3   : > { %4736 = vst.msk [vmem:[%s379_s24 + $0x10] sm:$0xff] %vm1987_vm1, %v4728_v28  ;;  %4734 = vst.msk [vmem:[%s379_s24] sm:$0xff] %vm1987_vm1, %v4726_v58 }
 0x5f4   : > { %4737 = vst.msk [vmem:[%s379_s24 + $0x18] sm:$0xff] %vm1987_vm1, %v4729_v38  ;;  %4735 = vst.msk [vmem:[%s379_s24 + $0x8] sm:$0xff] %vm1987_vm1, %v4727_v49 }
 0x5f5   : > { %4740 = vst.msk [vmem:[%s379_s24 + $0x30] sm:$0xff] %vm1987_vm1, %v4732_v8  ;;  %4738 = vst.msk [vmem:[%s379_s24 + $0x20] sm:$0xff] %vm1987_vm1, %v4730_v22 }
 0x5f6   : > { %4741 = vst.msk [vmem:[%s379_s24 + $0x38] sm:$0xff] %vm1987_vm1, %v4733_v29  ;;  %4739 = vst.msk [vmem:[%s379_s24 + $0x28] sm:$0xff] %vm1987_vm1, %v4731_v13 }
 0x5f7   : > { %5677 = shalt.err (!%p5674_p3)
}
 0x5f8   : > { %s5678_s30 = scalar_lea.hbm %s8092_s15, 1024  ;;  %s5682_s24 = scalar_lea.hbm %s8157_s11, 2048 }
 0x5f9   : > { %p5679_p4 = scmp.ne.s32.totalorder %s8092_s15, %s5678_s30  ;;  %p5683_p9 = scmp.lt.s32.totalorder %s8092_s15, %s8157_s11 }
 0x5fa   : > { %p5684_p10 = scmp.lt.s32.totalorder %s5682_s24, %s5678_s30 }
 0x5fb   : > { %p5680_p7 = pnand %p5679_p4, %p5832_p5 }
 0x5fc   : > { %p5685_p11 = por %p5684_p10, %p5683_p9 }
 0x5fd   : > { %p5681_p8 = pneg %p5680_p7 }
 0x5ff   : > { %p5686_p12 = pnand %p5685_p11, %p5681_p8 }
 0x601   : > { %5689 = shalt.err (!%p5686_p12)
}
 0x602   : > { %s5732_s25 = smov 128   ;;  %s5733_s16 = smov 8  }
 0x603   : > { %5465 = dma.vmem_to_hbm [thread:$0]  (%p5832_p5), %s8094_s26, 1024, %s8092_s15, %s8106_s22, %s5732_s25, %s5732_s25, %s5733_s16  }
 0x604 PF: > { %p5471_p13 = scmp.ge.s32.totalorder %s5724_s20, 2  ;;  %s4771_s29 = sand.u32 1, %s5712_s17  }
 0x605   : > { %s4772_s12 = scalar_lea.sflag [#allocation7], %s4771_s29 }
 0x606   : > { %p5468_p0 = pnand %p5471_p13, %p5836_p6 }
 0x608   : > { %p5469_p1 = pneg %p5468_p0 }
 0x60a   : > { %5707 = dma.done.wait (%p5469_p1), %s4772_s12, 1024  }
 0x60b   : > { %5709 = vsyncadd (%p5469_p1), %s4772_s12, 4294966272  ;;  %s8172_s30 = sld [smem:[#allocation9_spill]]  ;;  %p21_p2 = scmp.ge.s32.totalorder %s5819_s23, 4  }
 0x60c   : > { %s8173_s17 = smov %s5716_s18  ;;  %s8174_s18 = smov %s5720_s19 }
 0x60d   : > { %s8176_s20 = smov %s5819_s23  ;;  %23 = sbr.rel (!%p21_p2) target bundleno = 5 (0x5), region = 148 }
 0x611   : > { %s8175_s19 = smov %s8172_s30 }
 0x612   :  { %4777 = vsyncpa [#allocation7], 1 }
 0x613   :  { %4779 = vsyncpa [#allocation7 + $0x1], 1 }

</bundles_post_ra>
